<compile_context>
chip_gen: v5e
topology: v5e:2x2
jax: 0.10.0
libtpu: 0.0.40
codegen_flags: <defaults>
</compile_context>

<pallas_src>
import functools

import jax
import jax.numpy as jnp
from jax import lax
from jax.experimental import pallas as pl
from jax.experimental.pallas import tpu as pltpu


# ------------------------------ projection kernel ------------------------------
def _proj_kernel(x_ref, w_ref, o_ref):
    o_ref[...] = jnp.dot(x_ref[...], w_ref[...],
                         preferred_element_type=jnp.float32)


def _project(x, w):
    """bf16-operand, f32-accumulate matmul; few fat steps (lane-dense output)."""
    n, fin = x.shape
    k = w.shape[1]
    tm = min(n, 512)
    return pl.pallas_call(
        _proj_kernel,
        out_shape=jax.ShapeDtypeStruct((n, k), jnp.float32),
        grid=(pl.cdiv(n, tm),),
        in_specs=[pl.BlockSpec((tm, fin), lambda i: (i, 0)),
                  pl.BlockSpec((fin, k), lambda i: (0, 0))],
        out_specs=pl.BlockSpec((tm, k), lambda i: (i, 0)),
        compiler_params=pltpu.CompilerParams(
            dimension_semantics=("parallel",)),
    )(x.astype(jnp.bfloat16), w.astype(jnp.bfloat16))


# ------------------------------ attention kernel -------------------------------
def _gat_attn_kernel(adj_ref, slab_ref, asrc_ref, adst_ref, bias_ref, o_ref, *,
                     heads, out_dim, concat, activation):
    tm, out_pad = o_ref.shape

    acc = jnp.zeros((tm, out_pad), jnp.float32)

    # Head loop fully unrolled (heads is a small static constant): the scheduler can
    # overlap head h's MXU/XLU work with head h+1's EUP exp chain, and all slices
    # below stay static.
    for h in range(heads):
        s = asrc_ref[h:h + 1, :]                       # [1, N]  source scalars
        d = adst_ref[:, h:h + 1]                       # [TM, 1] target scalars
        logits = d + s                                 # [TM, N]
        logits = jnp.where(logits > 0, logits, 0.2 * logits)   # LeakyReLU(0.2)
        # Unmasked row max is a valid softmax stabilizer (>= masked max); raw
        # LeakyReLU logits are O(1) here so exp cannot over/underflow badly.
        m = jnp.max(logits, axis=-1, keepdims=True)    # [TM, 1]
        p = jnp.exp(logits - m)                        # [TM, N]
        # Mask non-edges with the resident int8 adjacency tile (no persistent
        # [TM, N] f32 mask-bias buffer held across the head loop).
        p = p * adj_ref[...].astype(jnp.float32)
        rs = jnp.sum(p, axis=-1, keepdims=True)        # [TM, 1]
        inv = pl.reciprocal(jnp.maximum(rs, 1e-20), approx=True)
        # bf16 MXU operands, f32 accumulation.  The slab already places head h's C
        # columns at its output offset, so no one-hot placement matmul is needed.
        num = jnp.dot(p.astype(jnp.bfloat16), slab_ref[h],
                      preferred_element_type=jnp.float32)       # [TM, OUT_PAD]
        acc = acc + num * inv

    if not concat:
        acc = acc * jnp.float32(1.0 / heads)           # mean over heads
    acc = acc + bias_ref[...]

    if activation == "relu":
        acc = jnp.maximum(acc, 0.0)
    elif activation == "log_softmax":
        col = lax.broadcasted_iota(jnp.int32, (1, out_pad), 1)
        valid = col < out_dim
        zz = jnp.where(valid, acc, jnp.float32(-1e30))
        mm = jnp.max(zz, axis=-1, keepdims=True)
        lse = jnp.log(jnp.sum(jnp.exp(zz - mm), axis=-1, keepdims=True)) + mm
        acc = jnp.where(valid, acc - lse, 0.0)

    o_ref[...] = acc                                   # single lane-dense store


def gat_conv(x, w, att_src, att_dst, bias, adj_i8, *, heads, out_ch, concat,
             activation, tm=128):
    """One GATConv layer (eval mode): fused Pallas projection + Pallas attention."""
    n, fin = x.shape
    hc = heads * out_ch
    out_dim = hc if concat else out_ch
    out_pad = ((out_dim + 127) // 128) * 128           # lane-dense padded output

    # Row tile: keep >=4 row tiles (>=2 grid steps per v7x TensorCore) when the
    # graph is big enough, sublane-aligned to 8.
    tm = max(8, min(tm, n))
    if n >= 32:
        tm = min(tm, max(8, ((-(-n // 4)) + 7) // 8 * 8))

    # ---- fold att_src / att_dst into the projection: one matmul -> xw, a_src, a_dst
    w_f32 = w.astype(jnp.float32)
    w3 = w_f32.reshape(fin, heads, out_ch)
    w_asrc = jnp.einsum("fhc,hc->fh", w3, att_src.astype(jnp.float32))
    w_adst = jnp.einsum("fhc,hc->fh", w3, att_dst.astype(jnp.float32))
    w_aug = jnp.concatenate([w_f32, w_asrc, w_adst], axis=1)    # [fin, H*C + 2H]
    k = hc + 2 * heads
    k_pad = ((k + 127) // 128) * 128
    w_aug = jnp.pad(w_aug, ((0, 0), (0, k_pad - k)))
    proj = _project(x, w_aug)                                   # [N, k_pad] f32

    xw = proj[:, :hc]                                           # [N, H*C]
    a_src = proj[:, hc:hc + heads].T                            # [H, N] lane-dense
    a_dst = proj[:, hc + heads:hc + 2 * heads]                  # [N, H]

    # ---- pre-placed bf16 value slab: head h's C columns at its output offset
    xw3 = xw.reshape(n, heads, out_ch).transpose(1, 0, 2)       # [H, N, C]
    slab = jnp.zeros((heads, n, out_pad), jnp.bfloat16)
    for h in range(heads):
        off = h * out_ch if concat else 0
        slab = slab.at[h, :, off:off + out_ch].set(xw3[h].astype(jnp.bfloat16))

    bias_pad = jnp.zeros((1, out_pad), jnp.float32).at[0, :out_dim].set(
        bias.astype(jnp.float32))

    kernel = functools.partial(_gat_attn_kernel, heads=heads, out_dim=out_dim,
                               concat=concat, activation=activation)
    out_padded = pl.pallas_call(
        kernel,
        out_shape=jax.ShapeDtypeStruct((n, out_pad), jnp.float32),
        grid=(pl.cdiv(n, tm),),
        in_specs=[
            pl.BlockSpec((tm, n), lambda i: (i, 0)),              # adj int8 row tile
            pl.BlockSpec((heads, n, out_pad), lambda i: (0, 0, 0)),  # bf16 slab
            pl.BlockSpec((heads, n), lambda i: (0, 0)),           # a_src [H, N]
            pl.BlockSpec((tm, heads), lambda i: (i, 0)),          # a_dst row tile
            pl.BlockSpec((1, out_pad), lambda i: (0, 0)),         # bias
        ],
        out_specs=pl.BlockSpec((tm, out_pad), lambda i: (i, 0)),
        compiler_params=pltpu.CompilerParams(
            dimension_semantics=("parallel",),
            vmem_limit_bytes=32 * 1024 * 1024),
    )(adj_i8, slab, a_src, a_dst, bias_pad)
    return out_padded[:, :out_dim]


def build_adjacency(edge_index, num_nodes):
    """Dense adjacency with self-loops, built ONCE in its int8 streaming dtype."""
    src, dst = edge_index[0], edge_index[1]
    adj = jnp.zeros((num_nodes, num_nodes), jnp.float32)
    adj = adj.at[dst, src].set(1.0)                    # message j -> i stored at [i, j]
    adj = jnp.maximum(adj, jnp.eye(num_nodes, dtype=jnp.float32))
    return adj.astype(jnp.int8)


def gat_forward(x, edge_index, params, *, heads, hidden, out_ch, tm=128):
    """Forward pass of the 2-layer GAT (eval mode)."""
    n = x.shape[0]
    adj_i8 = build_adjacency(edge_index, n)            # shared by both layers
    # conv1 (heads, concat=True) fused with F.relu
    h = gat_conv(x, params["w1"], params["att_src1"], params["att_dst1"],
                 params["b1"], adj_i8, heads=heads, out_ch=hidden, concat=True,
                 activation="relu", tm=tm)
    # F.dropout(training=False) == identity
    # conv2 (1 head, concat=False) fused with log_softmax(dim=1)
    return gat_conv(h, params["w2"], params["att_src2"], params["att_dst2"],
                    params["b2"], adj_i8, heads=1, out_ch=out_ch, concat=False,
                    activation="log_softmax", tm=tm)


# ------------------------ pure-JAX f32 reference (same math) -------------------
def _gat_conv_ref(x, w, att_src, att_dst, bias, adj, heads, out_ch, concat,
                  activation):
    n = x.shape[0]
    xw = (x @ w).reshape(n, heads, out_ch)
    a_src = jnp.einsum("nhc,hc->nh", xw, att_src)
    a_dst = jnp.einsum("nhc,hc->nh", xw, att_dst)
    logits = a_dst.T[:, :, None] + a_src.T[:, None, :]          # [H, N, N]
    logits = jnp.where(logits > 0, logits, 0.2 * logits)
    logits = jnp.where(adj[None] > 0, logits, -1e30)
    attn = jax.nn.softmax(logits, axis=-1)
    out = jnp.einsum("hij,jhc->ihc", attn, xw)                  # [N, H, C]
    out = out.reshape(n, heads * out_ch) if concat else out.mean(axis=1)
    out = out + bias
    if activation == "relu":
        out = jax.nn.relu(out)
    elif activation == "log_softmax":
        out = jax.nn.log_softmax(out, axis=-1)
    return out


def gat_forward_ref(x, edge_index, params, *, heads, hidden, out_ch):
    adj = build_adjacency(edge_index, x.shape[0]).astype(jnp.float32)
    h = _gat_conv_ref(x, params["w1"], params["att_src1"], params["att_dst1"],
                      params["b1"], adj, heads, hidden, True, "relu")
    return _gat_conv_ref(h, params["w2"], params["att_src2"],
                         params["att_dst2"], params["b2"], adj, 1, out_ch,
                         False, "log_softmax")


if __name__ == "__main__":
    N, IN_CH, HIDDEN, HEADS, OUT_CH, E = 256, 16, 8, 8, 4, 512
    TM = 128   # auto-shrunk to 64 inside gat_conv -> 4 row tiles (2 per v7x TC)

    key = jax.random.PRNGKey(0)
    ks = jax.random.split(key, 10)
    x = jax.random.normal(ks[0], (N, IN_CH), jnp.float32)
    edge_index = jax.random.randint(ks[1], (2, E), 0, N, dtype=jnp.int32)

    params = {
        "w1": 0.2 * jax.random.normal(ks[2], (IN_CH, HEADS * HIDDEN), jnp.float32),
        "att_src1": 0.2 * jax.random.normal(ks[3], (HEADS, HIDDEN), jnp.float32),
        "att_dst1": 0.2 * jax.random.normal(ks[4], (HEADS, HIDDEN), jnp.float32),
        "b1": 0.1 * jax.random.normal(ks[5], (HEADS * HIDDEN,), jnp.float32),
        "w2": 0.2 * jax.random.normal(ks[6], (HEADS * HIDDEN, OUT_CH), jnp.float32),
        "att_src2": 0.2 * jax.random.normal(ks[7], (1, OUT_CH), jnp.float32),
        "att_dst2": 0.2 * jax.random.normal(ks[8], (1, OUT_CH), jnp.float32),
        "b2": 0.1 * jax.random.normal(ks[9], (OUT_CH,), jnp.float32),
    }

    fwd = jax.jit(functools.partial(gat_forward, heads=HEADS, hidden=HIDDEN,
                                    out_ch=OUT_CH, tm=TM))
    out = jax.block_until_ready(fwd(x, edge_index, params))

    ref = gat_forward_ref(x, edge_index, params, heads=HEADS, hidden=HIDDEN,
                          out_ch=OUT_CH)
    assert out.shape == (N, OUT_CH)
    # tolerance covers bf16 MXU operands (projection + attention value matmul) and
    # the approx EUP reciprocal used for the softmax normalization
    assert jnp.allclose(out, ref, atol=3e-2, rtol=3e-2), (
        f"max abs err {jnp.max(jnp.abs(out - ref))}")

    print("KERNEL_OK")
</pallas_src>

<mosaic_0001>
module attributes {stable_mosaic.version = 11 : i64} {
  func.func @_proj_kernel(%arg0: i32, %arg1: memref<256x16xbf16, #tpu.memory_space<vmem>>, %arg2: memref<16x128xbf16, #tpu.memory_space<vmem>>, %arg3: memref<256x128xf32, #tpu.memory_space<vmem>>) attributes {dimension_semantics = [#tpu.dimension_semantics<parallel>], iteration_bounds = array<i64: 1>, scalar_prefetch = 0 : i64, scratch_operands = 0 : i64, tpu.core_type = #tpu.core_type<tc>, window_params = [{transform_indices = @transform_0, window_bounds = array<i64: 256, 16>}, {pipeline_mode = #tpu.pipeline_mode<synchronous>, transform_indices = @transform_1, window_bounds = array<i64: 16, 128>}, {transform_indices = @transform_2, window_bounds = array<i64: 256, 128>}]} {
    %c0 = arith.constant 0 : index
    %c0_0 = arith.constant 0 : index
    %0 = vector.load %arg1[%c0, %c0_0] : memref<256x16xbf16, #tpu.memory_space<vmem>>, vector<256x16xbf16>
    %c0_1 = arith.constant 0 : index
    %c0_2 = arith.constant 0 : index
    %1 = vector.load %arg2[%c0_1, %c0_2] : memref<16x128xbf16, #tpu.memory_space<vmem>>, vector<16x128xbf16>
    %cst = arith.constant dense<0.000000e+00> : vector<256x128xf32>
    %2 = tpu.matmul %0, %1, %cst {dimension_numbers = #tpu.dot_dimension_numbers<[1], [0], [0], [1], [0, 0, 1, 1], [], []>} : vector<256x16xbf16>, vector<16x128xbf16>, vector<256x128xf32> -> vector<256x128xf32>
    %c0_3 = arith.constant 0 : index
    %c0_4 = arith.constant 0 : index
    %3 = vector.load %arg3[%c0_3, %c0_4] : memref<256x128xf32, #tpu.memory_space<vmem>>, vector<256x128xf32>
    tpu.vector_store %arg3[%c0_3, %c0_4], %2 {strides = array<i32>} : memref<256x128xf32, #tpu.memory_space<vmem>>, vector<256x128xf32>,
    return
  }
  func.func @transform_0(%arg0: i32) -> (i32, i32) {
    %c0_i32 = arith.constant 0 : i32
    %c0_i32_0 = arith.constant 0 : i32
    return %arg0, %c0_i32 : i32, i32
  }
  func.func @transform_1(%arg0: i32) -> (i32, i32) {
    %c0_i32 = arith.constant 0 : i32
    %c0_i32_0 = arith.constant 0 : i32
    %c0_i32_1 = arith.constant 0 : i32
    return %c0_i32, %c0_i32_0 : i32, i32
  }
  func.func @transform_2(%arg0: i32) -> (i32, i32) {
    %c0_i32 = arith.constant 0 : i32
    %c0_i32_0 = arith.constant 0 : i32
    return %arg0, %c0_i32 : i32, i32
  }
}

module attributes {stable_mosaic.version = 11 : i64} {
  func.func @_gat_attn_kernel(%arg0: i32, %arg1: memref<64x256xi8, #tpu.memory_space<vmem>>, %arg2: memref<8x256x128xbf16, #tpu.memory_space<vmem>>, %arg3: memref<8x256xf32, #tpu.memory_space<vmem>>, %arg4: memref<64x8xf32, #tpu.memory_space<vmem>>, %arg5: memref<1x128xf32, #tpu.memory_space<vmem>>, %arg6: memref<64x128xf32, #tpu.memory_space<vmem>>) attributes {dimension_semantics = [#tpu.dimension_semantics<parallel>], iteration_bounds = array<i64: 4>, scalar_prefetch = 0 : i64, scratch_operands = 0 : i64, tpu.core_type = #tpu.core_type<tc>, window_params = [{transform_indices = @transform_0, window_bounds = array<i64: 64, 256>}, {pipeline_mode = #tpu.pipeline_mode<synchronous>, transform_indices = @transform_1, window_bounds = array<i64: 8, 256, 128>}, {pipeline_mode = #tpu.pipeline_mode<synchronous>, transform_indices = @transform_2, window_bounds = array<i64: 8, 256>}, {transform_indices = @transform_3, window_bounds = array<i64: 64, 8>}, {pipeline_mode = #tpu.pipeline_mode<synchronous>, transform_indices = @transform_4, window_bounds = array<i64: 1, 128>}, {transform_indices = @transform_5, window_bounds = array<i64: 64, 128>}]} {
    %cst = arith.constant 0.000000e+00 : f32
    %0 = vector.broadcast %cst : f32 to vector<64x128xf32>
    %c0 = arith.constant 0 : index
    %c0_0 = arith.constant 0 : index
    %1 = vector.load %arg3[%c0, %c0_0] : memref<8x256xf32, #tpu.memory_space<vmem>>, vector<1x256xf32>
    %c0_1 = arith.constant 0 : index
    %c0_2 = arith.constant 0 : index
    %2 = vector.load %arg4[%c0_1, %c0_2] : memref<64x8xf32, #tpu.memory_space<vmem>>, vector<64x1xf32>
    %3 = vector.broadcast %2 : vector<64x1xf32> to vector<64x256xf32>
    %4 = vector.broadcast %1 : vector<1x256xf32> to vector<64x256xf32>
    %5 = arith.addf %3, %4 : vector<64x256xf32>
    %cst_3 = arith.constant 0.000000e+00 : f32
    %6 = vector.broadcast %cst_3 : f32 to vector<64x256xf32>
    %7 = arith.cmpf ogt, %5, %6 : vector<64x256xf32>
    %cst_4 = arith.constant 2.000000e-01 : f32
    %8 = vector.broadcast %cst_4 : f32 to vector<64x256xf32>
    %9 = arith.mulf %8, %5 : vector<64x256xf32>
    %10 = arith.select %7, %5, %9 : vector<64x256xi1>, vector<64x256xf32>
    %cst_5 = arith.constant dense<0xFF800000> : vector<64xf32>
    %11 = vector.multi_reduction <maximumf>, %10, %cst_5 [1] : vector<64x256xf32> to vector<64xf32>
    %12 = vector.shape_cast %11 : vector<64xf32> to vector<64x1xf32>
    %13 = vector.broadcast %12 : vector<64x1xf32> to vector<64x256xf32>
    %14 = arith.subf %10, %13 : vector<64x256xf32>
    %15 = math.exp %14 : vector<64x256xf32>
    %c0_6 = arith.constant 0 : index
    %c0_7 = arith.constant 0 : index
    %16 = vector.load %arg1[%c0_6, %c0_7] : memref<64x256xi8, #tpu.memory_space<vmem>>, vector<64x256xi8>
    %17 = arith.sitofp %16 : vector<64x256xi8> to vector<64x256xf32>
    %18 = arith.mulf %15, %17 : vector<64x256xf32>
    %cst_8 = arith.constant dense<0.000000e+00> : vector<64xf32>
    %19 = vector.multi_reduction <add>, %18, %cst_8 [1] : vector<64x256xf32> to vector<64xf32>
    %20 = vector.shape_cast %19 : vector<64xf32> to vector<64x1xf32>
    %cst_9 = arith.constant 9.99999968E-21 : f32
    %21 = vector.broadcast %cst_9 : f32 to vector<64x1xf32>
    %22 = arith.maximumf %20, %21 : vector<64x1xf32>
    %23 = tpu.reciprocal %22 {approx = true} : vector<64x1xf32> -> vector<64x1xf32>
    %24 = arith.truncf %18 : vector<64x256xf32> to vector<64x256xbf16>
    %c0_10 = arith.constant 0 : index
    %c0_11 = arith.constant 0 : index
    %c0_12 = arith.constant 0 : index
    %25 = vector.load %arg2[%c0_10, %c0_11, %c0_12] : memref<8x256x128xbf16, #tpu.memory_space<vmem>>, vector<1x256x128xbf16>
    %26 = vector.shape_cast %25 : vector<1x256x128xbf16> to vector<256x128xbf16>
    %cst_13 = arith.constant dense<0.000000e+00> : vector<64x128xf32>
    %27 = tpu.matmul %24, %26, %cst_13 {dimension_numbers = #tpu.dot_dimension_numbers<[1], [0], [0], [1], [0, 0, 1, 1], [], []>} : vector<64x256xbf16>, vector<256x128xbf16>, vector<64x128xf32> -> vector<64x128xf32>
    %28 = vector.broadcast %23 : vector<64x1xf32> to vector<64x128xf32>
    %29 = arith.mulf %27, %28 : vector<64x128xf32>
    %30 = arith.addf %0, %29 : vector<64x128xf32>
    %c1 = arith.constant 1 : index
    %c0_14 = arith.constant 0 : index
    %31 = vector.load %arg3[%c1, %c0_14] : memref<8x256xf32, #tpu.memory_space<vmem>>, vector<1x256xf32>
    %c0_15 = arith.constant 0 : index
    %c1_16 = arith.constant 1 : index
    %32 = vector.load %arg4[%c0_15, %c1_16] : memref<64x8xf32, #tpu.memory_space<vmem>>, vector<64x1xf32>
    %33 = vector.broadcast %32 : vector<64x1xf32> to vector<64x256xf32>
    %34 = vector.broadcast %31 : vector<1x256xf32> to vector<64x256xf32>
    %35 = arith.addf %33, %34 : vector<64x256xf32>
    %cst_17 = arith.constant 0.000000e+00 : f32
    %36 = vector.broadcast %cst_17 : f32 to vector<64x256xf32>
    %37 = arith.cmpf ogt, %35, %36 : vector<64x256xf32>
    %cst_18 = arith.constant 2.000000e-01 : f32
    %38 = vector.broadcast %cst_18 : f32 to vector<64x256xf32>
    %39 = arith.mulf %38, %35 : vector<64x256xf32>
    %40 = arith.select %37, %35, %39 : vector<64x256xi1>, vector<64x256xf32>
    %cst_19 = arith.constant dense<0xFF800000> : vector<64xf32>
    %41 = vector.multi_reduction <maximumf>, %40, %cst_19 [1] : vector<64x256xf32> to vector<64xf32>
    %42 = vector.shape_cast %41 : vector<64xf32> to vector<64x1xf32>
    %43 = vector.broadcast %42 : vector<64x1xf32> to vector<64x256xf32>
    %44 = arith.subf %40, %43 : vector<64x256xf32>
    %45 = math.exp %44 : vector<64x256xf32>
    %c0_20 = arith.constant 0 : index
    %c0_21 = arith.constant 0 : index
    %46 = vector.load %arg1[%c0_20, %c0_21] : memref<64x256xi8, #tpu.memory_space<vmem>>, vector<64x256xi8>
    %47 = arith.sitofp %46 : vector<64x256xi8> to vector<64x256xf32>
    %48 = arith.mulf %45, %47 : vector<64x256xf32>
    %cst_22 = arith.constant dense<0.000000e+00> : vector<64xf32>
    %49 = vector.multi_reduction <add>, %48, %cst_22 [1] : vector<64x256xf32> to vector<64xf32>
    %50 = vector.shape_cast %49 : vector<64xf32> to vector<64x1xf32>
    %cst_23 = arith.constant 9.99999968E-21 : f32
    %51 = vector.broadcast %cst_23 : f32 to vector<64x1xf32>
    %52 = arith.maximumf %50, %51 : vector<64x1xf32>
    %53 = tpu.reciprocal %52 {approx = true} : vector<64x1xf32> -> vector<64x1xf32>
    %54 = arith.truncf %48 : vector<64x256xf32> to vector<64x256xbf16>
    %c1_24 = arith.constant 1 : index
    %c0_25 = arith.constant 0 : index
    %c0_26 = arith.constant 0 : index
    %55 = vector.load %arg2[%c1_24, %c0_25, %c0_26] : memref<8x256x128xbf16, #tpu.memory_space<vmem>>, vector<1x256x128xbf16>
    %56 = vector.shape_cast %55 : vector<1x256x128xbf16> to vector<256x128xbf16>
    %cst_27 = arith.constant dense<0.000000e+00> : vector<64x128xf32>
    %57 = tpu.matmul %54, %56, %cst_27 {dimension_numbers = #tpu.dot_dimension_numbers<[1], [0], [0], [1], [0, 0, 1, 1], [], []>} : vector<64x256xbf16>, vector<256x128xbf16>, vector<64x128xf32> -> vector<64x128xf32>
    %58 = vector.broadcast %53 : vector<64x1xf32> to vector<64x128xf32>
    %59 = arith.mulf %57, %58 : vector<64x128xf32>
    %60 = arith.addf %30, %59 : vector<64x128xf32>
    %c2 = arith.constant 2 : index
    %c0_28 = arith.constant 0 : index
    %61 = vector.load %arg3[%c2, %c0_28] : memref<8x256xf32, #tpu.memory_space<vmem>>, vector<1x256xf32>
    %c0_29 = arith.constant 0 : index
    %c2_30 = arith.constant 2 : index
    %62 = vector.load %arg4[%c0_29, %c2_30] : memref<64x8xf32, #tpu.memory_space<vmem>>, vector<64x1xf32>
    %63 = vector.broadcast %62 : vector<64x1xf32> to vector<64x256xf32>
    %64 = vector.broadcast %61 : vector<1x256xf32> to vector<64x256xf32>
    %65 = arith.addf %63, %64 : vector<64x256xf32>
    %cst_31 = arith.constant 0.000000e+00 : f32
    %66 = vector.broadcast %cst_31 : f32 to vector<64x256xf32>
    %67 = arith.cmpf ogt, %65, %66 : vector<64x256xf32>
    %cst_32 = arith.constant 2.000000e-01 : f32
    %68 = vector.broadcast %cst_32 : f32 to vector<64x256xf32>
    %69 = arith.mulf %68, %65 : vector<64x256xf32>
    %70 = arith.select %67, %65, %69 : vector<64x256xi1>, vector<64x256xf32>
    %cst_33 = arith.constant dense<0xFF800000> : vector<64xf32>
    %71 = vector.multi_reduction <maximumf>, %70, %cst_33 [1] : vector<64x256xf32> to vector<64xf32>
    %72 = vector.shape_cast %71 : vector<64xf32> to vector<64x1xf32>
    %73 = vector.broadcast %72 : vector<64x1xf32> to vector<64x256xf32>
    %74 = arith.subf %70, %73 : vector<64x256xf32>
    %75 = math.exp %74 : vector<64x256xf32>
    %c0_34 = arith.constant 0 : index
    %c0_35 = arith.constant 0 : index
    %76 = vector.load %arg1[%c0_34, %c0_35] : memref<64x256xi8, #tpu.memory_space<vmem>>, vector<64x256xi8>
    %77 = arith.sitofp %76 : vector<64x256xi8> to vector<64x256xf32>
    %78 = arith.mulf %75, %77 : vector<64x256xf32>
    %cst_36 = arith.constant dense<0.000000e+00> : vector<64xf32>
    %79 = vector.multi_reduction <add>, %78, %cst_36 [1] : vector<64x256xf32> to vector<64xf32>
    %80 = vector.shape_cast %79 : vector<64xf32> to vector<64x1xf32>
    %cst_37 = arith.constant 9.99999968E-21 : f32
    %81 = vector.broadcast %cst_37 : f32 to vector<64x1xf32>
    %82 = arith.maximumf %80, %81 : vector<64x1xf32>
    %83 = tpu.reciprocal %82 {approx = true} : vector<64x1xf32> -> vector<64x1xf32>
    %84 = arith.truncf %78 : vector<64x256xf32> to vector<64x256xbf16>
    %c2_38 = arith.constant 2 : index
    %c0_39 = arith.constant 0 : index
    %c0_40 = arith.constant 0 : index
    %85 = vector.load %arg2[%c2_38, %c0_39, %c0_40] : memref<8x256x128xbf16, #tpu.memory_space<vmem>>, vector<1x256x128xbf16>
    %86 = vector.shape_cast %85 : vector<1x256x128xbf16> to vector<256x128xbf16>
    %cst_41 = arith.constant dense<0.000000e+00> : vector<64x128xf32>
    %87 = tpu.matmul %84, %86, %cst_41 {dimension_numbers = #tpu.dot_dimension_numbers<[1], [0], [0], [1], [0, 0, 1, 1], [], []>} : vector<64x256xbf16>, vector<256x128xbf16>, vector<64x128xf32> -> vector<64x128xf32>
    %88 = vector.broadcast %83 : vector<64x1xf32> to vector<64x128xf32>
    %89 = arith.mulf %87, %88 : vector<64x128xf32>
    %90 = arith.addf %60, %89 : vector<64x128xf32>
    %c3 = arith.constant 3 : index
    %c0_42 = arith.constant 0 : index
    %91 = vector.load %arg3[%c3, %c0_42] : memref<8x256xf32, #tpu.memory_space<vmem>>, vector<1x256xf32>
    %c0_43 = arith.constant 0 : index
    %c3_44 = arith.constant 3 : index
    %92 = vector.load %arg4[%c0_43, %c3_44] : memref<64x8xf32, #tpu.memory_space<vmem>>, vector<64x1xf32>
    %93 = vector.broadcast %92 : vector<64x1xf32> to vector<64x256xf32>
    %94 = vector.broadcast %91 : vector<1x256xf32> to vector<64x256xf32>
    %95 = arith.addf %93, %94 : vector<64x256xf32>
    %cst_45 = arith.constant 0.000000e+00 : f32
    %96 = vector.broadcast %cst_45 : f32 to vector<64x256xf32>
    %97 = arith.cmpf ogt, %95, %96 : vector<64x256xf32>
    %cst_46 = arith.constant 2.000000e-01 : f32
    %98 = vector.broadcast %cst_46 : f32 to vector<64x256xf32>
    %99 = arith.mulf %98, %95 : vector<64x256xf32>
    %100 = arith.select %97, %95, %99 : vector<64x256xi1>, vector<64x256xf32>
    %cst_47 = arith.constant dense<0xFF800000> : vector<64xf32>
    %101 = vector.multi_reduction <maximumf>, %100, %cst_47 [1] : vector<64x256xf32> to vector<64xf32>
    %102 = vector.shape_cast %101 : vector<64xf32> to vector<64x1xf32>
    %103 = vector.broadcast %102 : vector<64x1xf32> to vector<64x256xf32>
    %104 = arith.subf %100, %103 : vector<64x256xf32>
    %105 = math.exp %104 : vector<64x256xf32>
    %c0_48 = arith.constant 0 : index
    %c0_49 = arith.constant 0 : index
    %106 = vector.load %arg1[%c0_48, %c0_49] : memref<64x256xi8, #tpu.memory_space<vmem>>, vector<64x256xi8>
    %107 = arith.sitofp %106 : vector<64x256xi8> to vector<64x256xf32>
    %108 = arith.mulf %105, %107 : vector<64x256xf32>
    %cst_50 = arith.constant dense<0.000000e+00> : vector<64xf32>
    %109 = vector.multi_reduction <add>, %108, %cst_50 [1] : vector<64x256xf32> to vector<64xf32>
    %110 = vector.shape_cast %109 : vector<64xf32> to vector<64x1xf32>
    %cst_51 = arith.constant 9.99999968E-21 : f32
    %111 = vector.broadcast %cst_51 : f32 to vector<64x1xf32>
    %112 = arith.maximumf %110, %111 : vector<64x1xf32>
    %113 = tpu.reciprocal %112 {approx = true} : vector<64x1xf32> -> vector<64x1xf32>
    %114 = arith.truncf %108 : vector<64x256xf32> to vector<64x256xbf16>
    %c3_52 = arith.constant 3 : index
    %c0_53 = arith.constant 0 : index
    %c0_54 = arith.constant 0 : index
    %115 = vector.load %arg2[%c3_52, %c0_53, %c0_54] : memref<8x256x128xbf16, #tpu.memory_space<vmem>>, vector<1x256x128xbf16>
    %116 = vector.shape_cast %115 : vector<1x256x128xbf16> to vector<256x128xbf16>
    %cst_55 = arith.constant dense<0.000000e+00> : vector<64x128xf32>
    %117 = tpu.matmul %114, %116, %cst_55 {dimension_numbers = #tpu.dot_dimension_numbers<[1], [0], [0], [1], [0, 0, 1, 1], [], []>} : vector<64x256xbf16>, vector<256x128xbf16>, vector<64x128xf32> -> vector<64x128xf32>
    %118 = vector.broadcast %113 : vector<64x1xf32> to vector<64x128xf32>
    %119 = arith.mulf %117, %118 : vector<64x128xf32>
    %120 = arith.addf %90, %119 : vector<64x128xf32>
    %c4 = arith.constant 4 : index
    %c0_56 = arith.constant 0 : index
    %121 = vector.load %arg3[%c4, %c0_56] : memref<8x256xf32, #tpu.memory_space<vmem>>, vector<1x256xf32>
    %c0_57 = arith.constant 0 : index
    %c4_58 = arith.constant 4 : index
    %122 = vector.load %arg4[%c0_57, %c4_58] : memref<64x8xf32, #tpu.memory_space<vmem>>, vector<64x1xf32>
    %123 = vector.broadcast %122 : vector<64x1xf32> to vector<64x256xf32>
    %124 = vector.broadcast %121 : vector<1x256xf32> to vector<64x256xf32>
    %125 = arith.addf %123, %124 : vector<64x256xf32>
    %cst_59 = arith.constant 0.000000e+00 : f32
    %126 = vector.broadcast %cst_59 : f32 to vector<64x256xf32>
    %127 = arith.cmpf ogt, %125, %126 : vector<64x256xf32>
    %cst_60 = arith.constant 2.000000e-01 : f32
    %128 = vector.broadcast %cst_60 : f32 to vector<64x256xf32>
    %129 = arith.mulf %128, %125 : vector<64x256xf32>
    %130 = arith.select %127, %125, %129 : vector<64x256xi1>, vector<64x256xf32>
    %cst_61 = arith.constant dense<0xFF800000> : vector<64xf32>
    %131 = vector.multi_reduction <maximumf>, %130, %cst_61 [1] : vector<64x256xf32> to vector<64xf32>
    %132 = vector.shape_cast %131 : vector<64xf32> to vector<64x1xf32>
    %133 = vector.broadcast %132 : vector<64x1xf32> to vector<64x256xf32>
    %134 = arith.subf %130, %133 : vector<64x256xf32>
    %135 = math.exp %134 : vector<64x256xf32>
    %c0_62 = arith.constant 0 : index
    %c0_63 = arith.constant 0 : index
    %136 = vector.load %arg1[%c0_62, %c0_63] : memref<64x256xi8, #tpu.memory_space<vmem>>, vector<64x256xi8>
    %137 = arith.sitofp %136 : vector<64x256xi8> to vector<64x256xf32>
    %138 = arith.mulf %135, %137 : vector<64x256xf32>
    %cst_64 = arith.constant dense<0.000000e+00> : vector<64xf32>
    %139 = vector.multi_reduction <add>, %138, %cst_64 [1] : vector<64x256xf32> to vector<64xf32>
    %140 = vector.shape_cast %139 : vector<64xf32> to vector<64x1xf32>
    %cst_65 = arith.constant 9.99999968E-21 : f32
    %141 = vector.broadcast %cst_65 : f32 to vector<64x1xf32>
    %142 = arith.maximumf %140, %141 : vector<64x1xf32>
    %143 = tpu.reciprocal %142 {approx = true} : vector<64x1xf32> -> vector<64x1xf32>
    %144 = arith.truncf %138 : vector<64x256xf32> to vector<64x256xbf16>
    %c4_66 = arith.constant 4 : index
    %c0_67 = arith.constant 0 : index
    %c0_68 = arith.constant 0 : index
    %145 = vector.load %arg2[%c4_66, %c0_67, %c0_68] : memref<8x256x128xbf16, #tpu.memory_space<vmem>>, vector<1x256x128xbf16>
    %146 = vector.shape_cast %145 : vector<1x256x128xbf16> to vector<256x128xbf16>
    %cst_69 = arith.constant dense<0.000000e+00> : vector<64x128xf32>
    %147 = tpu.matmul %144, %146, %cst_69 {dimension_numbers = #tpu.dot_dimension_numbers<[1], [0], [0], [1], [0, 0, 1, 1], [], []>} : vector<64x256xbf16>, vector<256x128xbf16>, vector<64x128xf32> -> vector<64x128xf32>
    %148 = vector.broadcast %143 : vector<64x1xf32> to vector<64x128xf32>
    %149 = arith.mulf %147, %148 : vector<64x128xf32>
    %150 = arith.addf %120, %149 : vector<64x128xf32>
    %c5 = arith.constant 5 : index
    %c0_70 = arith.constant 0 : index
    %151 = vector.load %arg3[%c5, %c0_70] : memref<8x256xf32, #tpu.memory_space<vmem>>, vector<1x256xf32>
    %c0_71 = arith.constant 0 : index
    %c5_72 = arith.constant 5 : index
    %152 = vector.load %arg4[%c0_71, %c5_72] : memref<64x8xf32, #tpu.memory_space<vmem>>, vector<64x1xf32>
    %153 = vector.broadcast %152 : vector<64x1xf32> to vector<64x256xf32>
    %154 = vector.broadcast %151 : vector<1x256xf32> to vector<64x256xf32>
    %155 = arith.addf %153, %154 : vector<64x256xf32>
    %cst_73 = arith.constant 0.000000e+00 : f32
    %156 = vector.broadcast %cst_73 : f32 to vector<64x256xf32>
    %157 = arith.cmpf ogt, %155, %156 : vector<64x256xf32>
    %cst_74 = arith.constant 2.000000e-01 : f32
    %158 = vector.broadcast %cst_74 : f32 to vector<64x256xf32>
    %159 = arith.mulf %158, %155 : vector<64x256xf32>
    %160 = arith.select %157, %155, %159 : vector<64x256xi1>, vector<64x256xf32>
    %cst_75 = arith.constant dense<0xFF800000> : vector<64xf32>
    %161 = vector.multi_reduction <maximumf>, %160, %cst_75 [1] : vector<64x256xf32> to vector<64xf32>
    %162 = vector.shape_cast %161 : vector<64xf32> to vector<64x1xf32>
    %163 = vector.broadcast %162 : vector<64x1xf32> to vector<64x256xf32>
    %164 = arith.subf %160, %163 : vector<64x256xf32>
    %165 = math.exp %164 : vector<64x256xf32>
    %c0_76 = arith.constant 0 : index
    %c0_77 = arith.constant 0 : index
    %166 = vector.load %arg1[%c0_76, %c0_77] : memref<64x256xi8, #tpu.memory_space<vmem>>, vector<64x256xi8>
    %167 = arith.sitofp %166 : vector<64x256xi8> to vector<64x256xf32>
    %168 = arith.mulf %165, %167 : vector<64x256xf32>
    %cst_78 = arith.constant dense<0.000000e+00> : vector<64xf32>
    %169 = vector.multi_reduction <add>, %168, %cst_78 [1] : vector<64x256xf32> to vector<64xf32>
    %170 = vector.shape_cast %169 : vector<64xf32> to vector<64x1xf32>
    %cst_79 = arith.constant 9.99999968E-21 : f32
    %171 = vector.broadcast %cst_79 : f32 to vector<64x1xf32>
    %172 = arith.maximumf %170, %171 : vector<64x1xf32>
    %173 = tpu.reciprocal %172 {approx = true} : vector<64x1xf32> -> vector<64x1xf32>
    %174 = arith.truncf %168 : vector<64x256xf32> to vector<64x256xbf16>
    %c5_80 = arith.constant 5 : index
    %c0_81 = arith.constant 0 : index
    %c0_82 = arith.constant 0 : index
    %175 = vector.load %arg2[%c5_80, %c0_81, %c0_82] : memref<8x256x128xbf16, #tpu.memory_space<vmem>>, vector<1x256x128xbf16>
    %176 = vector.shape_cast %175 : vector<1x256x128xbf16> to vector<256x128xbf16>
    %cst_83 = arith.constant dense<0.000000e+00> : vector<64x128xf32>
    %177 = tpu.matmul %174, %176, %cst_83 {dimension_numbers = #tpu.dot_dimension_numbers<[1], [0], [0], [1], [0, 0, 1, 1], [], []>} : vector<64x256xbf16>, vector<256x128xbf16>, vector<64x128xf32> -> vector<64x128xf32>
    %178 = vector.broadcast %173 : vector<64x1xf32> to vector<64x128xf32>
    %179 = arith.mulf %177, %178 : vector<64x128xf32>
    %180 = arith.addf %150, %179 : vector<64x128xf32>
    %c6 = arith.constant 6 : index
    %c0_84 = arith.constant 0 : index
    %181 = vector.load %arg3[%c6, %c0_84] : memref<8x256xf32, #tpu.memory_space<vmem>>, vector<1x256xf32>
    %c0_85 = arith.constant 0 : index
    %c6_86 = arith.constant 6 : index
    %182 = vector.load %arg4[%c0_85, %c6_86] : memref<64x8xf32, #tpu.memory_space<vmem>>, vector<64x1xf32>
    %183 = vector.broadcast %182 : vector<64x1xf32> to vector<64x256xf32>
    %184 = vector.broadcast %181 : vector<1x256xf32> to vector<64x256xf32>
    %185 = arith.addf %183, %184 : vector<64x256xf32>
    %cst_87 = arith.constant 0.000000e+00 : f32
    %186 = vector.broadcast %cst_87 : f32 to vector<64x256xf32>
    %187 = arith.cmpf ogt, %185, %186 : vector<64x256xf32>
    %cst_88 = arith.constant 2.000000e-01 : f32
    %188 = vector.broadcast %cst_88 : f32 to vector<64x256xf32>
    %189 = arith.mulf %188, %185 : vector<64x256xf32>
    %190 = arith.select %187, %185, %189 : vector<64x256xi1>, vector<64x256xf32>
    %cst_89 = arith.constant dense<0xFF800000> : vector<64xf32>
    %191 = vector.multi_reduction <maximumf>, %190, %cst_89 [1] : vector<64x256xf32> to vector<64xf32>
    %192 = vector.shape_cast %191 : vector<64xf32> to vector<64x1xf32>
    %193 = vector.broadcast %192 : vector<64x1xf32> to vector<64x256xf32>
    %194 = arith.subf %190, %193 : vector<64x256xf32>
    %195 = math.exp %194 : vector<64x256xf32>
    %c0_90 = arith.constant 0 : index
    %c0_91 = arith.constant 0 : index
    %196 = vector.load %arg1[%c0_90, %c0_91] : memref<64x256xi8, #tpu.memory_space<vmem>>, vector<64x256xi8>
    %197 = arith.sitofp %196 : vector<64x256xi8> to vector<64x256xf32>
    %198 = arith.mulf %195, %197 : vector<64x256xf32>
    %cst_92 = arith.constant dense<0.000000e+00> : vector<64xf32>
    %199 = vector.multi_reduction <add>, %198, %cst_92 [1] : vector<64x256xf32> to vector<64xf32>
    %200 = vector.shape_cast %199 : vector<64xf32> to vector<64x1xf32>
    %cst_93 = arith.constant 9.99999968E-21 : f32
    %201 = vector.broadcast %cst_93 : f32 to vector<64x1xf32>
    %202 = arith.maximumf %200, %201 : vector<64x1xf32>
    %203 = tpu.reciprocal %202 {approx = true} : vector<64x1xf32> -> vector<64x1xf32>
    %204 = arith.truncf %198 : vector<64x256xf32> to vector<64x256xbf16>
    %c6_94 = arith.constant 6 : index
    %c0_95 = arith.constant 0 : index
    %c0_96 = arith.constant 0 : index
    %205 = vector.load %arg2[%c6_94, %c0_95, %c0_96] : memref<8x256x128xbf16, #tpu.memory_space<vmem>>, vector<1x256x128xbf16>
    %206 = vector.shape_cast %205 : vector<1x256x128xbf16> to vector<256x128xbf16>
    %cst_97 = arith.constant dense<0.000000e+00> : vector<64x128xf32>
    %207 = tpu.matmul %204, %206, %cst_97 {dimension_numbers = #tpu.dot_dimension_numbers<[1], [0], [0], [1], [0, 0, 1, 1], [], []>} : vector<64x256xbf16>, vector<256x128xbf16>, vector<64x128xf32> -> vector<64x128xf32>
    %208 = vector.broadcast %203 : vector<64x1xf32> to vector<64x128xf32>
    %209 = arith.mulf %207, %208 : vector<64x128xf32>
    %210 = arith.addf %180, %209 : vector<64x128xf32>
    %c7 = arith.constant 7 : index
    %c0_98 = arith.constant 0 : index
    %211 = vector.load %arg3[%c7, %c0_98] : memref<8x256xf32, #tpu.memory_space<vmem>>, vector<1x256xf32>
    %c0_99 = arith.constant 0 : index
    %c7_100 = arith.constant 7 : index
    %212 = vector.load %arg4[%c0_99, %c7_100] : memref<64x8xf32, #tpu.memory_space<vmem>>, vector<64x1xf32>
    %213 = vector.broadcast %212 : vector<64x1xf32> to vector<64x256xf32>
    %214 = vector.broadcast %211 : vector<1x256xf32> to vector<64x256xf32>
    %215 = arith.addf %213, %214 : vector<64x256xf32>
    %cst_101 = arith.constant 0.000000e+00 : f32
    %216 = vector.broadcast %cst_101 : f32 to vector<64x256xf32>
    %217 = arith.cmpf ogt, %215, %216 : vector<64x256xf32>
    %cst_102 = arith.constant 2.000000e-01 : f32
    %218 = vector.broadcast %cst_102 : f32 to vector<64x256xf32>
    %219 = arith.mulf %218, %215 : vector<64x256xf32>
    %220 = arith.select %217, %215, %219 : vector<64x256xi1>, vector<64x256xf32>
    %cst_103 = arith.constant dense<0xFF800000> : vector<64xf32>
    %221 = vector.multi_reduction <maximumf>, %220, %cst_103 [1] : vector<64x256xf32> to vector<64xf32>
    %222 = vector.shape_cast %221 : vector<64xf32> to vector<64x1xf32>
    %223 = vector.broadcast %222 : vector<64x1xf32> to vector<64x256xf32>
    %224 = arith.subf %220, %223 : vector<64x256xf32>
    %225 = math.exp %224 : vector<64x256xf32>
    %c0_104 = arith.constant 0 : index
    %c0_105 = arith.constant 0 : index
    %226 = vector.load %arg1[%c0_104, %c0_105] : memref<64x256xi8, #tpu.memory_space<vmem>>, vector<64x256xi8>
    %227 = arith.sitofp %226 : vector<64x256xi8> to vector<64x256xf32>
    %228 = arith.mulf %225, %227 : vector<64x256xf32>
    %cst_106 = arith.constant dense<0.000000e+00> : vector<64xf32>
    %229 = vector.multi_reduction <add>, %228, %cst_106 [1] : vector<64x256xf32> to vector<64xf32>
    %230 = vector.shape_cast %229 : vector<64xf32> to vector<64x1xf32>
    %cst_107 = arith.constant 9.99999968E-21 : f32
    %231 = vector.broadcast %cst_107 : f32 to vector<64x1xf32>
    %232 = arith.maximumf %230, %231 : vector<64x1xf32>
    %233 = tpu.reciprocal %232 {approx = true} : vector<64x1xf32> -> vector<64x1xf32>
    %234 = arith.truncf %228 : vector<64x256xf32> to vector<64x256xbf16>
    %c7_108 = arith.constant 7 : index
    %c0_109 = arith.constant 0 : index
    %c0_110 = arith.constant 0 : index
    %235 = vector.load %arg2[%c7_108, %c0_109, %c0_110] : memref<8x256x128xbf16, #tpu.memory_space<vmem>>, vector<1x256x128xbf16>
    %236 = vector.shape_cast %235 : vector<1x256x128xbf16> to vector<256x128xbf16>
    %cst_111 = arith.constant dense<0.000000e+00> : vector<64x128xf32>
    %237 = tpu.matmul %234, %236, %cst_111 {dimension_numbers = #tpu.dot_dimension_numbers<[1], [0], [0], [1], [0, 0, 1, 1], [], []>} : vector<64x256xbf16>, vector<256x128xbf16>, vector<64x128xf32> -> vector<64x128xf32>
    %238 = vector.broadcast %233 : vector<64x1xf32> to vector<64x128xf32>
    %239 = arith.mulf %237, %238 : vector<64x128xf32>
    %240 = arith.addf %210, %239 : vector<64x128xf32>
    %c0_112 = arith.constant 0 : index
    %c0_113 = arith.constant 0 : index
    %241 = vector.load %arg5[%c0_112, %c0_113] : memref<1x128xf32, #tpu.memory_space<vmem>>, vector<1x128xf32>
    %242 = vector.broadcast %241 : vector<1x128xf32> to vector<64x128xf32>
    %243 = arith.addf %240, %242 : vector<64x128xf32>
    %cst_114 = arith.constant 0.000000e+00 : f32
    %244 = vector.broadcast %cst_114 : f32 to vector<64x128xf32>
    %245 = arith.maximumf %243, %244 : vector<64x128xf32>
    %c0_115 = arith.constant 0 : index
    %c0_116 = arith.constant 0 : index
    %246 = vector.load %arg6[%c0_115, %c0_116] : memref<64x128xf32, #tpu.memory_space<vmem>>, vector<64x128xf32>
    tpu.vector_store %arg6[%c0_115, %c0_116], %245 {strides = array<i32>} : memref<64x128xf32, #tpu.memory_space<vmem>>, vector<64x128xf32>,
    return
  }
  func.func @transform_0(%arg0: i32) -> (i32, i32) {
    %c0_i32 = arith.constant 0 : i32
    %c0_i32_0 = arith.constant 0 : i32
    return %arg0, %c0_i32 : i32, i32
  }
  func.func @transform_1(%arg0: i32) -> (i32, i32, i32) {
    %c0_i32 = arith.constant 0 : i32
    %c0_i32_0 = arith.constant 0 : i32
    %c0_i32_1 = arith.constant 0 : i32
    %c0_i32_2 = arith.constant 0 : i32
    return %c0_i32, %c0_i32_0, %c0_i32_1 : i32, i32, i32
  }
  func.func @transform_2(%arg0: i32) -> (i32, i32) {
    %c0_i32 = arith.constant 0 : i32
    %c0_i32_0 = arith.constant 0 : i32
    %c0_i32_1 = arith.constant 0 : i32
    return %c0_i32, %c0_i32_0 : i32, i32
  }
  func.func @transform_3(%arg0: i32) -> (i32, i32) {
    %c0_i32 = arith.constant 0 : i32
    %c0_i32_0 = arith.constant 0 : i32
    return %arg0, %c0_i32 : i32, i32
  }
  func.func @transform_4(%arg0: i32) -> (i32, i32) {
    %c0_i32 = arith.constant 0 : i32
    %c0_i32_0 = arith.constant 0 : i32
    %c0_i32_1 = arith.constant 0 : i32
    return %c0_i32, %c0_i32_0 : i32, i32
  }
  func.func @transform_5(%arg0: i32) -> (i32, i32) {
    %c0_i32 = arith.constant 0 : i32
    %c0_i32_0 = arith.constant 0 : i32
    return %arg0, %c0_i32 : i32, i32
  }
}

module attributes {stable_mosaic.version = 11 : i64} {
  func.func @_proj_kernel(%arg0: i32, %arg1: memref<256x64xbf16, #tpu.memory_space<vmem>>, %arg2: memref<64x128xbf16, #tpu.memory_space<vmem>>, %arg3: memref<256x128xf32, #tpu.memory_space<vmem>>) attributes {dimension_semantics = [#tpu.dimension_semantics<parallel>], iteration_bounds = array<i64: 1>, scalar_prefetch = 0 : i64, scratch_operands = 0 : i64, tpu.core_type = #tpu.core_type<tc>, window_params = [{transform_indices = @transform_0, window_bounds = array<i64: 256, 64>}, {pipeline_mode = #tpu.pipeline_mode<synchronous>, transform_indices = @transform_1, window_bounds = array<i64: 64, 128>}, {transform_indices = @transform_2, window_bounds = array<i64: 256, 128>}]} {
    %c0 = arith.constant 0 : index
    %c0_0 = arith.constant 0 : index
    %0 = vector.load %arg1[%c0, %c0_0] : memref<256x64xbf16, #tpu.memory_space<vmem>>, vector<256x64xbf16>
    %c0_1 = arith.constant 0 : index
    %c0_2 = arith.constant 0 : index
    %1 = vector.load %arg2[%c0_1, %c0_2] : memref<64x128xbf16, #tpu.memory_space<vmem>>, vector<64x128xbf16>
    %cst = arith.constant dense<0.000000e+00> : vector<256x128xf32>
    %2 = tpu.matmul %0, %1, %cst {dimension_numbers = #tpu.dot_dimension_numbers<[1], [0], [0], [1], [0, 0, 1, 1], [], []>} : vector<256x64xbf16>, vector<64x128xbf16>, vector<256x128xf32> -> vector<256x128xf32>
    %c0_3 = arith.constant 0 : index
    %c0_4 = arith.constant 0 : index
    %3 = vector.load %arg3[%c0_3, %c0_4] : memref<256x128xf32, #tpu.memory_space<vmem>>, vector<256x128xf32>
    tpu.vector_store %arg3[%c0_3, %c0_4], %2 {strides = array<i32>} : memref<256x128xf32, #tpu.memory_space<vmem>>, vector<256x128xf32>,
    return
  }
  func.func @transform_0(%arg0: i32) -> (i32, i32) {
    %c0_i32 = arith.constant 0 : i32
    %c0_i32_0 = arith.constant 0 : i32
    return %arg0, %c0_i32 : i32, i32
  }
  func.func @transform_1(%arg0: i32) -> (i32, i32) {
    %c0_i32 = arith.constant 0 : i32
    %c0_i32_0 = arith.constant 0 : i32
    %c0_i32_1 = arith.constant 0 : i32
    return %c0_i32, %c0_i32_0 : i32, i32
  }
  func.func @transform_2(%arg0: i32) -> (i32, i32) {
    %c0_i32 = arith.constant 0 : i32
    %c0_i32_0 = arith.constant 0 : i32
    return %arg0, %c0_i32 : i32, i32
  }
}

module attributes {stable_mosaic.version = 11 : i64} {
  func.func @_gat_attn_kernel(%arg0: i32, %arg1: memref<64x256xi8, #tpu.memory_space<vmem>>, %arg2: memref<1x256x128xbf16, #tpu.memory_space<vmem>>, %arg3: memref<1x256xf32, #tpu.memory_space<vmem>>, %arg4: memref<64x1xf32, #tpu.memory_space<vmem>>, %arg5: memref<1x128xf32, #tpu.memory_space<vmem>>, %arg6: memref<64x128xf32, #tpu.memory_space<vmem>>) attributes {dimension_semantics = [#tpu.dimension_semantics<parallel>], iteration_bounds = array<i64: 4>, scalar_prefetch = 0 : i64, scratch_operands = 0 : i64, tpu.core_type = #tpu.core_type<tc>, window_params = [{transform_indices = @transform_0, window_bounds = array<i64: 64, 256>}, {pipeline_mode = #tpu.pipeline_mode<synchronous>, transform_indices = @transform_1, window_bounds = array<i64: 1, 256, 128>}, {pipeline_mode = #tpu.pipeline_mode<synchronous>, transform_indices = @transform_2, window_bounds = array<i64: 1, 256>}, {transform_indices = @transform_3, window_bounds = array<i64: 64, 1>}, {pipeline_mode = #tpu.pipeline_mode<synchronous>, transform_indices = @transform_4, window_bounds = array<i64: 1, 128>}, {transform_indices = @transform_5, window_bounds = array<i64: 64, 128>}]} {
    %cst = arith.constant 0.000000e+00 : f32
    %0 = vector.broadcast %cst : f32 to vector<64x128xf32>
    %c0 = arith.constant 0 : index
    %c0_0 = arith.constant 0 : index
    %1 = vector.load %arg3[%c0, %c0_0] : memref<1x256xf32, #tpu.memory_space<vmem>>, vector<1x256xf32>
    %c0_1 = arith.constant 0 : index
    %c0_2 = arith.constant 0 : index
    %2 = vector.load %arg4[%c0_1, %c0_2] : memref<64x1xf32, #tpu.memory_space<vmem>>, vector<64x1xf32>
    %3 = vector.broadcast %2 : vector<64x1xf32> to vector<64x256xf32>
    %4 = vector.broadcast %1 : vector<1x256xf32> to vector<64x256xf32>
    %5 = arith.addf %3, %4 : vector<64x256xf32>
    %cst_3 = arith.constant 0.000000e+00 : f32
    %6 = vector.broadcast %cst_3 : f32 to vector<64x256xf32>
    %7 = arith.cmpf ogt, %5, %6 : vector<64x256xf32>
    %cst_4 = arith.constant 2.000000e-01 : f32
    %8 = vector.broadcast %cst_4 : f32 to vector<64x256xf32>
    %9 = arith.mulf %8, %5 : vector<64x256xf32>
    %10 = arith.select %7, %5, %9 : vector<64x256xi1>, vector<64x256xf32>
    %cst_5 = arith.constant dense<0xFF800000> : vector<64xf32>
    %11 = vector.multi_reduction <maximumf>, %10, %cst_5 [1] : vector<64x256xf32> to vector<64xf32>
    %12 = vector.shape_cast %11 : vector<64xf32> to vector<64x1xf32>
    %13 = vector.broadcast %12 : vector<64x1xf32> to vector<64x256xf32>
    %14 = arith.subf %10, %13 : vector<64x256xf32>
    %15 = math.exp %14 : vector<64x256xf32>
    %c0_6 = arith.constant 0 : index
    %c0_7 = arith.constant 0 : index
    %16 = vector.load %arg1[%c0_6, %c0_7] : memref<64x256xi8, #tpu.memory_space<vmem>>, vector<64x256xi8>
    %17 = arith.sitofp %16 : vector<64x256xi8> to vector<64x256xf32>
    %18 = arith.mulf %15, %17 : vector<64x256xf32>
    %cst_8 = arith.constant dense<0.000000e+00> : vector<64xf32>
    %19 = vector.multi_reduction <add>, %18, %cst_8 [1] : vector<64x256xf32> to vector<64xf32>
    %20 = vector.shape_cast %19 : vector<64xf32> to vector<64x1xf32>
    %cst_9 = arith.constant 9.99999968E-21 : f32
    %21 = vector.broadcast %cst_9 : f32 to vector<64x1xf32>
    %22 = arith.maximumf %20, %21 : vector<64x1xf32>
    %23 = tpu.reciprocal %22 {approx = true} : vector<64x1xf32> -> vector<64x1xf32>
    %24 = arith.truncf %18 : vector<64x256xf32> to vector<64x256xbf16>
    %c0_10 = arith.constant 0 : index
    %c0_11 = arith.constant 0 : index
    %c0_12 = arith.constant 0 : index
    %25 = vector.load %arg2[%c0_10, %c0_11, %c0_12] : memref<1x256x128xbf16, #tpu.memory_space<vmem>>, vector<1x256x128xbf16>
    %26 = vector.shape_cast %25 : vector<1x256x128xbf16> to vector<256x128xbf16>
    %cst_13 = arith.constant dense<0.000000e+00> : vector<64x128xf32>
    %27 = tpu.matmul %24, %26, %cst_13 {dimension_numbers = #tpu.dot_dimension_numbers<[1], [0], [0], [1], [0, 0, 1, 1], [], []>} : vector<64x256xbf16>, vector<256x128xbf16>, vector<64x128xf32> -> vector<64x128xf32>
    %28 = vector.broadcast %23 : vector<64x1xf32> to vector<64x128xf32>
    %29 = arith.mulf %27, %28 : vector<64x128xf32>
    %30 = arith.addf %0, %29 : vector<64x128xf32>
    %cst_14 = arith.constant 1.000000e+00 : f32
    %31 = vector.broadcast %cst_14 : f32 to vector<64x128xf32>
    %32 = arith.mulf %30, %31 : vector<64x128xf32>
    %c0_15 = arith.constant 0 : index
    %c0_16 = arith.constant 0 : index
    %33 = vector.load %arg5[%c0_15, %c0_16] : memref<1x128xf32, #tpu.memory_space<vmem>>, vector<1x128xf32>
    %34 = vector.broadcast %33 : vector<1x128xf32> to vector<64x128xf32>
    %35 = arith.addf %32, %34 : vector<64x128xf32>
    %36 = tpu.iota {dimensions = array<i32: 1>} : vector<1x128xi32>
    %c4_i32 = arith.constant 4 : i32
    %37 = vector.broadcast %c4_i32 : i32 to vector<1x128xi32>
    %38 = arith.cmpi slt, %36, %37 : vector<1x128xi32>
    %cst_17 = arith.constant -1.000000e+30 : f32
    %39 = vector.shape_cast %38 : vector<1x128xi1> to vector<1x128xi1>
    %40 = vector.broadcast %39 : vector<1x128xi1> to vector<64x128xi1>
    %41 = vector.broadcast %cst_17 : f32 to vector<64x128xf32>
    %42 = arith.select %40, %35, %41 : vector<64x128xi1>, vector<64x128xf32>
    %cst_18 = arith.constant dense<0xFF800000> : vector<64xf32>
    %43 = vector.multi_reduction <maximumf>, %42, %cst_18 [1] : vector<64x128xf32> to vector<64xf32>
    %44 = vector.shape_cast %43 : vector<64xf32> to vector<64x1xf32>
    %45 = vector.broadcast %44 : vector<64x1xf32> to vector<64x128xf32>
    %46 = arith.subf %42, %45 : vector<64x128xf32>
    %47 = math.exp %46 : vector<64x128xf32>
    %cst_19 = arith.constant dense<0.000000e+00> : vector<64xf32>
    %48 = vector.multi_reduction <add>, %47, %cst_19 [1] : vector<64x128xf32> to vector<64xf32>
    %49 = vector.shape_cast %48 : vector<64xf32> to vector<64x1xf32>
    %50 = math.log %49 : vector<64x1xf32>
    %51 = arith.addf %50, %44 : vector<64x1xf32>
    %52 = vector.broadcast %51 : vector<64x1xf32> to vector<64x128xf32>
    %53 = arith.subf %35, %52 : vector<64x128xf32>
    %cst_20 = arith.constant 0.000000e+00 : f32
    %54 = vector.shape_cast %38 : vector<1x128xi1> to vector<1x128xi1>
    %55 = vector.broadcast %54 : vector<1x128xi1> to vector<64x128xi1>
    %56 = vector.broadcast %cst_20 : f32 to vector<64x128xf32>
    %57 = arith.select %55, %53, %56 : vector<64x128xi1>, vector<64x128xf32>
    %c0_21 = arith.constant 0 : index
    %c0_22 = arith.constant 0 : index
    %58 = vector.load %arg6[%c0_21, %c0_22] : memref<64x128xf32, #tpu.memory_space<vmem>>, vector<64x128xf32>
    tpu.vector_store %arg6[%c0_21, %c0_22], %57 {strides = array<i32>} : memref<64x128xf32, #tpu.memory_space<vmem>>, vector<64x128xf32>,
    return
  }
  func.func @transform_0(%arg0: i32) -> (i32, i32) {
    %c0_i32 = arith.constant 0 : i32
    %c0_i32_0 = arith.constant 0 : i32
    return %arg0, %c0_i32 : i32, i32
  }
  func.func @transform_1(%arg0: i32) -> (i32, i32, i32) {
    %c0_i32 = arith.constant 0 : i32
    %c0_i32_0 = arith.constant 0 : i32
    %c0_i32_1 = arith.constant 0 : i32
    %c0_i32_2 = arith.constant 0 : i32
    return %c0_i32, %c0_i32_0, %c0_i32_1 : i32, i32, i32
  }
  func.func @transform_2(%arg0: i32) -> (i32, i32) {
    %c0_i32 = arith.constant 0 : i32
    %c0_i32_0 = arith.constant 0 : i32
    %c0_i32_1 = arith.constant 0 : i32
    return %c0_i32, %c0_i32_0 : i32, i32
  }
  func.func @transform_3(%arg0: i32) -> (i32, i32) {
    %c0_i32 = arith.constant 0 : i32
    %c0_i32_0 = arith.constant 0 : i32
    return %arg0, %c0_i32 : i32, i32
  }
  func.func @transform_4(%arg0: i32) -> (i32, i32) {
    %c0_i32 = arith.constant 0 : i32
    %c0_i32_0 = arith.constant 0 : i32
    %c0_i32_1 = arith.constant 0 : i32
    return %c0_i32, %c0_i32_0 : i32, i32
  }
  func.func @transform_5(%arg0: i32) -> (i32, i32) {
    %c0_i32 = arith.constant 0 : i32
    %c0_i32_0 = arith.constant 0 : i32
    return %arg0, %c0_i32 : i32, i32
  }
}

</mosaic_0001>

<bundles_post_ra>
// kernel: gat_forward.4
= control target key start
LH: loop header
LB: loop body
LE: loop exit
PB: predicated region body
PF: predicated region fallthrough
CT: control target
= control target key end

     0   :  { %vm132_vm0 = vcmask 130048   ;;  %s588_s1 = inlined_call_operand.vmem [shape: bf16[16,128], index: 1, kind: input, shape index: {}]   ;;  %s589_s0 = inlined_call_operand.vmem [shape: bf16[256,16], index: 0, kind: input, shape index: {}]   ;;  %s590_s2 = inlined_call_operand.vmem [shape: f32[256,128], index: 2, kind: output, shape index: {}]  }
   0x1   :  { %v406_v0 = vld [vmem:[%s588_s1] sm:$0xff]  ;;  %v391_v5 = vld [vmem:[%s589_s0 + $0x8] sm:$0xff]  ;;  %v392_v9 = vld [vmem:[%s589_s0 + $0x10] sm:$0xff] }
   0x2   :  { %v390_v1 = vld [vmem:[%s589_s0] sm:$0xff]  ;;  %188 = vmatpush.bf16.msra.mxu0 %v406_v0  ;;  %407 = vmatpush.bf16.msra.mxu1 %v406_v0  ;;  %v395_v6 = vld [vmem:[%s589_s0 + $0x28] sm:$0xff]  ;;  %v396_v10 = vld [vmem:[%s589_s0 + $0x30] sm:$0xff] }
   0x3   :  { %v394_v2 = vld [vmem:[%s589_s0 + $0x20] sm:$0xff]  ;;  %408 = vmatpush.bf16.msra.mxu2 %v406_v0  ;;  %409 = vmatpush.bf16.msra.mxu3 %v406_v0  ;;  %v399_v7 = vld [vmem:[%s589_s0 + $0x48] sm:$0xff]  ;;  %v400_v11 = vld [vmem:[%s589_s0 + $0x50] sm:$0xff] }
   0x4   :  { %v398_v3 = vld [vmem:[%s589_s0 + $0x40] sm:$0xff]  ;;  %v403_v8 = vld [vmem:[%s589_s0 + $0x68] sm:$0xff]  ;;  %v404_v12 = vld [vmem:[%s589_s0 + $0x70] sm:$0xff] }
   0x5   :  { %v402_v4 = vld [vmem:[%s589_s0 + $0x60] sm:$0xff]  ;;  %374 = vmatmul.msk.bf16.vlgmr.msra.gmra.mxu0 %vm132_vm0, %v390_v1  ;;  %378 = vmatmul.msk.bf16.vlgmr.msra.gmra.mxu1 %vm132_vm0, %v394_v2  ;;  %v393_v13 = vld [vmem:[%s589_s0 + $0x18] sm:$0xff] }
   0x6   :  { %382 = vmatmul.msk.bf16.vlgmr.msra.gmra.mxu2 %vm132_vm0, %v398_v3  ;;  %386 = vmatmul.msk.bf16.vlgmr.msra.gmra.mxu3 %vm132_vm0, %v402_v4  ;;  %v397_v14 = vld [vmem:[%s589_s0 + $0x38] sm:$0xff] }
   0x7   :  { %v401_v15 = vld [vmem:[%s589_s0 + $0x58] sm:$0xff] }
   0x8   :  { %v405_v16 = vld [vmem:[%s589_s0 + $0x78] sm:$0xff] }
  0x15   :  { %375 = vmatmul.msk.bf16.gmra.mxu0 %vm132_vm0, %v391_v5  ;;  %379 = vmatmul.msk.bf16.gmra.mxu1 %vm132_vm0, %v395_v6 }
  0x16   :  { %383 = vmatmul.msk.bf16.gmra.mxu2 %vm132_vm0, %v399_v7  ;;  %387 = vmatmul.msk.bf16.gmra.mxu3 %vm132_vm0, %v403_v8 }
  0x25   :  { %376 = vmatmul.msk.bf16.gmra.mxu0 %vm132_vm0, %v392_v9  ;;  %380 = vmatmul.msk.bf16.gmra.mxu1 %vm132_vm0, %v396_v10 }
  0x26   :  { %384 = vmatmul.msk.bf16.gmra.mxu2 %vm132_vm0, %v400_v11  ;;  %388 = vmatmul.msk.bf16.gmra.mxu3 %vm132_vm0, %v404_v12 }
  0x35   :  { %377 = vmatmul.msk.bf16.gmra.mxu0 %vm132_vm0, %v393_v13  ;;  %381 = vmatmul.msk.bf16.gmra.mxu1 %vm132_vm0, %v397_v14 }
  0x36   :  { %385 = vmatmul.msk.bf16.gmra.mxu2 %vm132_vm0, %v401_v15  ;;  %389 = vmatmul.msk.bf16.gmra.mxu3 %vm132_vm0, %v405_v16 }
  0x82   :  { %v190_v17 = vpop.f32.mrf.mxu0  ;;  %v210_v18 = vpop.f32.mrf.mxu1 }
  0x83   :  { %270 = vst [vmem:[%s590_s2] sm:$0xff] %v190_v17 }
  0x84   :  { %278 = vst [vmem:[%s590_s2 + $0x40] sm:$0xff] %v210_v18 }
  0x89   :  { %v230_v19 = vpop.f32.mrf.mxu2  ;;  %v250_v20 = vpop.f32.mrf.mxu3 }
  0x8a   :  { %286 = vst [vmem:[%s590_s2 + $0x80] sm:$0xff] %v230_v19  ;;  %v192_v21 = vpop.f32.mrf.mxu0  ;;  %v212_v22 = vpop.f32.mrf.mxu1 }
  0x8b   :  { %294 = vst [vmem:[%s590_s2 + $0xc0] sm:$0xff] %v250_v20 }
  0x8c   :  { %271 = vst [vmem:[%s590_s2 + $0x8] sm:$0xff] %v192_v21 }
  0x8d   :  { %279 = vst [vmem:[%s590_s2 + $0x48] sm:$0xff] %v212_v22 }
  0x91   :  { %v232_v23 = vpop.f32.mrf.mxu2  ;;  %v252_v24 = vpop.f32.mrf.mxu3 }
  0x92   :  { %287 = vst [vmem:[%s590_s2 + $0x88] sm:$0xff] %v232_v23  ;;  %v195_v25 = vpop.f32.mrf.mxu0  ;;  %v215_v26 = vpop.f32.mrf.mxu1 }
  0x93   :  { %295 = vst [vmem:[%s590_s2 + $0xc8] sm:$0xff] %v252_v24 }
  0x94   :  { %272 = vst [vmem:[%s590_s2 + $0x10] sm:$0xff] %v195_v25 }
  0x95   :  { %280 = vst [vmem:[%s590_s2 + $0x50] sm:$0xff] %v215_v26 }
  0x99   :  { %v235_v27 = vpop.f32.mrf.mxu2  ;;  %v255_v28 = vpop.f32.mrf.mxu3 }
  0x9a   :  { %288 = vst [vmem:[%s590_s2 + $0x90] sm:$0xff] %v235_v27  ;;  %v197_v29 = vpop.f32.mrf.mxu0  ;;  %v217_v30 = vpop.f32.mrf.mxu1 }
  0x9b   :  { %296 = vst [vmem:[%s590_s2 + $0xd0] sm:$0xff] %v255_v28 }
  0x9c   :  { %273 = vst [vmem:[%s590_s2 + $0x18] sm:$0xff] %v197_v29 }
  0x9d   :  { %281 = vst [vmem:[%s590_s2 + $0x58] sm:$0xff] %v217_v30 }
  0xa1   :  { %v237_v31 = vpop.f32.mrf.mxu2  ;;  %v257_v32 = vpop.f32.mrf.mxu3 }
  0xa2   :  { %289 = vst [vmem:[%s590_s2 + $0x98] sm:$0xff] %v237_v31  ;;  %v200_v33 = vpop.f32.mrf.mxu0  ;;  %v220_v34 = vpop.f32.mrf.mxu1 }
  0xa3   :  { %297 = vst [vmem:[%s590_s2 + $0xd8] sm:$0xff] %v257_v32 }
  0xa4   :  { %274 = vst [vmem:[%s590_s2 + $0x20] sm:$0xff] %v200_v33 }
  0xa5   :  { %282 = vst [vmem:[%s590_s2 + $0x60] sm:$0xff] %v220_v34 }
  0xa9   :  { %v240_v35 = vpop.f32.mrf.mxu2  ;;  %v260_v36 = vpop.f32.mrf.mxu3 }
  0xaa   :  { %290 = vst [vmem:[%s590_s2 + $0xa0] sm:$0xff] %v240_v35  ;;  %v202_v37 = vpop.f32.mrf.mxu0  ;;  %v222_v38 = vpop.f32.mrf.mxu1 }
  0xab   :  { %298 = vst [vmem:[%s590_s2 + $0xe0] sm:$0xff] %v260_v36 }
  0xac   :  { %275 = vst [vmem:[%s590_s2 + $0x28] sm:$0xff] %v202_v37 }
  0xad   :  { %283 = vst [vmem:[%s590_s2 + $0x68] sm:$0xff] %v222_v38 }
  0xb1   :  { %v242_v39 = vpop.f32.mrf.mxu2  ;;  %v262_v40 = vpop.f32.mrf.mxu3 }
  0xb2   :  { %291 = vst [vmem:[%s590_s2 + $0xa8] sm:$0xff] %v242_v39  ;;  %v205_v41 = vpop.f32.mrf.mxu0  ;;  %v225_v42 = vpop.f32.mrf.mxu1 }
  0xb3   :  { %299 = vst [vmem:[%s590_s2 + $0xe8] sm:$0xff] %v262_v40 }
  0xb4   :  { %276 = vst [vmem:[%s590_s2 + $0x30] sm:$0xff] %v205_v41 }
  0xb5   :  { %284 = vst [vmem:[%s590_s2 + $0x70] sm:$0xff] %v225_v42 }
  0xb9   :  { %v245_v43 = vpop.f32.mrf.mxu2  ;;  %v265_v44 = vpop.f32.mrf.mxu3 }
  0xba   :  { %292 = vst [vmem:[%s590_s2 + $0xb0] sm:$0xff] %v245_v43  ;;  %v207_v45 = vpop.f32.mrf.mxu0  ;;  %v227_v46 = vpop.f32.mrf.mxu1 }
  0xbb   :  { %300 = vst [vmem:[%s590_s2 + $0xf0] sm:$0xff] %v265_v44 }
  0xbc   :  { %277 = vst [vmem:[%s590_s2 + $0x38] sm:$0xff] %v207_v45 }
  0xbd   :  { %285 = vst [vmem:[%s590_s2 + $0x78] sm:$0xff] %v227_v46 }
  0xc1   :  { %v247_v47 = vpop.f32.mrf.mxu2  ;;  %v267_v48 = vpop.f32.mrf.mxu3 }
  0xc2   :  { %293 = vst [vmem:[%s590_s2 + $0xb8] sm:$0xff] %v247_v47 }
  0xc3   :  { %301 = vst [vmem:[%s590_s2 + $0xf8] sm:$0xff] %v267_v48 }

// kernel: gat_forward.6
= control target key start
LH: loop header
LB: loop body
LE: loop exit
PB: predicated region body
PF: predicated region fallthrough
CT: control target
= control target key end

     0   :  { %vm156_vm0 = vcmask 523264   ;;  %s645_s1 = inlined_call_operand.vmem [shape: bf16[64,128], index: 1, kind: input, shape index: {}]   ;;  %s646_s0 = inlined_call_operand.vmem [shape: bf16[256,64], index: 0, kind: input, shape index: {}]   ;;  %s647_s2 = inlined_call_operand.vmem [shape: f32[256,128], index: 2, kind: output, shape index: {}]  }
   0x1   :  { %v445_v0 = vld [vmem:[%s645_s1 + $0x18] sm:$0xff]  ;;  %v444_v1 = vld [vmem:[%s645_s1 + $0x10] sm:$0xff]  ;;  %v443_v2 = vld [vmem:[%s645_s1 + $0x8] sm:$0xff] }
   0x2   :  { %209 = vmatpush.bf16.msra.mxu0 %v445_v0  ;;  %446 = vmatpush.bf16.msra.mxu1 %v445_v0  ;;  %v442_v3 = vld [vmem:[%s645_s1] sm:$0xff]  ;;  %v427_v8 = vld [vmem:[%s646_s0 + $0x8] sm:$0xff]  ;;  %v428_v12 = vld [vmem:[%s646_s0 + $0x10] sm:$0xff] }
   0x3   :  { %447 = vmatpush.bf16.msra.mxu2 %v445_v0  ;;  %448 = vmatpush.bf16.msra.mxu3 %v445_v0  ;;  %v426_v4 = vld [vmem:[%s646_s0] sm:$0xff]  ;;  %v431_v9 = vld [vmem:[%s646_s0 + $0x28] sm:$0xff]  ;;  %v432_v13 = vld [vmem:[%s646_s0 + $0x30] sm:$0xff] }
   0x4   :  { %v430_v5 = vld [vmem:[%s646_s0 + $0x20] sm:$0xff]  ;;  %v435_v10 = vld [vmem:[%s646_s0 + $0x48] sm:$0xff]  ;;  %v436_v14 = vld [vmem:[%s646_s0 + $0x50] sm:$0xff] }
   0x5   :  { %v434_v6 = vld [vmem:[%s646_s0 + $0x40] sm:$0xff]  ;;  %v439_v11 = vld [vmem:[%s646_s0 + $0x68] sm:$0xff]  ;;  %v440_v15 = vld [vmem:[%s646_s0 + $0x70] sm:$0xff] }
   0x6   :  { %210 = vmatpush.bf16.msra.mxu0 %v444_v1  ;;  %449 = vmatpush.bf16.msra.mxu1 %v444_v1  ;;  %v438_v7 = vld [vmem:[%s646_s0 + $0x60] sm:$0xff]  ;;  %v429_v16 = vld [vmem:[%s646_s0 + $0x18] sm:$0xff] }
   0x7   :  { %450 = vmatpush.bf16.msra.mxu2 %v444_v1  ;;  %451 = vmatpush.bf16.msra.mxu3 %v444_v1  ;;  %v433_v17 = vld [vmem:[%s646_s0 + $0x38] sm:$0xff] }
   0x8   :  { %v437_v18 = vld [vmem:[%s646_s0 + $0x58] sm:$0xff] }
   0x9   :  { %v441_v19 = vld [vmem:[%s646_s0 + $0x78] sm:$0xff] }
   0xa   :  { %211 = vmatpush.bf16.msra.mxu0 %v443_v2  ;;  %452 = vmatpush.bf16.msra.mxu1 %v443_v2 }
   0xb   :  { %453 = vmatpush.bf16.msra.mxu2 %v443_v2  ;;  %454 = vmatpush.bf16.msra.mxu3 %v443_v2 }
   0xe   :  { %212 = vmatpush.bf16.msra.mxu0 %v442_v3  ;;  %455 = vmatpush.bf16.msra.mxu1 %v442_v3 }
   0xf   :  { %456 = vmatpush.bf16.msra.mxu2 %v442_v3  ;;  %457 = vmatpush.bf16.msra.mxu3 %v442_v3 }
  0x11   :  { %410 = vmatmul.msk.bf16.vlgmr.msra.gmra.mxu0 %vm156_vm0, %v426_v4  ;;  %414 = vmatmul.msk.bf16.vlgmr.msra.gmra.mxu1 %vm156_vm0, %v430_v5 }
  0x12   :  { %418 = vmatmul.msk.bf16.vlgmr.msra.gmra.mxu2 %vm156_vm0, %v434_v6  ;;  %422 = vmatmul.msk.bf16.vlgmr.msra.gmra.mxu3 %vm156_vm0, %v438_v7 }
  0x21   :  { %411 = vmatmul.msk.bf16.gmra.mxu0 %vm156_vm0, %v427_v8  ;;  %415 = vmatmul.msk.bf16.gmra.mxu1 %vm156_vm0, %v431_v9 }
  0x22   :  { %419 = vmatmul.msk.bf16.gmra.mxu2 %vm156_vm0, %v435_v10  ;;  %423 = vmatmul.msk.bf16.gmra.mxu3 %vm156_vm0, %v439_v11 }
  0x31   :  { %412 = vmatmul.msk.bf16.gmra.mxu0 %vm156_vm0, %v428_v12  ;;  %416 = vmatmul.msk.bf16.gmra.mxu1 %vm156_vm0, %v432_v13 }
  0x32   :  { %420 = vmatmul.msk.bf16.gmra.mxu2 %vm156_vm0, %v436_v14  ;;  %424 = vmatmul.msk.bf16.gmra.mxu3 %vm156_vm0, %v440_v15 }
  0x41   :  { %413 = vmatmul.msk.bf16.gmra.mxu0 %vm156_vm0, %v429_v16  ;;  %417 = vmatmul.msk.bf16.gmra.mxu1 %vm156_vm0, %v433_v17 }
  0x42   :  { %421 = vmatmul.msk.bf16.gmra.mxu2 %vm156_vm0, %v437_v18  ;;  %425 = vmatmul.msk.bf16.gmra.mxu3 %vm156_vm0, %v441_v19 }
  0x8e   :  { %v214_v20 = vpop.f32.mrf.mxu0  ;;  %v234_v21 = vpop.f32.mrf.mxu1 }
  0x8f   :  { %294 = vst [vmem:[%s647_s2] sm:$0xff] %v214_v20 }
  0x90   :  { %302 = vst [vmem:[%s647_s2 + $0x40] sm:$0xff] %v234_v21 }
  0x95   :  { %v254_v22 = vpop.f32.mrf.mxu2  ;;  %v274_v23 = vpop.f32.mrf.mxu3 }
  0x96   :  { %310 = vst [vmem:[%s647_s2 + $0x80] sm:$0xff] %v254_v22  ;;  %v216_v24 = vpop.f32.mrf.mxu0  ;;  %v236_v25 = vpop.f32.mrf.mxu1 }
  0x97   :  { %318 = vst [vmem:[%s647_s2 + $0xc0] sm:$0xff] %v274_v23 }
  0x98   :  { %295 = vst [vmem:[%s647_s2 + $0x8] sm:$0xff] %v216_v24 }
  0x99   :  { %303 = vst [vmem:[%s647_s2 + $0x48] sm:$0xff] %v236_v25 }
  0x9d   :  { %v256_v26 = vpop.f32.mrf.mxu2  ;;  %v276_v27 = vpop.f32.mrf.mxu3 }
  0x9e   :  { %311 = vst [vmem:[%s647_s2 + $0x88] sm:$0xff] %v256_v26  ;;  %v219_v28 = vpop.f32.mrf.mxu0  ;;  %v239_v29 = vpop.f32.mrf.mxu1 }
  0x9f   :  { %319 = vst [vmem:[%s647_s2 + $0xc8] sm:$0xff] %v276_v27 }
  0xa0   :  { %296 = vst [vmem:[%s647_s2 + $0x10] sm:$0xff] %v219_v28 }
  0xa1   :  { %304 = vst [vmem:[%s647_s2 + $0x50] sm:$0xff] %v239_v29 }
  0xa5   :  { %v259_v30 = vpop.f32.mrf.mxu2  ;;  %v279_v31 = vpop.f32.mrf.mxu3 }
  0xa6   :  { %312 = vst [vmem:[%s647_s2 + $0x90] sm:$0xff] %v259_v30  ;;  %v221_v32 = vpop.f32.mrf.mxu0  ;;  %v241_v33 = vpop.f32.mrf.mxu1 }
  0xa7   :  { %320 = vst [vmem:[%s647_s2 + $0xd0] sm:$0xff] %v279_v31 }
  0xa8   :  { %297 = vst [vmem:[%s647_s2 + $0x18] sm:$0xff] %v221_v32 }
  0xa9   :  { %305 = vst [vmem:[%s647_s2 + $0x58] sm:$0xff] %v241_v33 }
  0xad   :  { %v261_v34 = vpop.f32.mrf.mxu2  ;;  %v281_v35 = vpop.f32.mrf.mxu3 }
  0xae   :  { %313 = vst [vmem:[%s647_s2 + $0x98] sm:$0xff] %v261_v34  ;;  %v224_v36 = vpop.f32.mrf.mxu0  ;;  %v244_v37 = vpop.f32.mrf.mxu1 }
  0xaf   :  { %321 = vst [vmem:[%s647_s2 + $0xd8] sm:$0xff] %v281_v35 }
  0xb0   :  { %298 = vst [vmem:[%s647_s2 + $0x20] sm:$0xff] %v224_v36 }
  0xb1   :  { %306 = vst [vmem:[%s647_s2 + $0x60] sm:$0xff] %v244_v37 }
  0xb5   :  { %v264_v38 = vpop.f32.mrf.mxu2  ;;  %v284_v39 = vpop.f32.mrf.mxu3 }
  0xb6   :  { %314 = vst [vmem:[%s647_s2 + $0xa0] sm:$0xff] %v264_v38  ;;  %v226_v40 = vpop.f32.mrf.mxu0  ;;  %v246_v41 = vpop.f32.mrf.mxu1 }
  0xb7   :  { %322 = vst [vmem:[%s647_s2 + $0xe0] sm:$0xff] %v284_v39 }
  0xb8   :  { %299 = vst [vmem:[%s647_s2 + $0x28] sm:$0xff] %v226_v40 }
  0xb9   :  { %307 = vst [vmem:[%s647_s2 + $0x68] sm:$0xff] %v246_v41 }
  0xbd   :  { %v266_v42 = vpop.f32.mrf.mxu2  ;;  %v286_v43 = vpop.f32.mrf.mxu3 }
  0xbe   :  { %315 = vst [vmem:[%s647_s2 + $0xa8] sm:$0xff] %v266_v42  ;;  %v229_v44 = vpop.f32.mrf.mxu0  ;;  %v249_v45 = vpop.f32.mrf.mxu1 }
  0xbf   :  { %323 = vst [vmem:[%s647_s2 + $0xe8] sm:$0xff] %v286_v43 }
  0xc0   :  { %300 = vst [vmem:[%s647_s2 + $0x30] sm:$0xff] %v229_v44 }
  0xc1   :  { %308 = vst [vmem:[%s647_s2 + $0x70] sm:$0xff] %v249_v45 }
  0xc5   :  { %v269_v46 = vpop.f32.mrf.mxu2  ;;  %v289_v47 = vpop.f32.mrf.mxu3 }
  0xc6   :  { %316 = vst [vmem:[%s647_s2 + $0xb0] sm:$0xff] %v269_v46  ;;  %v231_v48 = vpop.f32.mrf.mxu0  ;;  %v251_v49 = vpop.f32.mrf.mxu1 }
  0xc7   :  { %324 = vst [vmem:[%s647_s2 + $0xf0] sm:$0xff] %v289_v47 }
  0xc8   :  { %301 = vst [vmem:[%s647_s2 + $0x38] sm:$0xff] %v231_v48 }
  0xc9   :  { %309 = vst [vmem:[%s647_s2 + $0x78] sm:$0xff] %v251_v49 }
  0xcd   :  { %v271_v50 = vpop.f32.mrf.mxu2  ;;  %v291_v51 = vpop.f32.mrf.mxu3 }
  0xce   :  { %317 = vst [vmem:[%s647_s2 + $0xb8] sm:$0xff] %v271_v50 }
  0xcf   :  { %325 = vst [vmem:[%s647_s2 + $0xf8] sm:$0xff] %v291_v51 }

// kernel: gat_forward.7
= control target key start
LH: loop header
LB: loop body
LE: loop exit
PB: predicated region body
PF: predicated region fallthrough
CT: control target
= control target key end

     0   :  { %s1185_s18 = smov 0   ;;  %s1497_s0 = inlined_call_operand.vmem [shape: s8[256,256], index: 0, kind: input, shape index: {}]   ;;  %s1498_s1 = inlined_call_operand.vmem [shape: bf16[1,256,128], index: 1, kind: input, shape index: {}]   ;;  %s1499_s2 = inlined_call_operand.vmem [shape: f32[1,256], index: 2, kind: input, shape index: {}]   ;;  %s1500_s3 = inlined_call_operand.vmem [shape: f32[256,1], index: 3, kind: input, shape index: {}]   ;;  %s1501_s4 = inlined_call_operand.vmem [shape: f32[1,128], index: 4, kind: input, shape index: {}]   ;;  %s1502_s5 = inlined_call_operand.vmem [shape: f32[256,128], index: 5, kind: output, shape index: {}]  }
   0x1 LB: > { %s942_s19 = sadd.s32 4294967295, %s1152_s18   ;;  %p946_p0 = scmp.ge.s32.totalorder %s1152_s18, 1  ;;  %s1152_s18 = sphi %s1185_s18, %s15_s18  }
   0x2   : > { %p200_p1 = scmp.lt.s32.totalorder %s1152_s18, 5 }
   0x4   : > { %p201_p2 = pnand %p946_p0, %p200_p1 }
   0x5   : > { %s950_s20 = sshll.u32 (!%p201_p2), %s942_s19, 3  ;;  %s947_s30 = sshll.u32 (!%p201_p2), %s942_s19, 1 }
   0x6   : > { %204 = sbr.rel (%p201_p2) target bundleno = 703 (0x2bf), region = 40  ;;  %p242_p3 = scmp.lt.s32.totalorder (!%p201_p2), %s950_s20, 31 }
   0x7   : > { %p235_p4 = scmp.lt.s32.totalorder (!%p201_p2), %s947_s30, 7 }
   0xb   : > { %v1154_v0 = vmov 0   ;;  %s1504_s20 = smov (!%p242_p3, %s950_s20), 31  ;;  %v253_v9 = vld [vmem:[%s1499_s2] sm:$0x3]  ;;  %v1028_v19 = vld [vmem:[%s1498_s1 + $0x38] sm:$0xff]  ;;  %v1027_v21 = vld [vmem:[%s1498_s1 + $0x30] sm:$0xff] }
   0xc   : > { %1063 = vset.pattern.permute.xlu1 %v1154_v0  ;;  %1062 = vset.pattern.permute.xlu0 %v1154_v0  ;;  %s951_s21 = sshll.u32 %s1504_s20, 3  ;;  %v1206_v10 = vperm.slane %v253_v9, 0  ;;  %v1208_v11 = vperm.slane %v253_v9, 1  ;;  %v1036_v20 = vld [vmem:[%s1498_s1 + $0x78] sm:$0xff]  ;;  %v1035_v26 = vld [vmem:[%s1498_s1 + $0x70] sm:$0xff]  ;;  %s1506_s30 = smov (!%p235_p4, %s947_s30), 7 }
   0xd   : > { %1064 = vset.pattern.permute.xlu2 %v1154_v0  ;;  %s245_s24 = scalar_lea.vmem %s1500_s3, %s951_s21  ;;  %671 = vmatpush.bf16.msra.mxu0 %v1028_v19  ;;  %s1020_s19 = sshll.u32 %s1506_s30, 4 }
   0xe   : > { %v258_v1 = vld [vmem:[%s245_s24 + $0x20] sm:$0xff]  ;;  %v260_v3 = vld [vmem:[%s245_s24 + $0x30] sm:$0xff]  ;;  %v259_v4 = vld [vmem:[%s245_s24 + $0x28] sm:$0xff]  ;;  %1037 = vmatpush.bf16.msra.mxu2 %v1028_v19  ;;  %700 = vmatpush.bf16.msra.mxu1 %v1036_v20  ;;  %s239_s16 = scalar_lea.vmem %s1497_s0, %s1020_s19  ;;  %s1455_s25 = scalar_lea.vmem %s1502_s5, %s951_s21 }
   0xf   : > { %v254_v2 = vld [vmem:[%s245_s24] sm:$0xff]  ;;  %284 = vperm.xlu0 %1062, %v258_v1   ;;  %294 = vperm.xlu2 %1064, %v260_v3   ;;  %v255_v5 = vld [vmem:[%s245_s24 + $0x8] sm:$0xff]  ;;  %v261_v6 = vld [vmem:[%s245_s24 + $0x38] sm:$0xff] }
  0x10   : > { %264 = vperm.xlu1 %1063, %v254_v2   ;;  %v256_v7 = vld [vmem:[%s245_s24 + $0x10] sm:$0xff]  ;;  %v257_v8 = vld [vmem:[%s245_s24 + $0x18] sm:$0xff]  ;;  %1045 = vmatpush.bf16.msra.mxu3 %v1036_v20  ;;  %v1033_v19 = vld [vmem:[%s1498_s1 + $0x60] sm:$0xff] }
  0x11   : > { %672 = vmatpush.bf16.msra.mxu0 %v1027_v21  ;;  %v1024_v20 = vld [vmem:[%s1498_s1 + $0x18] sm:$0xff] }
  0x12   : > { %1038 = vmatpush.bf16.msra.mxu2 %v1027_v21  ;;  %701 = vmatpush.bf16.msra.mxu1 %v1035_v26  ;;  %v1032_v21 = vld [vmem:[%s1498_s1 + $0x58] sm:$0xff] }
  0x14   : > { %1046 = vmatpush.bf16.msra.mxu3 %v1035_v26  ;;  %v1021_v26 = vld [vmem:[%s1498_s1] sm:$0xff] }
  0x17   : > { %289 = vperm.xlu0 %1062, %v259_v4   ;;  %299 = vperm.xlu2 %1064, %v261_v6  }
  0x18   : > { %269 = vperm.xlu1 %1063, %v255_v5  }
  0x1f   : > { %274 = vperm.xlu0 %1062, %v256_v7  }
  0x20   : > { %279 = vperm.xlu1 %1063, %v257_v8  }
  0x69   : > { %v295_v12 = vpop.permute.xlu2 %294 }
  0x6a   : > { %v319_v30 = vadd.f32 %v1206_v10, %v295_v12  ;;  %v320_v41 = vadd.f32 %v1208_v11, %v295_v12 }
  0x6c   : > { %v351_v42 = vmul.f32 0.2, %v319_v30  ;;  %v352_v52 = vmul.f32 0.2, %v320_v41  ;;  %vm335_vm8 = vcmp.gt.f32.partialorder %v319_v30, 0.0  ;;  %vm336_vm9 = vcmp.gt.f32.partialorder %v320_v41, 0.0 }
  0x6e   : > { %v1260_v62 = vsel %vm335_vm8, %v319_v30, %v351_v42  ;;  %v1262_v63 = vsel %vm336_vm9, %v320_v41, %v352_v52  ;;  %v1029_v30 = vld [vmem:[%s1498_s1 + $0x40] sm:$0xff] }
  0x6f   : > { %v389_v12 = vmax.f32 %v1260_v62, %v1262_v63 }
  0x71   : > { %v300_v34 = vpop.permute.xlu2 %299 }
  0x72   : > { %v321_v43 = vadd.f32 %v1206_v10, %v300_v34  ;;  %v322_v47 = vadd.f32 %v1208_v11, %v300_v34 }
  0x74   : > { %v353_v55 = vmul.f32 0.2, %v321_v43  ;;  %v354_v56 = vmul.f32 0.2, %v322_v47  ;;  %vm337_vm10 = vcmp.gt.f32.partialorder %v321_v43, 0.0  ;;  %vm338_vm11 = vcmp.gt.f32.partialorder %v322_v47, 0.0 }
  0x76   : > { %v1264_v2 = vsel %vm337_vm10, %v321_v43, %v353_v55  ;;  %v1266_v3 = vsel %vm338_vm11, %v322_v47, %v354_v56 }
  0x77   : > { %v392_v8 = vmax.f32 %v1264_v2, %v1266_v3 }
  0x81   : > { %v285_v13 = vpop.permute.xlu0 %284 }
  0x82   : > { %v265_v14 = vpop.permute.xlu1 %264  ;;  %v315_v15 = vadd.f32 %v1206_v10, %v285_v13  ;;  %v316_v16 = vadd.f32 %v1208_v11, %v285_v13 }
  0x83   : > { %v307_v17 = vadd.f32 %v1206_v10, %v265_v14  ;;  %v308_v18 = vadd.f32 %v1208_v11, %v265_v14 }
  0x84   : > { %v347_v22 = vmul.f32 0.2, %v315_v15  ;;  %v348_v23 = vmul.f32 0.2, %v316_v16  ;;  %vm331_vm0 = vcmp.gt.f32.partialorder %v315_v15, 0.0  ;;  %vm332_vm1 = vcmp.gt.f32.partialorder %v316_v16, 0.0 }
  0x85   : > { %v339_v24 = vmul.f32 0.2, %v307_v17  ;;  %v340_v25 = vmul.f32 0.2, %v308_v18  ;;  %vm323_vm2 = vcmp.gt.f32.partialorder %v307_v17, 0.0  ;;  %vm324_vm3 = vcmp.gt.f32.partialorder %v308_v18, 0.0 }
  0x86   : > { %v1226_v27 = vsel %vm331_vm0, %v315_v15, %v347_v22  ;;  %v1228_v28 = vsel %vm332_vm1, %v316_v16, %v348_v23  ;;  %v1026_v16 = vld [vmem:[%s1498_s1 + $0x28] sm:$0xff]  ;;  %v1023_v22 = vld [vmem:[%s1498_s1 + $0x10] sm:$0xff] }
  0x87   : > { %v1230_v29 = vsel %vm323_vm2, %v307_v17, %v339_v24  ;;  %v383_v31 = vmax.f32 %v1226_v27, %v1228_v28  ;;  %v1235_v32 = vsel %vm324_vm3, %v308_v18, %v340_v25  ;;  %v1034_v17 = vld [vmem:[%s1498_s1 + $0x68] sm:$0xff]  ;;  %673 = vmatpush.bf16.msra.mxu0 %v1026_v16  ;;  %1039 = vmatpush.bf16.msra.mxu2 %v1026_v16  ;;  %v1025_v18 = vld [vmem:[%s1498_s1 + $0x20] sm:$0xff]  ;;  %v1031_v23 = vld [vmem:[%s1498_s1 + $0x50] sm:$0xff] }
  0x88   : > { %v371_v33 = vmax.f32 %v1230_v29, %v1235_v32  ;;  %702 = vmatpush.bf16.msra.mxu1 %v1034_v17  ;;  %1047 = vmatpush.bf16.msra.mxu3 %v1034_v17  ;;  %v1022_v24 = vld [vmem:[%s1498_s1 + $0x8] sm:$0xff] }
  0x89   : > { %384 = vmax.xlane.f32.xlu2 %v383_v31  ;;  %v290_v35 = vpop.permute.xlu0 %289  ;;  %v1030_v25 = vld [vmem:[%s1498_s1 + $0x48] sm:$0xff] }
  0x8a   : > { %v270_v36 = vpop.permute.xlu1 %269  ;;  %v317_v37 = vadd.f32 %v1206_v10, %v290_v35  ;;  %v318_v38 = vadd.f32 %v1208_v11, %v290_v35  ;;  %372 = vmax.xlane.f32.xlu1 %v371_v33 }
  0x8b   : > { %v309_v39 = vadd.f32 %v1206_v10, %v270_v36  ;;  %v310_v40 = vadd.f32 %v1208_v11, %v270_v36  ;;  %674 = vmatpush.bf16.msra.mxu0 %v1025_v18  ;;  %1040 = vmatpush.bf16.msra.mxu2 %v1025_v18 }
  0x8c   : > { %v349_v44 = vmul.f32 0.2, %v317_v37  ;;  %v350_v45 = vmul.f32 0.2, %v318_v38  ;;  %vm333_vm4 = vcmp.gt.f32.partialorder %v317_v37, 0.0  ;;  %vm334_vm5 = vcmp.gt.f32.partialorder %v318_v38, 0.0  ;;  %703 = vmatpush.bf16.msra.mxu1 %v1033_v19  ;;  %1048 = vmatpush.bf16.msra.mxu3 %v1033_v19 }
  0x8d   : > { %v341_v46 = vmul.f32 0.2, %v309_v39  ;;  %v342_v48 = vmul.f32 0.2, %v310_v40  ;;  %vm325_vm6 = vcmp.gt.f32.partialorder %v309_v39, 0.0  ;;  %vm326_vm7 = vcmp.gt.f32.partialorder %v310_v40, 0.0 }
  0x8e   : > { %v1246_v49 = vsel %vm333_vm4, %v317_v37, %v349_v44  ;;  %v1248_v50 = vsel %vm334_vm5, %v318_v38, %v350_v45  ;;  %v1330_v37 = vld [vmem:[%s239_s16] sm:$0xff]  ;;  %v1332_v38 = vld [vmem:[%s239_s16 + $0x8] sm:$0xff]  ;;  %v1337_v44 = vld [vmem:[%s239_s16 + $0x10] sm:$0xff] }
  0x8f   : > { %v1250_v51 = vsel %vm325_vm6, %v309_v39, %v341_v46  ;;  %v386_v53 = vmax.f32 %v1246_v49, %v1248_v50  ;;  %v1254_v54 = vsel %vm326_vm7, %v310_v40, %v342_v48  ;;  %675 = vmatpush.bf16.msra.mxu0 %v1024_v20  ;;  %1041 = vmatpush.bf16.msra.mxu2 %v1024_v20  ;;  %v447_v42 = vunpack.c.0.s8 %v1330_v37  ;;  %v1339_v45 = vld [vmem:[%s239_s16 + $0x18] sm:$0xff] }
  0x90   : > { %v374_v57 = vmax.f32 %v1250_v51, %v1254_v54  ;;  %704 = vmatpush.bf16.msra.mxu1 %v1032_v21  ;;  %1049 = vmatpush.bf16.msra.mxu3 %v1032_v21  ;;  %v448_v43 = vunpack.c.0.s8 %v1332_v38  ;;  %v455_v48 = vunpack.c.0.s8 %v1337_v44  ;;  %v456_v52 = vunpack.c.0.s8 %v1339_v45 }
  0x91   : > { %387 = vmax.xlane.f32.xlu0 %v386_v53  ;;  %v275_v58 = vpop.permute.xlu0 %274  ;;  %v463_v56 = vcvt.s32.f32 %v447_v42 }
  0x92   : > { %v311_v59 = vadd.f32 %v1206_v10, %v275_v58  ;;  %v312_v60 = vadd.f32 %v1208_v11, %v275_v58  ;;  %375 = vmax.xlane.f32.xlu2 %v374_v57  ;;  %v280_v61 = vpop.permute.xlu1 %279  ;;  %v464_v57 = vcvt.s32.f32 %v448_v43 }
  0x93   : > { %v313_v4 = vadd.f32 %v1206_v10, %v280_v61  ;;  %v314_v5 = vadd.f32 %v1208_v11, %v280_v61  ;;  %676 = vmatpush.bf16.msra.mxu0 %v1023_v22  ;;  %1042 = vmatpush.bf16.msra.mxu2 %v1023_v22 }
  0x94   : > { %v343_v0 = vmul.f32 0.2, %v311_v59  ;;  %v344_v1 = vmul.f32 0.2, %v312_v60  ;;  %vm327_vm12 = vcmp.gt.f32.partialorder %v311_v59, 0.0  ;;  %vm328_vm13 = vcmp.gt.f32.partialorder %v312_v60, 0.0  ;;  %705 = vmatpush.bf16.msra.mxu1 %v1031_v23  ;;  %1050 = vmatpush.bf16.msra.mxu3 %v1031_v23 }
  0x95   : > { %v345_v13 = vmul.f32 0.2, %v313_v4  ;;  %v346_v14 = vmul.f32 0.2, %v314_v5  ;;  %vm329_vm14 = vcmp.gt.f32.partialorder %v313_v4, 0.0  ;;  %vm330_vm15 = vcmp.gt.f32.partialorder %v314_v5, 0.0 }
  0x96   : > { %v1270_v6 = vsel %vm327_vm12, %v311_v59, %v343_v0  ;;  %v1272_v7 = vsel %vm328_vm13, %v312_v60, %v344_v1  ;;  %v457_v60 = vunpack.c.1.s8 %v1337_v44  ;;  %v449_v1 = vunpack.c.1.s8 %v1330_v37 }
  0x97   : > { %v377_v9 = vmax.f32 %v1270_v6, %v1272_v7  ;;  %v1280_v10 = vsel %vm329_vm14, %v313_v4, %v345_v13  ;;  %v1282_v11 = vsel %vm330_vm15, %v314_v5, %v346_v14  ;;  %677 = vmatpush.bf16.msra.mxu0 %v1022_v24  ;;  %1043 = vmatpush.bf16.msra.mxu2 %v1022_v24  ;;  %v471_v5 = vcvt.s32.f32 %v455_v48 }
  0x98   : > { %v380_v15 = vmax.f32 %v1280_v10, %v1282_v11  ;;  %706 = vmatpush.bf16.msra.mxu1 %v1030_v25  ;;  %1051 = vmatpush.bf16.msra.mxu3 %v1030_v25  ;;  %v473_v13 = vcvt.s32.f32 %v457_v60  ;;  %v472_v14 = vcvt.s32.f32 %v456_v52  ;;  %v465_v21 = vcvt.s32.f32 %v449_v1 }
  0x99   : > { %393 = vmax.xlane.f32.xlu0 %v392_v8  ;;  %378 = vmax.xlane.f32.xlu1 %v377_v9  ;;  %v450_v8 = vunpack.c.1.s8 %v1332_v38  ;;  %v462_v60 = vunpack.c.3.s8 %v1339_v45 }
  0x9a   : > { %390 = vmax.xlane.f32.xlu2 %v389_v12 }
  0x9b   : > { %678 = vmatpush.bf16.msra.mxu0 %v1021_v26  ;;  %1044 = vmatpush.bf16.msra.mxu2 %v1021_v26 }
  0x9c   : > { %707 = vmatpush.bf16.msra.mxu1 %v1029_v30  ;;  %1052 = vmatpush.bf16.msra.mxu3 %v1029_v30 }
  0xa2   : > { %381 = vmax.xlane.f32.xlu2 %v380_v15 }
  0xfc   : > { %v385_v31 = vpop.xlane.xlu2 %384 }
  0xfd   : > { %v373_v33 = vpop.xlane.xlu1 %372  ;;  %v403_v36 = vsub.f32 %v1226_v27, %v385_v31  ;;  %v404_v39 = vsub.f32 %v1228_v28, %v385_v31 }
  0xfe   : > { %v395_v34 = vsub.f32 %v1230_v29, %v373_v33  ;;  %v396_v35 = vsub.f32 %v1235_v32, %v373_v33 }
  0xff   : > { %v427_v29 = vmul.f32 1.442695, %v403_v36  ;;  %v429_v32 = vmul.f32 1.442695, %v404_v39 }
 0x100   : > { %v411_v40 = vmul.f32 1.442695, %v395_v34  ;;  %v413_v41 = vmul.f32 1.442695, %v396_v35  ;;  %v466_v34 = vcvt.s32.f32 %v450_v8 }
 0x102   : > { %1066 = vpow2.f32 %v411_v40 }
 0x103   : > { %1068 = vpow2.f32 %v413_v41 }
 0x104   : > { %v388_v27 = vpop.xlane.xlu0 %387  ;;  %1070 = vpow2.f32 %v427_v29 }
 0x105   : > { %v405_v46 = vsub.f32 %v1246_v49, %v388_v27  ;;  %v406_v47 = vsub.f32 %v1248_v50, %v388_v27  ;;  %v376_v28 = vpop.xlane.xlu2 %375  ;;  %1072 = vpow2.f32 %v429_v32  ;;  %v458_v50 = vunpack.c.1.s8 %v1339_v45 }
 0x106   : > { %v397_v53 = vsub.f32 %v1250_v51, %v376_v28  ;;  %v398_v55 = vsub.f32 %v1254_v54, %v376_v28 }
 0x107   : > { %v431_v58 = vmul.f32 1.442695, %v405_v46  ;;  %v433_v59 = vmul.f32 1.442695, %v406_v47  ;;  %v474_v15 = vcvt.s32.f32 %v458_v50  ;;  %v451_v46 = vunpack.c.2.s8 %v1330_v37 }
 0x108   : > { %v415_v49 = vmul.f32 1.442695, %v397_v53  ;;  %v417_v61 = vmul.f32 1.442695, %v398_v55  ;;  %v1067_v0 = vpop.eup %1066  ;;  %v452_v47 = vunpack.c.2.s8 %v1332_v38  ;;  %v459_v53 = vunpack.c.2.s8 %v1337_v44 }
 0x109   : > { %1074 = vpow2.f32 %v431_v58  ;;  %v1069_v4 = vpop.eup %1068  ;;  %v479_v51 = vmul.f32 %v1067_v0, %v463_v56  ;;  %v467_v0 = vcvt.s32.f32 %v451_v46 }
 0x10a   : > { %1076 = vpow2.f32 %v433_v59  ;;  %v480_v54 = vmul.f32 %v1069_v4, %v464_v57  ;;  %v1071_v16 = vpop.eup %1070  ;;  %v461_v57 = vunpack.c.3.s8 %v1337_v44  ;;  %v460_v59 = vunpack.c.2.s8 %v1339_v45 }
 0x10b   : > { %1078 = vpow2.f32 %v415_v49  ;;  %v1073_v22 = vpop.eup %1072  ;;  %v468_v4 = vcvt.s32.f32 %v452_v47  ;;  %v454_v44 = vunpack.c.3.s8 %v1332_v38 }
 0x10c   : > { %1080 = vpow2.f32 %v417_v61  ;;  %v394_v9 = vpop.xlane.xlu0 %393  ;;  %v379_v12 = vpop.xlane.xlu1 %378  ;;  %v495_v26 = vadd.f32 %v480_v54, %v479_v51  ;;  %v476_v8 = vcvt.s32.f32 %v460_v59 }
 0x10d   : > { %v409_v17 = vsub.f32 %v1264_v2, %v394_v9  ;;  %v410_v18 = vsub.f32 %v1266_v3, %v394_v9  ;;  %v391_v19 = vpop.xlane.xlu2 %390  ;;  %v399_v20 = vsub.f32 %v1270_v6, %v379_v12  ;;  %v400_v25 = vsub.f32 %v1272_v7, %v379_v12 }
 0x10e   : > { %v407_v23 = vsub.f32 %v1260_v62, %v391_v19  ;;  %v408_v24 = vsub.f32 %v1262_v63, %v391_v19  ;;  %496 = vadd.xlane.f32.xlu0 %v495_v26  ;;  %v487_v3 = vmul.f32 %v1071_v16, %v471_v5  ;;  %v488_v62 = vmul.f32 %v1073_v22, %v472_v14 }
 0x10f   : > { %v1075_v30 = vpop.eup %1074  ;;  %v439_v31 = vmul.f32 1.442695, %v409_v17  ;;  %v441_v33 = vmul.f32 1.442695, %v410_v18  ;;  %v419_v40 = vmul.f32 1.442695, %v399_v20  ;;  %v478_v9 = vcvt.s32.f32 %v462_v60 }
 0x110   : > { %v1077_v35 = vpop.eup %1076  ;;  %v435_v2 = vmul.f32 1.442695, %v407_v23  ;;  %v437_v36 = vmul.f32 1.442695, %v408_v24  ;;  %v1357_v39 = vmul.f32 %v1075_v30, %v473_v13  ;;  %v421_v7 = vmul.f32 1.442695, %v400_v25 }
 0x111   : > { %v1079_v6 = vpop.eup %1078  ;;  %1082 = vpow2.f32 %v439_v31  ;;  %v1359_v41 = vmul.f32 %v1077_v35, %v474_v15  ;;  %v507_v14 = vadd.f32 %v488_v62, %v487_v3  ;;  %v470_v18 = vcvt.s32.f32 %v454_v44 }
 0x112   : > { %v1081_v63 = vpop.eup %1080  ;;  %1084 = vpow2.f32 %v441_v33  ;;  %v539_v42 = vpack.c.bf16 %v1357_v39, %v487_v3  ;;  %v481_v43 = vmul.f32 %v1079_v6, %v465_v21  ;;  %v757_v6 = vlaneseq }
 0x113   : > { %1086 = vpow2.f32 %v435_v2  ;;  %v482_v29 = vmul.f32 %v1081_v63, %v466_v34  ;;  %v540_v32 = vpack.c.bf16 %v1359_v41, %v488_v62  ;;  %v510_v34 = vadd.f32 %v1359_v41, %v1357_v39  ;;  %v1380_v39 = vld [vmem:[%s1501_s4] ss:$0 sm:$0xff] }
 0x114   : > { %1088 = vpow2.f32 %v437_v36  ;;  %689 = vmatmul.bf16.vlgmr.msra.gmra.mxu2 %v539_v42  ;;  %v535_v27 = vpack.c.bf16 %v481_v43, %v479_v51 }
 0x115   : > { %1090 = vpow2.f32 %v419_v40  ;;  %v382_v28 = vpop.xlane.xlu2 %381  ;;  %v536_v48 = vpack.c.bf16 %v482_v29, %v480_v54  ;;  %718 = vmatmul.bf16.vlgmr.msra.gmra.mxu3 %v540_v32  ;;  %v498_v52 = vadd.f32 %v482_v29, %v481_v43  ;;  %v477_v54 = vcvt.s32.f32 %v461_v57 }
 0x116   : > { %1092 = vpow2.f32 %v421_v7  ;;  %v401_v55 = vsub.f32 %v1280_v10, %v382_v28  ;;  %v402_v56 = vsub.f32 %v1282_v11, %v382_v28  ;;  %679 = vmatmul.bf16.vlgmr.msra.gmra.mxu0 %v535_v27  ;;  %v453_v10 = vunpack.c.3.s8 %v1330_v37 }
 0x117   : > { %v1083_v58 = vpop.eup %1082  ;;  %708 = vmatmul.bf16.vlgmr.msra.gmra.mxu1 %v536_v48  ;;  %499 = vadd.xlane.f32.xlu1 %v498_v52  ;;  %v475_v11 = vcvt.s32.f32 %v459_v53  ;;  %v1375_v43 = vand.u32 127, %v757_v6 }
 0x118   : > { %v1085_v49 = vpop.eup %1084  ;;  %v423_v61 = vmul.f32 1.442695, %v401_v55  ;;  %v425_v50 = vmul.f32 1.442695, %v402_v56  ;;  %v469_v15 = vcvt.s32.f32 %v453_v10  ;;  %v493_v17 = vmul.f32 %v1083_v58, %v477_v54 }
 0x119   : > { %v1087_v1 = vpop.eup %1086  ;;  %v494_v20 = vmul.f32 %v1085_v49, %v478_v9  ;;  %vm759_vm0 = vcmp.lt.s32.totalorder %v1375_v43, 4 }
 0x11a   : > { %v1089_v51 = vpop.eup %1088  ;;  %1094 = vpow2.f32 %v423_v61  ;;  %v491_v16 = vmul.f32 %v1087_v1, %v475_v11 }
 0x11b   : > { %v1091_v5 = vpop.eup %1090  ;;  %1096 = vpow2.f32 %v425_v50  ;;  %v492_v37 = vmul.f32 %v1089_v51, %v476_v8  ;;  %v516_v33 = vadd.f32 %v494_v20, %v493_v17 }
 0x11c   : > { %v1093_v12 = vpop.eup %1092  ;;  %v483_v45 = vmul.f32 %v1091_v5, %v467_v0  ;;  %v541_v23 = vpack.c.bf16 %v493_v17, %v491_v16 }
 0x11d   : > { %v484_v13 = vmul.f32 %v1093_v12, %v468_v4  ;;  %v542_v25 = vpack.c.bf16 %v494_v20, %v492_v37  ;;  %v513_v35 = vadd.f32 %v492_v37, %v491_v16 }
 0x11f   : > { %v501_v19 = vadd.f32 %v484_v13, %v483_v45  ;;  %508 = vadd.xlane.f32.xlu1 %v507_v14 }
 0x120   : > { %v1095_v21 = vpop.eup %1094 }
 0x121   : > { %v1097_v22 = vpop.eup %1096  ;;  %502 = vadd.xlane.f32.xlu2 %v501_v19  ;;  %v485_v38 = vmul.f32 %v1095_v21, %v469_v15 }
 0x122   : > { %v486_v24 = vmul.f32 %v1097_v22, %v470_v18 }
 0x123   : > { %v537_v26 = vpack.c.bf16 %v485_v38, %v483_v45 }
 0x124   : > { %694 = vmatmul.bf16.gmra.mxu2 %v541_v23  ;;  %v538_v30 = vpack.c.bf16 %v486_v24, %v484_v13  ;;  %v504_v31 = vadd.f32 %v486_v24, %v485_v38 }
 0x125   : > { %723 = vmatmul.bf16.gmra.mxu3 %v542_v25 }
 0x126   : > { %684 = vmatmul.bf16.gmra.mxu0 %v537_v26  ;;  %505 = vadd.xlane.f32.xlu0 %v504_v31 }
 0x127   : > { %713 = vmatmul.bf16.gmra.mxu1 %v538_v30  ;;  %517 = vadd.xlane.f32.xlu1 %v516_v33 }
 0x129   : > { %511 = vadd.xlane.f32.xlu2 %v510_v34 }
 0x12e   : > { %514 = vadd.xlane.f32.xlu0 %v513_v35 }
 0x181   : > { %v497_v2 = vpop.xlane.xlu0 %496 }
 0x182   : > { %v519_v3 = vmax.f32 %v497_v2, 1e-20 }
 0x184   : > { %1098 = vrcp.f32 %v519_v3 }
 0x18a   : > { %v500_v36 = vpop.xlane.xlu1 %499  ;;  %v1099_v41 = vpop.eup %1098 }
 0x18b   : > { %v520_v29 = vmax.f32 %v500_v36, 1e-20 }
 0x192   : > { %v509_v40 = vpop.xlane.xlu1 %508 }
 0x193   : > { %v523_v62 = vmax.f32 %v509_v40, 1e-20  ;;  %v680_v63 = vpop.f32.mrf.mxu0 }
 0x194   : > { %v503_v7 = vpop.xlane.xlu2 %502  ;;  %v709_v42 = vpop.f32.mrf.mxu1 }
 0x195   : > { %1100 = vrcp.f32 %v523_v62  ;;  %v710_v32 = vadd.f32 %v709_v42, %v680_v63  ;;  %v521_v57 = vmax.f32 %v503_v7, 1e-20 }
 0x196   : > { %1102 = vrcp.f32 %v520_v29 }
 0x197   : > { %v729_v27 = vmul.f32 %v1099_v41, %v710_v32  ;;  %v690_v46 = vpop.f32.mrf.mxu2  ;;  %1104 = vrcp.f32 %v521_v57 }
 0x198   : > { %v719_v47 = vpop.f32.mrf.mxu3 }
 0x199   : > { %v720_v28 = vadd.f32 %v719_v47, %v690_v46  ;;  %v506_v48 = vpop.xlane.xlu0 %505  ;;  %v1384_v52 = vadd.f32 %v1380_v39, %v729_v27 }
 0x19a   : > { %v522_v44 = vmax.f32 %v506_v48, 1e-20  ;;  %v518_v9 = vpop.xlane.xlu1 %517 }
 0x19b   : > { %v1101_v53 = vpop.eup %1100  ;;  %v682_v55 = vpop.f32.mrf.mxu0  ;;  %v1389_v56 = vsel %vm759_vm0, %v1384_v52, -1e+30  ;;  %v526_v18 = vmax.f32 %v518_v9, 1e-20 }
 0x19c   : > { %v733_v58 = vmul.f32 %v1101_v53, %v720_v28  ;;  %v512_v59 = vpop.xlane.xlu2 %511  ;;  %v711_v60 = vpop.f32.mrf.mxu1  ;;  %770 = vmax.xlane.f32.xlu2 %v1389_v56 }
 0x19d   : > { %v712_v49 = vadd.f32 %v711_v60, %v682_v55  ;;  %v524_v61 = vmax.f32 %v512_v59, 1e-20  ;;  %v1103_v0 = vpop.eup %1102 }
 0x19e   : > { %v1393_v50 = vadd.f32 %v1380_v39, %v733_v58  ;;  %v1105_v45 = vpop.eup %1104 }
 0x19f   : > { %v692_v1 = vpop.f32.mrf.mxu2  ;;  %v730_v4 = vmul.f32 %v1103_v0, %v712_v49  ;;  %1106 = vrcp.f32 %v524_v61 }
 0x1a0   : > { %v721_v10 = vpop.f32.mrf.mxu3  ;;  %v766_v51 = vsel %vm759_vm0, %v1393_v50, -1e+30  ;;  %1108 = vrcp.f32 %v522_v44 }
 0x1a1   : > { %778 = vmax.xlane.f32.xlu0 %v766_v51  ;;  %v515_v11 = vpop.xlane.xlu0 %514  ;;  %v1399_v8 = vadd.f32 %v1380_v39, %v730_v4  ;;  %v722_v14 = vadd.f32 %v721_v10, %v692_v1 }
 0x1a2   : > { %v525_v13 = vmax.f32 %v515_v11, 1e-20 }
 0x1a3   : > { %v685_v54 = vpop.f32.mrf.mxu0  ;;  %v763_v37 = vsel %vm759_vm0, %v1399_v8, -1e+30 }
 0x1a4   : > { %v714_v5 = vpop.f32.mrf.mxu1  ;;  %1110 = vrcp.f32 %v525_v13 }
 0x1a5   : > { %v715_v12 = vadd.f32 %v714_v5, %v685_v54  ;;  %v1107_v17 = vpop.eup %1106  ;;  %1112 = vrcp.f32 %v526_v18 }
 0x1a6   : > { %v734_v21 = vmul.f32 %v1107_v17, %v722_v14  ;;  %v1109_v25 = vpop.eup %1108 }
 0x1a7   : > { %v731_v15 = vmul.f32 %v1105_v45, %v715_v12  ;;  %v695_v16 = vpop.f32.mrf.mxu2 }
 0x1a8   : > { %v724_v19 = vpop.f32.mrf.mxu3  ;;  %v1411_v33 = vadd.f32 %v1380_v39, %v734_v21 }
 0x1a9   : > { %772 = vmax.xlane.f32.xlu0 %v763_v37  ;;  %v1405_v20 = vadd.f32 %v1380_v39, %v731_v15  ;;  %v725_v26 = vadd.f32 %v724_v19, %v695_v16 }
 0x1aa   : > { %v1111_v34 = vpop.eup %1110  ;;  %v767_v62 = vsel %vm759_vm0, %v1411_v33, -1e+30 }
 0x1ab   : > { %v764_v22 = vsel %vm759_vm0, %v1405_v20, -1e+30  ;;  %v687_v38 = vpop.f32.mrf.mxu0  ;;  %v1113_v3 = vpop.eup %1112  ;;  %v735_v6 = vmul.f32 %v1111_v34, %v725_v26 }
 0x1ac   : > { %v716_v23 = vpop.f32.mrf.mxu1  ;;  %774 = vmax.xlane.f32.xlu1 %v764_v22 }
 0x1ad   : > { %v717_v24 = vadd.f32 %v716_v23, %v687_v38  ;;  %v1429_v29 = vadd.f32 %v1380_v39, %v735_v6 }
 0x1af   : > { %v732_v30 = vmul.f32 %v1109_v25, %v717_v24  ;;  %v697_v31 = vpop.f32.mrf.mxu2  ;;  %v768_v32 = vsel %vm759_vm0, %v1429_v29, -1e+30 }
 0x1b0   : > { %v726_v35 = vpop.f32.mrf.mxu3 }
 0x1b1   : > { %v727_v2 = vadd.f32 %v726_v35, %v697_v31  ;;  %v1414_v36 = vadd.f32 %v1380_v39, %v732_v30 }
 0x1b3   : > { %v736_v40 = vmul.f32 %v1113_v3, %v727_v2  ;;  %v765_v63 = vsel %vm759_vm0, %v1414_v36, -1e+30 }
 0x1b4   : > { %780 = vmax.xlane.f32.xlu1 %v767_v62  ;;  %776 = vmax.xlane.f32.xlu2 %v765_v63 }
 0x1b5   : > { %v1423_v7 = vadd.f32 %v1380_v39, %v736_v40 }
 0x1b7   : > { %v769_v42 = vsel %vm759_vm0, %v1423_v7, -1e+30 }
 0x1b8   : > { %784 = vmax.xlane.f32.xlu0 %v769_v42 }
 0x1bc   : > { %782 = vmax.xlane.f32.xlu2 %v768_v32 }
 0x20f   : > { %v771_v41 = vpop.xlane.xlu2 %770 }
 0x210   : > { %v786_v27 = vsub.f32 %v1389_v56, %v771_v41 }
 0x212   : > { %v794_v46 = vmul.f32 1.442695, %v786_v27 }
 0x214   : > { %1114 = vpow2.f32 %v794_v46  ;;  %v779_v47 = vpop.xlane.xlu0 %778 }
 0x215   : > { %v790_v28 = vsub.f32 %v766_v51, %v779_v47 }
 0x217   : > { %v802_v48 = vmul.f32 1.442695, %v790_v28 }
 0x219   : > { %1116 = vpow2.f32 %v802_v48 }
 0x21a   : > { %v1115_v53 = vpop.eup %1114 }
 0x21b   : > { %810 = vadd.xlane.f32.xlu1 %v1115_v53 }
 0x21c   : > { %v773_v55 = vpop.xlane.xlu0 %772 }
 0x21d   : > { %v787_v39 = vsub.f32 %v763_v37, %v773_v55 }
 0x21f   : > { %v1117_v57 = vpop.eup %1116  ;;  %v796_v58 = vmul.f32 1.442695, %v787_v39  ;;  %v1435_v59 = vpop.xlane.xlu1 %774 }
 0x220   : > { %v788_v60 = vsub.f32 %v764_v22, %v1435_v59  ;;  %818 = vadd.xlane.f32.xlu2 %v1117_v57 }
 0x221   : > { %1118 = vpow2.f32 %v796_v58 }
 0x222   : > { %v798_v49 = vmul.f32 1.442695, %v788_v60 }
 0x224   : > { %1120 = vpow2.f32 %v798_v49 }
 0x227   : > { %v1119_v56 = vpop.eup %1118  ;;  %v1438_v61 = vpop.xlane.xlu1 %780 }
 0x228   : > { %v1440_v0 = vpop.xlane.xlu2 %776  ;;  %v791_v1 = vsub.f32 %v767_v62, %v1438_v61  ;;  %812 = vadd.xlane.f32.xlu2 %v1119_v56 }
 0x229   : > { %v789_v4 = vsub.f32 %v765_v63, %v1440_v0 }
 0x22a   : > { %v1121_v10 = vpop.eup %1120  ;;  %v804_v51 = vmul.f32 1.442695, %v791_v1 }
 0x22b   : > { %v800_v11 = vmul.f32 1.442695, %v789_v4  ;;  %814 = vadd.xlane.f32.xlu0 %v1121_v10  ;;  %v1444_v54 = vpop.xlane.xlu0 %784 }
 0x22c   : > { %1122 = vpow2.f32 %v804_v51  ;;  %v793_v44 = vsub.f32 %v769_v42, %v1444_v54 }
 0x22d   : > { %1124 = vpow2.f32 %v800_v11 }
 0x22e   : > { %v808_v5 = vmul.f32 1.442695, %v793_v44 }
 0x230   : > { %v1447_v9 = vpop.xlane.xlu2 %782  ;;  %1126 = vpow2.f32 %v808_v5 }
 0x231   : > { %v792_v12 = vsub.f32 %v768_v32, %v1447_v9 }
 0x232   : > { %v1123_v45 = vpop.eup %1122 }
 0x233   : > { %v806_v13 = vmul.f32 1.442695, %v792_v12  ;;  %v1125_v14 = vpop.eup %1124  ;;  %820 = vadd.xlane.f32.xlu0 %v1123_v45 }
 0x234   : > { %816 = vadd.xlane.f32.xlu1 %v1125_v14 }
 0x235   : > { %1128 = vpow2.f32 %v806_v13 }
 0x236   : > { %v1127_v15 = vpop.eup %1126 }
 0x237   : > { %824 = vadd.xlane.f32.xlu2 %v1127_v15 }
 0x23b   : > { %v1129_v16 = vpop.eup %1128 }
 0x23c   : > { %822 = vadd.xlane.f32.xlu1 %v1129_v16 }
 0x28e   : > { %v811_v17 = vpop.xlane.xlu1 %810 }
 0x28f   : > { %1130 = vlog2.f32 %v811_v17 }
 0x293   : > { %v819_v18 = vpop.xlane.xlu2 %818 }
 0x294   : > { %1132 = vlog2.f32 %v819_v18 }
 0x295   : > { %v1131_v19 = vpop.eup %1130 }
 0x296   : > { %v827_v37 = vmul.f32 0.6931472, %v1131_v19 }
 0x298   : > { %v842_v21 = vadd.f32 %v827_v37, %v771_v41 }
 0x29a   : > { %v1133_v22 = vpop.eup %1132  ;;  %v850_v38 = vsub.f32 %v1384_v52, %v842_v21 }
 0x29b   : > { %v835_v23 = vmul.f32 0.6931472, %v1133_v22  ;;  %v813_v24 = vpop.xlane.xlu2 %812 }
 0x29c   : > { %v858_v25 = vsel %vm759_vm0, %v850_v38, 0.0  ;;  %1134 = vlog2.f32 %v813_v24 }
 0x29d   : > { %866 = vst [vmem:[%s1455_s25] sm:$0xff] %v858_v25  ;;  %v846_v26 = vadd.f32 %v835_v23, %v779_v47 }
 0x29e   : > { %v815_v30 = vpop.xlane.xlu0 %814 }
 0x29f   : > { %v854_v31 = vsub.f32 %v1393_v50, %v846_v26  ;;  %1136 = vlog2.f32 %v815_v30 }
 0x2a1   : > { %v862_v34 = vsel %vm759_vm0, %v854_v31, 0.0 }
 0x2a2   : > { %v1135_v35 = vpop.eup %1134  ;;  %870 = vst [vmem:[%s1455_s25 + $0x20] sm:$0xff] %v862_v34 }
 0x2a3   : > { %v829_v2 = vmul.f32 0.6931472, %v1135_v35 }
 0x2a5   : > { %v1137_v52 = vpop.eup %1136  ;;  %v843_v3 = vadd.f32 %v829_v2, %v773_v55 }
 0x2a6   : > { %v831_v6 = vmul.f32 0.6931472, %v1137_v52  ;;  %v821_v40 = vpop.xlane.xlu0 %820 }
 0x2a7   : > { %v851_v62 = vsub.f32 %v1399_v8, %v843_v3  ;;  %v817_v63 = vpop.xlane.xlu1 %816  ;;  %1138 = vlog2.f32 %v821_v40 }
 0x2a8   : > { %v844_v42 = vadd.f32 %v831_v6, %v1435_v59  ;;  %1140 = vlog2.f32 %v817_v63 }
 0x2a9   : > { %v859_v50 = vsel %vm759_vm0, %v851_v62, 0.0 }
 0x2aa   : > { %867 = vst [vmem:[%s1455_s25 + $0x8] sm:$0xff] %v859_v50  ;;  %v852_v32 = vsub.f32 %v1405_v20, %v844_v42  ;;  %v825_v41 = vpop.xlane.xlu2 %824 }
 0x2ab   : > { %1142 = vlog2.f32 %v825_v41 }
 0x2ac   : > { %v860_v27 = vsel %vm759_vm0, %v852_v32, 0.0 }
 0x2ad   : > { %v1139_v46 = vpop.eup %1138  ;;  %868 = vst [vmem:[%s1455_s25 + $0x10] sm:$0xff] %v860_v27 }
 0x2ae   : > { %v1141_v8 = vpop.eup %1140  ;;  %v837_v47 = vmul.f32 0.6931472, %v1139_v46 }
 0x2af   : > { %v833_v28 = vmul.f32 0.6931472, %v1141_v8  ;;  %v823_v48 = vpop.xlane.xlu1 %822 }
 0x2b0   : > { %v847_v53 = vadd.f32 %v837_v47, %v1438_v61  ;;  %1144 = vlog2.f32 %v823_v48 }
 0x2b1   : > { %v1143_v55 = vpop.eup %1142  ;;  %v845_v20 = vadd.f32 %v833_v28, %v1440_v0 }
 0x2b2   : > { %v855_v39 = vsub.f32 %v1411_v33, %v847_v53  ;;  %v841_v57 = vmul.f32 0.6931472, %v1143_v55 }
 0x2b3   : > { %v853_v58 = vsub.f32 %v1414_v36, %v845_v20 }
 0x2b4   : > { %v863_v59 = vsel %vm759_vm0, %v855_v39, 0.0  ;;  %v849_v60 = vadd.f32 %v841_v57, %v1444_v54 }
 0x2b5   : > { %v861_v49 = vsel %vm759_vm0, %v853_v58, 0.0  ;;  %871 = vst [vmem:[%s1455_s25 + $0x28] sm:$0xff] %v863_v59 }
 0x2b6   : > { %v1145_v56 = vpop.eup %1144  ;;  %869 = vst [vmem:[%s1455_s25 + $0x18] sm:$0xff] %v861_v49  ;;  %v857_v61 = vsub.f32 %v1423_v7, %v849_v60 }
 0x2b7   : > { %v839_v0 = vmul.f32 0.6931472, %v1145_v56 }
 0x2b8   : > { %v865_v33 = vsel %vm759_vm0, %v857_v61, 0.0 }
 0x2b9   : > { %873 = vst [vmem:[%s1455_s25 + $0x38] sm:$0xff] %v865_v33  ;;  %v848_v36 = vadd.f32 %v839_v0, %v1447_v9 }
 0x2bb   : > { %v856_v1 = vsub.f32 %v1429_v29, %v848_v36 }
 0x2bd   : > { %v864_v4 = vsel %vm759_vm0, %v856_v1, 0.0 }
 0x2be   : > { %872 = vst [vmem:[%s1455_s25 + $0x30] sm:$0xff] %v864_v4 }
 0x2bf PF: > { %s15_s18 = sadd.s32 1, %s1152_s18  }
 0x2c0   : > { %p12_p5 = scmp.ge.s32.totalorder %s15_s18, 6  }
 0x2c2   :  { %14 = sbr.rel (!%p12_p5) target bundleno = 1 (0x1), region = 73 }

// kernel: gat_forward.5
= control target key start
LH: loop header
LB: loop body
LE: loop exit
PB: predicated region body
PF: predicated region fallthrough
CT: control target
= control target key end

     0   :  { %s5308_s18 = smov 0   ;;  %s7355_s0 = inlined_call_operand.vmem [shape: s8[256,256], index: 0, kind: input, shape index: {}]   ;;  %s7356_s1 = inlined_call_operand.vmem [shape: bf16[8,256,128], index: 1, kind: input, shape index: {}]   ;;  %s7357_s2 = inlined_call_operand.vmem [shape: f32[8,256], index: 2, kind: input, shape index: {}]   ;;  %s7358_s3 = inlined_call_operand.vmem [shape: f32[256,8], index: 3, kind: input, shape index: {}]   ;;  %s7359_s4 = inlined_call_operand.vmem [shape: f32[1,128], index: 4, kind: input, shape index: {}]   ;;  %s7360_s5 = inlined_call_operand.vmem [shape: f32[256,128], index: 5, kind: output, shape index: {}]  }
   0x1 LB: > { %s3935_s19 = sadd.s32 4294967295, %s5268_s18   ;;  %p3939_p0 = scmp.ge.s32.totalorder %s5268_s18, 1  ;;  %s5268_s18 = sphi %s5308_s18, %s15_s18  }
   0x2   : > { %p200_p1 = scmp.lt.s32.totalorder %s5268_s18, 5 }
   0x4   : > { %p201_p2 = pnand %p3939_p0, %p200_p1 }
   0x6   : > { %204 = sbr.rel (%p201_p2) target bundleno = 1823 (0x71f), region = 40 }
   0xb   : > { %s3943_s20 = sshll.u32 %s3935_s19, 3  ;;  %v5270_v0 = vmov 0   ;;  %v5271_v9 = vmov 1   ;;  %v253_v12 = vld [vmem:[%s7357_s2] ss:$8 sm:$0x3] }
   0xc   : > { %4839 = vset.pattern.permute.xlu2 %v5270_v0  ;;  %4838 = vset.pattern.permute.xlu1 %v5270_v0  ;;  %p242_p3 = scmp.lt.s32.totalorder %s3943_s20, 31  ;;  %v5371_v13 = vperm.slane %v253_v12, 0  ;;  %v5373_v14 = vperm.slane %v253_v12, 1  ;;  %v4011_v28 = vld [vmem:[%s7357_s2 + $0x1] ss:$8 sm:$0x3] }
   0xd   : > { %4837 = vset.pattern.permute.xlu0 %v5270_v0  ;;  %v5396_v37 = vperm.slane %v4011_v28, 0  ;;  %v5404_v48 = vperm.slane %v4011_v28, 1  ;;  %s3940_s16 = sshll.u32 %s3935_s19, 1 }
   0xe   : > { %s7440_s20 = smov (!%p242_p3, %s3943_s20), 31  ;;  %p235_p4 = scmp.lt.s32.totalorder %s3940_s16, 7 }
   0xf   : > { %s3944_s21 = sshll.u32 %s7440_s20, 3 }
  0x10   : > { %s5326_s24 = scalar_lea.vmem %s7358_s3, %s3944_s21  ;;  %s7442_s16 = smov (!%p235_p4, %s3940_s16), 7 }
  0x11   : > { %v5329_v1 = vld [vmem:[%s5326_s24 + $0x20] sm:$0xff]  ;;  %v5332_v2 = vld [vmem:[%s5326_s24 + $0x10] sm:$0xff]  ;;  %v5341_v4 = vld [vmem:[%s5326_s24 + $0x28] sm:$0xff]  ;;  %s4692_s12 = sshll.u32 %s7442_s16, 4  ;;  %s7302_s19 = scalar_lea.vmem %s7360_s5, %s3944_s21 }
  0x12   : > { %v5335_v3 = vld [vmem:[%s5326_s24] sm:$0xff]  ;;  %284 = vperm.xlu2 %4839, %v5329_v1   ;;  %274 = vperm.xlu1 %4838, %v5332_v2   ;;  %v5344_v5 = vld [vmem:[%s5326_s24 + $0x18] sm:$0xff]  ;;  %v5347_v6 = vld [vmem:[%s5326_s24 + $0x8] sm:$0xff]  ;;  %s5608_s25 = scalar_lea.vmem %s7355_s0, %s4692_s12 }
  0x13   : > { %264 = vperm.xlu0 %4837, %v5335_v3   ;;  %v5353_v7 = vld [vmem:[%s5326_s24 + $0x38] sm:$0xff]  ;;  %v5356_v8 = vld [vmem:[%s5326_s24 + $0x30] sm:$0xff] }
  0x1a   : > { %289 = vperm.xlu2 %4839, %v5341_v4   ;;  %279 = vperm.xlu1 %4838, %v5344_v5  }
  0x1b   : > { %269 = vperm.xlu0 %4837, %v5347_v6  }
  0x22   : > { %4840 = vset.pattern.permute.xlu2 %v5271_v9  ;;  %299 = vperm.xlu1 %4838, %v5353_v7  }
  0x23   : > { %294 = vperm.xlu0 %4837, %v5356_v8   ;;  %748 = vperm.xlu2 %4840, %v5335_v3  }
  0x2a   : > { %4842 = vset.pattern.permute.xlu1 %v5271_v9 }
  0x2b   : > { %4841 = vset.pattern.permute.xlu0 %v5271_v9  ;;  %756 = vperm.xlu1 %4842, %v5332_v2  }
  0x2c   : > { %760 = vperm.xlu2 %4840, %v5344_v5   ;;  %752 = vperm.xlu0 %4841, %v5347_v6  }
  0x33   : > { %764 = vperm.xlu1 %4842, %v5329_v1  }
  0x34   : > { %768 = vperm.xlu2 %4840, %v5341_v4  }
  0x3b   : > { %772 = vperm.xlu1 %4842, %v5356_v8  }
  0x3c   : > { %776 = vperm.xlu2 %4840, %v5353_v7  }
  0x6c   : > { %v285_v10 = vpop.permute.xlu2 %284 }
  0x6d   : > { %v315_v40 = vadd.f32 %v5371_v13, %v285_v10  ;;  %v316_v41 = vadd.f32 %v5373_v14, %v285_v10 }
  0x6f   : > { %vm331_vm8 = vcmp.gt.f32.partialorder %v315_v40, 0.0  ;;  %vm332_vm9 = vcmp.gt.f32.partialorder %v316_v41, 0.0  ;;  %v347_v57 = vmul.f32 0.2, %v315_v40  ;;  %v348_v58 = vmul.f32 0.2, %v316_v41 }
  0x74   : > { %v290_v11 = vpop.permute.xlu2 %289 }
  0x75   : > { %v317_v44 = vadd.f32 %v5371_v13, %v290_v11  ;;  %v318_v45 = vadd.f32 %v5373_v14, %v290_v11 }
  0x77   : > { %vm333_vm10 = vcmp.gt.f32.partialorder %v317_v44, 0.0  ;;  %v349_v61 = vmul.f32 0.2, %v317_v44  ;;  %v350_v62 = vmul.f32 0.2, %v318_v45  ;;  %vm334_vm11 = vcmp.gt.f32.partialorder %v318_v45, 0.0 }
  0x7d   : > { %v749_v23 = vpop.permute.xlu2 %748 }
  0x7e   : > { %v784_v59 = vadd.f32 %v5396_v37, %v749_v23  ;;  %v785_v63 = vadd.f32 %v5404_v48, %v749_v23 }
  0x80   : > { %vm800_vm14 = vcmp.gt.f32.partialorder %v784_v59, 0.0  ;;  %vm801_vm15 = vcmp.gt.f32.partialorder %v785_v63, 0.0 }
  0x84   : > { %v275_v15 = vpop.permute.xlu1 %274 }
  0x85   : > { %v311_v16 = vadd.f32 %v5371_v13, %v275_v15  ;;  %v312_v17 = vadd.f32 %v5373_v14, %v275_v15  ;;  %v265_v18 = vpop.permute.xlu0 %264 }
  0x86   : > { %v307_v19 = vadd.f32 %v5371_v13, %v265_v18  ;;  %v308_v20 = vadd.f32 %v5373_v14, %v265_v18  ;;  %v761_v51 = vpop.permute.xlu2 %760  ;;  %v5431_v18 = vsel %vm333_vm10, %v317_v44, %v349_v61 }
  0x87   : > { %vm327_vm0 = vcmp.gt.f32.partialorder %v311_v16, 0.0  ;;  %vm328_vm1 = vcmp.gt.f32.partialorder %v312_v17, 0.0  ;;  %v343_v21 = vmul.f32 0.2, %v311_v16  ;;  %v344_v22 = vmul.f32 0.2, %v312_v17 }
  0x88   : > { %vm323_vm2 = vcmp.gt.f32.partialorder %v307_v19, 0.0  ;;  %vm324_vm3 = vcmp.gt.f32.partialorder %v308_v20, 0.0  ;;  %v339_v24 = vmul.f32 0.2, %v307_v19  ;;  %v340_v25 = vmul.f32 0.2, %v308_v20 }
  0x89   : > { %v5379_v26 = vsel %vm327_vm0, %v311_v16, %v343_v21  ;;  %v5381_v27 = vsel %vm328_vm1, %v312_v17, %v344_v22  ;;  %v5425_v16 = vsel %vm331_vm8, %v315_v40, %v347_v57  ;;  %v5428_v17 = vsel %vm332_vm9, %v316_v41, %v348_v58 }
  0x8a   : > { %v377_v29 = vmax.f32 %v5379_v26, %v5381_v27  ;;  %v5388_v30 = vsel %vm323_vm2, %v307_v19, %v339_v24  ;;  %v5390_v31 = vsel %vm324_vm3, %v308_v20, %v340_v25  ;;  %v5433_v19 = vsel %vm334_vm11, %v318_v45, %v350_v62 }
  0x8b   : > { %v371_v33 = vmax.f32 %v5388_v30, %v5390_v31  ;;  %v817_v21 = vmul.f32 0.2, %v785_v63  ;;  %v383_v23 = vmax.f32 %v5425_v16, %v5428_v17  ;;  %v386_v24 = vmax.f32 %v5431_v18, %v5433_v19 }
  0x8c   : > { %v280_v32 = vpop.permute.xlu1 %279  ;;  %378 = vmax.xlane.f32.xlu1 %v377_v29  ;;  %v5272_v29 = vmov 2  }
  0x8d   : > { %v313_v34 = vadd.f32 %v5371_v13, %v280_v32  ;;  %v314_v35 = vadd.f32 %v5373_v14, %v280_v32  ;;  %v270_v36 = vpop.permute.xlu0 %269  ;;  %372 = vmax.xlane.f32.xlu2 %v371_v33  ;;  %4845 = vset.pattern.permute.xlu0 %v5272_v29 }
  0x8e   : > { %v309_v38 = vadd.f32 %v5371_v13, %v270_v36  ;;  %v310_v39 = vadd.f32 %v5373_v14, %v270_v36  ;;  %4843 = vset.pattern.permute.xlu1 %v5272_v29  ;;  %v769_v32 = vpop.permute.xlu2 %768  ;;  %4844 = vset.pattern.permute.xlu2 %v5272_v29  ;;  %v5449_v36 = vsel %vm801_vm15, %v785_v63, %v817_v21 }
  0x8f   : > { %vm329_vm4 = vcmp.gt.f32.partialorder %v313_v34, 0.0  ;;  %vm330_vm5 = vcmp.gt.f32.partialorder %v314_v35, 0.0  ;;  %v345_v42 = vmul.f32 0.2, %v313_v34  ;;  %v346_v43 = vmul.f32 0.2, %v314_v35 }
  0x90   : > { %vm325_vm6 = vcmp.gt.f32.partialorder %v309_v38, 0.0  ;;  %vm326_vm7 = vcmp.gt.f32.partialorder %v310_v39, 0.0  ;;  %v341_v46 = vmul.f32 0.2, %v309_v38  ;;  %v342_v47 = vmul.f32 0.2, %v310_v39 }
  0x91   : > { %v5406_v49 = vsel %vm329_vm4, %v313_v34, %v345_v42  ;;  %v5408_v50 = vsel %vm330_vm5, %v314_v35, %v346_v43  ;;  %v795_v21 = vadd.f32 %v5404_v48, %v769_v32 }
  0x92   : > { %v380_v52 = vmax.f32 %v5406_v49, %v5408_v50  ;;  %v5412_v53 = vsel %vm325_vm6, %v309_v38, %v341_v46  ;;  %v5414_v54 = vsel %vm326_vm7, %v310_v39, %v342_v47  ;;  %v790_v38 = vadd.f32 %v5396_v37, %v761_v51 }
  0x93   : > { %v374_v56 = vmax.f32 %v5412_v53, %v5414_v54  ;;  %v791_v39 = vadd.f32 %v5404_v48, %v761_v51  ;;  %vm811_vm11 = vcmp.gt.f32.partialorder %v795_v21, 0.0 }
  0x94   : > { %v300_v55 = vpop.permute.xlu1 %299  ;;  %vm806_vm4 = vcmp.gt.f32.partialorder %v790_v38, 0.0 }
  0x95   : > { %v295_v60 = vpop.permute.xlu0 %294  ;;  %381 = vmax.xlane.f32.xlu2 %v380_v52  ;;  %375 = vmax.xlane.f32.xlu0 %v374_v56  ;;  %v321_v10 = vadd.f32 %v5371_v13, %v300_v55  ;;  %v322_v11 = vadd.f32 %v5373_v14, %v300_v55  ;;  %v822_v56 = vmul.f32 0.2, %v790_v38  ;;  %v823_v57 = vmul.f32 0.2, %v791_v39 }
  0x96   : > { %v319_v0 = vadd.f32 %v5371_v13, %v295_v60  ;;  %v320_v9 = vadd.f32 %v5373_v14, %v295_v60  ;;  %v816_v14 = vmul.f32 0.2, %v784_v59  ;;  %vm807_vm5 = vcmp.gt.f32.partialorder %v791_v39, 0.0 }
  0x97   : > { %v353_v25 = vmul.f32 0.2, %v321_v10  ;;  %v354_v28 = vmul.f32 0.2, %v322_v11  ;;  %vm337_vm0 = vcmp.gt.f32.partialorder %v321_v10, 0.0  ;;  %vm338_vm1 = vcmp.gt.f32.partialorder %v322_v11, 0.0 }
  0x98   : > { %vm335_vm12 = vcmp.gt.f32.partialorder %v319_v0, 0.0  ;;  %vm336_vm13 = vcmp.gt.f32.partialorder %v320_v9, 0.0  ;;  %v351_v12 = vmul.f32 0.2, %v319_v0  ;;  %v352_v15 = vmul.f32 0.2, %v320_v9 }
  0x99   : > { %v5446_v35 = vsel %vm800_vm14, %v784_v59, %v816_v14  ;;  %v5457_v44 = vsel %vm337_vm0, %v321_v10, %v353_v25  ;;  %v5459_v45 = vsel %vm338_vm1, %v322_v11, %v354_v28  ;;  %v5473_v10 = vsel %vm806_vm4, %v790_v38, %v822_v56 }
  0x9a   : > { %v5435_v20 = vsel %vm335_vm12, %v319_v0, %v351_v12  ;;  %v5437_v13 = vsel %vm336_vm13, %v320_v9, %v352_v15  ;;  %v848_v52 = vmax.f32 %v5446_v35, %v5449_v36  ;;  %v392_v58 = vmax.f32 %v5457_v44, %v5459_v45  ;;  %v777_v9 = vpop.permute.xlu2 %776 }
  0x9b   : > { %v389_v22 = vmax.f32 %v5435_v20, %v5437_v13  ;;  %v5475_v11 = vsel %vm807_vm5, %v791_v39, %v823_v57  ;;  %v794_v14 = vadd.f32 %v5396_v37, %v769_v32  ;;  %v799_v25 = vadd.f32 %v5404_v48, %v777_v9 }
  0x9c   : > { %v857_v32 = vmax.f32 %v5473_v10, %v5475_v11 }
  0x9d   : > { %390 = vmax.xlane.f32.xlu1 %v389_v22  ;;  %v757_v33 = vpop.permute.xlu1 %756  ;;  %384 = vmax.xlane.f32.xlu2 %v383_v23  ;;  %vm810_vm10 = vcmp.gt.f32.partialorder %v794_v14, 0.0  ;;  %v826_v39 = vmul.f32 0.2, %v794_v14  ;;  %vm815_vm13 = vcmp.gt.f32.partialorder %v799_v25, 0.0 }
  0x9e   : > { %387 = vmax.xlane.f32.xlu0 %v386_v24  ;;  %v753_v34 = vpop.permute.xlu0 %752  ;;  %v788_v42 = vadd.f32 %v5396_v37, %v757_v33  ;;  %v789_v43 = vadd.f32 %v5404_v48, %v757_v33  ;;  %v798_v24 = vadd.f32 %v5396_v37, %v777_v9  ;;  %v4699_v9 = vld [vmem:[%s7356_s1 + $0x30] sm:$0xff] }
  0x9f   : > { %v786_v40 = vadd.f32 %v5396_v37, %v753_v34  ;;  %v787_v41 = vadd.f32 %v5404_v48, %v753_v34  ;;  %v5498_v56 = vsel %vm810_vm10, %v794_v14, %v826_v39  ;;  %v4703_v14 = vld [vmem:[%s7356_s1 + $0x50] sm:$0xff]  ;;  %v4701_v39 = vld [vmem:[%s7356_s1 + $0x40] sm:$0xff] }
  0xa0   : > { %v820_v61 = vmul.f32 0.2, %v788_v42  ;;  %v821_v62 = vmul.f32 0.2, %v789_v43  ;;  %vm804_vm6 = vcmp.gt.f32.partialorder %v788_v42, 0.0  ;;  %vm805_vm7 = vcmp.gt.f32.partialorder %v789_v43, 0.0 }
  0xa1   : > { %vm802_vm2 = vcmp.gt.f32.partialorder %v786_v40, 0.0  ;;  %vm803_vm3 = vcmp.gt.f32.partialorder %v787_v41, 0.0  ;;  %v818_v46 = vmul.f32 0.2, %v786_v40  ;;  %v819_v47 = vmul.f32 0.2, %v787_v41 }
  0xa2   : > { %v5479_v22 = vsel %vm804_vm6, %v788_v42, %v820_v61  ;;  %v5481_v23 = vsel %vm805_vm7, %v789_v43, %v821_v62  ;;  %v830_v43 = vmul.f32 0.2, %v798_v24  ;;  %vm814_vm12 = vcmp.gt.f32.partialorder %v798_v24, 0.0 }
  0xa3   : > { %v5463_v51 = vsel %vm802_vm2, %v786_v40, %v818_v46  ;;  %v5465_v55 = vsel %vm803_vm3, %v787_v41, %v819_v47  ;;  %v854_v34 = vmax.f32 %v5479_v22, %v5481_v23  ;;  %v827_v40 = vmul.f32 0.2, %v795_v21 }
  0xa4   : > { %v851_v59 = vmax.f32 %v5463_v51, %v5465_v55  ;;  %v831_v46 = vmul.f32 0.2, %v799_v25 }
  0xa5   : > { %v765_v60 = vpop.permute.xlu1 %764  ;;  %393 = vmax.xlane.f32.xlu2 %v392_v58  ;;  %v5501_v57 = vsel %vm811_vm11, %v795_v21, %v827_v40  ;;  %v4715_v21 = vld [vmem:[%s7356_s1 + $0xb0] sm:$0xff]  ;;  %v4713_v40 = vld [vmem:[%s7356_s1 + $0xa0] sm:$0xff] }
  0xa6   : > { %849 = vmax.xlane.f32.xlu0 %v848_v52  ;;  %v792_v63 = vadd.f32 %v5396_v37, %v765_v60  ;;  %v793_v0 = vadd.f32 %v5404_v48, %v765_v60  ;;  %852 = vmax.xlane.f32.xlu1 %v851_v59  ;;  %v5509_v59 = vsel %vm815_vm13, %v799_v25, %v831_v46  ;;  %v4694_v25 = vld [vmem:[%s7356_s1 + $0x8] sm:$0xff] }
  0xa7   : > { %v863_v61 = vmax.f32 %v5498_v56, %v5501_v57 }
  0xa8   : > { %vm808_vm8 = vcmp.gt.f32.partialorder %v792_v63, 0.0  ;;  %vm809_vm9 = vcmp.gt.f32.partialorder %v793_v0, 0.0  ;;  %v824_v12 = vmul.f32 0.2, %v792_v63  ;;  %v825_v15 = vmul.f32 0.2, %v793_v0 }
  0xaa   : > { %v5485_v28 = vsel %vm808_vm8, %v792_v63, %v824_v12  ;;  %v5487_v29 = vsel %vm809_vm9, %v793_v0, %v825_v15  ;;  %v4700_v63 = vld [vmem:[%s7356_s1 + $0x38] sm:$0xff]  ;;  %v4707_v12 = vld [vmem:[%s7356_s1 + $0x70] sm:$0xff] }
  0xab   : > { %v860_v33 = vmax.f32 %v5485_v28, %v5487_v29  ;;  %v4708_v0 = vld [vmem:[%s7356_s1 + $0x78] sm:$0xff]  ;;  %671 = vmatpush.bf16.msra.mxu0 %v4700_v63  ;;  %v4719_v63 = vld [vmem:[%s7356_s1 + $0xd0] sm:$0xff] }
  0xac   : > { %700 = vmatpush.bf16.msra.mxu1 %v4708_v0  ;;  %v4724_v15 = vld [vmem:[%s7356_s1 + $0xf8] sm:$0xff] }
  0xad   : > { %v773_v38 = vpop.permute.xlu1 %772  ;;  %855 = vmax.xlane.f32.xlu2 %v854_v34  ;;  %1142 = vmatpush.bf16.msra.mxu3 %v4724_v15  ;;  %v4714_v34 = vld [vmem:[%s7356_s1 + $0xa8] sm:$0xff] }
  0xae   : > { %858 = vmax.xlane.f32.xlu0 %v857_v32  ;;  %v796_v41 = vadd.f32 %v5396_v37, %v773_v38  ;;  %v797_v42 = vadd.f32 %v5404_v48, %v773_v38  ;;  %861 = vmax.xlane.f32.xlu1 %v860_v33  ;;  %v5507_v48 = vsel %vm814_vm12, %v798_v24, %v830_v43  ;;  %v4723_v24 = vld [vmem:[%s7356_s1 + $0xf0] sm:$0xff]  ;;  %v4702_v33 = vld [vmem:[%s7356_s1 + $0x48] sm:$0xff]  ;;  %v4693_v38 = vld [vmem:[%s7356_s1] sm:$0xff] }
  0xaf   : > { %v869_v62 = vmax.f32 %v5507_v48, %v5509_v59  ;;  %672 = vmatpush.bf16.msra.mxu0 %v4699_v9  ;;  %v4722_v32 = vld [vmem:[%s7356_s1 + $0xe8] sm:$0xff]  ;;  %v4720_v43 = vld [vmem:[%s7356_s1 + $0xd8] sm:$0xff] }
  0xb0   : > { %vm812_vm14 = vcmp.gt.f32.partialorder %v796_v41, 0.0  ;;  %vm813_vm15 = vcmp.gt.f32.partialorder %v797_v42, 0.0  ;;  %v828_v47 = vmul.f32 0.2, %v796_v41  ;;  %v829_v52 = vmul.f32 0.2, %v797_v42  ;;  %701 = vmatpush.bf16.msra.mxu1 %v4707_v12 }
  0xb1   : > { %1143 = vmatpush.bf16.msra.mxu3 %v4723_v24  ;;  %v444_v12 = vld [vmem:[%s5608_s25 + $0x8] sm:$0xff] }
  0xb2   : > { %v5503_v58 = vsel %vm812_vm14, %v796_v41, %v828_v47  ;;  %v5505_v37 = vsel %vm813_vm15, %v797_v42, %v829_v52  ;;  %v4721_v41 = vld [vmem:[%s7356_s1 + $0xe0] sm:$0xff]  ;;  %v4712_v42 = vld [vmem:[%s7356_s1 + $0x98] sm:$0xff]  ;;  %v450_v24 = vunpack.c.1.s8 %v444_v12 }
  0xb3   : > { %v866_v60 = vmax.f32 %v5503_v58, %v5505_v37 }
  0xb5   : > { %864 = vmax.xlane.f32.xlu2 %v863_v61  ;;  %1144 = vmatpush.bf16.msra.mxu3 %v4722_v32  ;;  %v443_v61 = vld [vmem:[%s5608_s25] sm:$0xff] }
  0xb6   : > { %867 = vmax.xlane.f32.xlu0 %v866_v60  ;;  %870 = vmax.xlane.f32.xlu1 %v869_v62  ;;  %v4711_v62 = vld [vmem:[%s7356_s1 + $0x90] sm:$0xff] }
  0xb9   : > { %1145 = vmatpush.bf16.msra.mxu3 %v4721_v41 }
  0xbd   : > { %1146 = vmatpush.bf16.msra.mxu3 %v4720_v43  ;;  %v453_v43 = vunpack.c.3.s8 %v443_v61 }
  0xc1   : > { %1147 = vmatpush.bf16.msra.mxu3 %v4719_v63 }
  0xca   : > { %1198 = vperm.xlu0 %4845, %v5332_v2   ;;  %v4698_v2 = vld [vmem:[%s7356_s1 + $0x28] sm:$0xff] }
  0xcb   : > { %673 = vmatpush.bf16.msra.mxu0 %v4698_v2 }
  0xcd   : > { %1194 = vperm.xlu2 %4844, %v5347_v6   ;;  %v4706_v6 = vld [vmem:[%s7356_s1 + $0x68] sm:$0xff] }
  0xce   : > { %702 = vmatpush.bf16.msra.mxu1 %v4706_v6 }
  0xcf   : > { %1190 = vperm.xlu1 %4843, %v5335_v3   ;;  %v4705_v3 = vld [vmem:[%s7356_s1 + $0x60] sm:$0xff] }
  0xd2   : > { %703 = vmatpush.bf16.msra.mxu1 %v4705_v3  ;;  %v452_v3 = vunpack.c.2.s8 %v444_v12 }
  0xd5   : > { %1206 = vperm.xlu2 %4844, %v5329_v1   ;;  %v4697_v1 = vld [vmem:[%s7356_s1 + $0x20] sm:$0xff] }
  0xd6   : > { %674 = vmatpush.bf16.msra.mxu0 %v4697_v1  ;;  %v451_v1 = vunpack.c.2.s8 %v443_v61 }
  0xd7   : > { %1202 = vperm.xlu1 %4843, %v5344_v5   ;;  %v4704_v5 = vld [vmem:[%s7356_s1 + $0x58] sm:$0xff] }
  0xd8   : > { %704 = vmatpush.bf16.msra.mxu1 %v4704_v5  ;;  %v4710_v5 = vld [vmem:[%s7356_s1 + $0x88] sm:$0xff] }
  0xdc   : > { %705 = vmatpush.bf16.msra.mxu1 %v4703_v14  ;;  %v5630_v14 = vcvt.s32.f32 %v452_v3 }
  0xdd   : > { %1214 = vperm.xlu2 %4844, %v5356_v8   ;;  %v4716_v8 = vld [vmem:[%s7356_s1 + $0xb8] sm:$0xff] }
  0xde   : > { %1113 = vmatpush.bf16.msra.mxu2 %v4716_v8  ;;  %v5628_v8 = vcvt.s32.f32 %v451_v1 }
  0xdf   : > { %1210 = vperm.xlu1 %4843, %v5341_v4   ;;  %v4696_v4 = vld [vmem:[%s7356_s1 + $0x18] sm:$0xff] }
  0xe0   : > { %675 = vmatpush.bf16.msra.mxu0 %v4696_v4  ;;  %706 = vmatpush.bf16.msra.mxu1 %v4702_v33  ;;  %v447_v4 = vunpack.c.0.s8 %v443_v61  ;;  %v4709_v33 = vld [vmem:[%s7356_s1 + $0x80] sm:$0xff] }
  0xe2   : > { %1114 = vmatpush.bf16.msra.mxu2 %v4715_v21  ;;  %v5632_v21 = vcvt.s32.f32 %v447_v4 }
  0xe4   : > { %707 = vmatpush.bf16.msra.mxu1 %v4701_v39 }
  0xe6   : > { %1115 = vmatpush.bf16.msra.mxu2 %v4714_v34  ;;  %v4717_v34 = vld [vmem:[%s7356_s1 + $0xc0] sm:$0xff] }
  0xe7   : > { %1218 = vperm.xlu1 %4843, %v5353_v7   ;;  %v4695_v7 = vld [vmem:[%s7356_s1 + $0x10] sm:$0xff] }
  0xe8   : > { %676 = vmatpush.bf16.msra.mxu0 %v4695_v7 }
  0xea   : > { %1116 = vmatpush.bf16.msra.mxu2 %v4713_v40 }
  0xec   : > { %677 = vmatpush.bf16.msra.mxu0 %v4694_v25  ;;  %v449_v25 = vunpack.c.1.s8 %v443_v61 }
  0xee   : > { %1117 = vmatpush.bf16.msra.mxu2 %v4712_v42 }
  0xf0   : > { %678 = vmatpush.bf16.msra.mxu0 %v4693_v38 }
  0xf2   : > { %1118 = vmatpush.bf16.msra.mxu2 %v4711_v62 }
  0xf6   : > { %1119 = vmatpush.bf16.msra.mxu2 %v4710_v5 }
  0xfa   : > { %1120 = vmatpush.bf16.msra.mxu2 %v4709_v33 }
  0xff   : > { %v379_v46 = vpop.xlane.xlu1 %378 }
 0x100   : > { %v399_v47 = vsub.f32 %v5379_v26, %v379_v46  ;;  %v400_v52 = vsub.f32 %v5381_v27, %v379_v46  ;;  %v373_v60 = vpop.xlane.xlu2 %372  ;;  %v454_v46 = vunpack.c.3.s8 %v444_v12 }
 0x101   : > { %v395_v0 = vsub.f32 %v5388_v30, %v373_v60  ;;  %v396_v9 = vsub.f32 %v5390_v31, %v373_v60  ;;  %v4718_v30 = vld [vmem:[%s7356_s1 + $0xc8] sm:$0xff]  ;;  %v448_v31 = vunpack.c.0.s8 %v444_v12  ;;  %v5661_v12 = vcvt.s32.f32 %v450_v24 }
 0x102   : > { %v419_v2 = vmul.f32 1.442695, %v399_v47  ;;  %v421_v6 = vmul.f32 1.442695, %v400_v52  ;;  %1148 = vmatpush.bf16.msra.mxu3 %v4718_v30  ;;  %v5672_v3 = vcvt.s32.f32 %v454_v46 }
 0x103   : > { %v411_v26 = vmul.f32 1.442695, %v395_v0  ;;  %v413_v27 = vmul.f32 1.442695, %v396_v9  ;;  %v5644_v42 = vcvt.s32.f32 %v448_v31  ;;  %v5656_v0 = vld [vmem:[%s5608_s25 + $0x18] sm:$0xff] }
 0x104   : > { %4862 = vpow2.f32 %v419_v2  ;;  %v5663_v2 = vcvt.s32.f32 %v449_v25  ;;  %v458_v5 = vunpack.c.1.s8 %v5656_v0 }
 0x105   : > { %4864 = vpow2.f32 %v421_v6 }
 0x106   : > { %4866 = vpow2.f32 %v411_v26  ;;  %1149 = vmatpush.bf16.msra.mxu3 %v4717_v34 }
 0x107   : > { %4868 = vpow2.f32 %v413_v27  ;;  %v5670_v27 = vcvt.s32.f32 %v453_v43 }
 0x108   : > { %v382_v15 = vpop.xlane.xlu2 %381  ;;  %v376_v7 = vpop.xlane.xlu0 %375 }
 0x109   : > { %v401_v32 = vsub.f32 %v5406_v49, %v382_v15  ;;  %v402_v38 = vsub.f32 %v5408_v50, %v382_v15  ;;  %v397_v39 = vsub.f32 %v5412_v53, %v376_v7  ;;  %v398_v40 = vsub.f32 %v5414_v54, %v376_v7  ;;  %v5653_v54 = vld [vmem:[%s5608_s25 + $0x10] sm:$0xff] }
 0x10a   : > { %v4863_v41 = vpop.eup %4862  ;;  %v457_v4 = vunpack.c.1.s8 %v5653_v54 }
 0x10b   : > { %v4865_v47 = vpop.eup %4864  ;;  %v423_v52 = vmul.f32 1.442695, %v401_v32  ;;  %v425_v60 = vmul.f32 1.442695, %v402_v38  ;;  %v415_v62 = vmul.f32 1.442695, %v397_v39  ;;  %v5647_v49 = vmul.f32 %v4863_v41, %v5628_v8 }
 0x10c   : > { %v4867_v50 = vpop.eup %4866  ;;  %v417_v53 = vmul.f32 1.442695, %v398_v40  ;;  %v5650_v63 = vmul.f32 %v4865_v47, %v5630_v14  ;;  %v455_v39 = vunpack.c.0.s8 %v5653_v54 }
 0x10d   : > { %v4869_v61 = vpop.eup %4868  ;;  %4870 = vpow2.f32 %v423_v52  ;;  %v5659_v9 = vmul.f32 %v4867_v50, %v5632_v21  ;;  %v5696_v50 = vcvt.s32.f32 %v458_v5 }
 0x10e   : > { %4872 = vpow2.f32 %v425_v60  ;;  %v501_v6 = vadd.f32 %v5650_v63, %v5647_v49  ;;  %v5668_v26 = vmul.f32 %v4869_v61, %v5644_v42 }
 0x10f   : > { %4874 = vpow2.f32 %v415_v62  ;;  %7375 = vst [vmem:[#allocation2_spill] sm:$0xff] %v5696_v50 }
 0x110   : > { %v391_v1 = vpop.xlane.xlu1 %390  ;;  %4876 = vpow2.f32 %v417_v53  ;;  %v385_v30 = vpop.xlane.xlu2 %384  ;;  %502 = vadd.xlane.f32.xlu2 %v501_v6  ;;  %v495_v24 = vadd.f32 %v5668_v26, %v5659_v9  ;;  %v5699_v6 = vcvt.s32.f32 %v455_v39 }
 0x111   : > { %v407_v31 = vsub.f32 %v5435_v20, %v391_v1  ;;  %v408_v15 = vsub.f32 %v5437_v13, %v391_v1  ;;  %v388_v7 = vpop.xlane.xlu0 %387  ;;  %v403_v25 = vsub.f32 %v5425_v16, %v385_v30  ;;  %v404_v33 = vsub.f32 %v5428_v17, %v385_v30 }
 0x112   : > { %v405_v34 = vsub.f32 %v5431_v18, %v388_v7  ;;  %v406_v32 = vsub.f32 %v5433_v19, %v388_v7  ;;  %496 = vadd.xlane.f32.xlu0 %v495_v24  ;;  %v456_v20 = vunpack.c.0.s8 %v5656_v0  ;;  %v459_v13 = vunpack.c.2.s8 %v5653_v54 }
 0x113   : > { %v435_v38 = vmul.f32 1.442695, %v407_v31  ;;  %v4871_v40 = vpop.eup %4870  ;;  %v427_v41 = vmul.f32 1.442695, %v403_v25  ;;  %v429_v43 = vmul.f32 1.442695, %v404_v33  ;;  %v460_v16 = vunpack.c.2.s8 %v5656_v0 }
 0x114   : > { %v437_v46 = vmul.f32 1.442695, %v408_v15  ;;  %v4873_v47 = vpop.eup %4872  ;;  %v431_v17 = vmul.f32 1.442695, %v405_v34  ;;  %v5689_v18 = vmul.f32 %v4871_v40, %v5670_v27  ;;  %v5691_v19 = vcvt.s32.f32 %v457_v4 }
 0x115   : > { %4878 = vpow2.f32 %v435_v38  ;;  %v4875_v52 = vpop.eup %4874  ;;  %v433_v60 = vmul.f32 1.442695, %v406_v32  ;;  %v5694_v62 = vmul.f32 %v4873_v47, %v5672_v3  ;;  %v5701_v1 = vcvt.s32.f32 %v456_v20 }
 0x116   : > { %4880 = vpow2.f32 %v427_v41  ;;  %v4877_v53 = vpop.eup %4876  ;;  %v481_v61 = vmul.f32 %v4875_v52, %v5663_v2  ;;  %v5706_v31 = vcvt.s32.f32 %v459_v13  ;;  %v5709_v24 = vcvt.s32.f32 %v460_v16 }
 0x117   : > { %4882 = vpow2.f32 %v429_v43  ;;  %v482_v4 = vmul.f32 %v4877_v53, %v5661_v12  ;;  %v504_v30 = vadd.f32 %v5694_v62, %v5689_v18  ;;  %v461_v25 = vunpack.c.3.s8 %v5653_v54 }
 0x118   : > { %4884 = vpow2.f32 %v437_v46  ;;  %7376 = vst [vmem:[#allocation3_spill] sm:$0xff] %v5706_v31  ;;  %v394_v15 = vpop.xlane.xlu2 %393  ;;  %v535_v7 = vpack.c.bf16 %v481_v61, %v5659_v9  ;;  %v462_v9 = vunpack.c.3.s8 %v5656_v0 }
 0x119   : > { %4886 = vpow2.f32 %v431_v17  ;;  %v850_v5 = vpop.xlane.xlu0 %849  ;;  %7377 = vst [vmem:[#allocation4_spill] sm:$0xff] %v5709_v24  ;;  %v409_v33 = vsub.f32 %v5457_v44, %v394_v15  ;;  %v410_v34 = vsub.f32 %v5459_v45, %v394_v15  ;;  %v853_v38 = vpop.xlane.xlu1 %852  ;;  %v536_v13 = vpack.c.bf16 %v482_v4, %v5668_v26 }
 0x11a   : > { %4888 = vpow2.f32 %v433_v60  ;;  %v872_v32 = vsub.f32 %v5446_v35, %v850_v5  ;;  %v873_v20 = vsub.f32 %v5449_v36, %v850_v5  ;;  %v498_v40 = vadd.f32 %v482_v4, %v481_v61  ;;  %679 = vmatmul.bf16.vlgmr.msra.gmra.mxu0 %v535_v7  ;;  %505 = vadd.xlane.f32.xlu0 %v504_v30 }
 0x11b   : > { %v4879_v39 = vpop.eup %4878  ;;  %v439_v54 = vmul.f32 1.442695, %v409_v33  ;;  %v441_v43 = vmul.f32 1.442695, %v410_v34  ;;  %v874_v44 = vsub.f32 %v5463_v51, %v853_v38  ;;  %708 = vmatmul.bf16.vlgmr.msra.gmra.mxu1 %v536_v13  ;;  %v875_v35 = vsub.f32 %v5465_v55, %v853_v38 }
 0x11c   : > { %v4881_v41 = vpop.eup %4880  ;;  %v888_v46 = vmul.f32 1.442695, %v872_v32  ;;  %v890_v16 = vmul.f32 1.442695, %v873_v20  ;;  %499 = vadd.xlane.f32.xlu1 %v498_v40  ;;  %v5724_v26 = vmul.f32 %v4879_v39, %v5706_v31  ;;  %v5735_v61 = vcvt.s32.f32 %v461_v25 }
 0x11d   : > { %v4883_v45 = vpop.eup %4882  ;;  %v5721_v36 = vmul.f32 %v4881_v41, %v5699_v6  ;;  %4890 = vpow2.f32 %v439_v54  ;;  %v892_v0 = vmul.f32 1.442695, %v874_v44  ;;  %v894_v51 = vmul.f32 1.442695, %v875_v35 }
 0x11e   : > { %v4885_v47 = vpop.eup %4884  ;;  %v5727_v17 = vmul.f32 %v4883_v45, %v5701_v1  ;;  %4892 = vpow2.f32 %v441_v43  ;;  %7378 = vst [vmem:[#allocation5_spill] sm:$0xff] %v5735_v61  ;;  %v5737_v4 = vcvt.s32.f32 %v462_v9 }
 0x11f   : > { %v4887_v52 = vpop.eup %4886  ;;  %v5730_v60 = vmul.f32 %v4885_v47, %v5709_v24  ;;  %4894 = vpow2.f32 %v888_v46  ;;  %v537_v47 = vpack.c.bf16 %v5689_v18, %v5647_v49 }
 0x120   : > { %v4889_v53 = vpop.eup %4888  ;;  %v5733_v55 = vmul.f32 %v4887_v52, %v5691_v19  ;;  %7379 = vst [vmem:[#allocation6_spill] sm:$0xff] %v5737_v4  ;;  %4896 = vpow2.f32 %v890_v16  ;;  %v856_v30 = vpop.xlane.xlu2 %855  ;;  %v507_v7 = vadd.f32 %v5727_v17, %v5721_v36 }
 0x121   : > { %v859_v15 = vpop.xlane.xlu0 %858  ;;  %v5740_v5 = vmul.f32 %v4889_v53, %v5696_v50  ;;  %v513_v33 = vadd.f32 %v5730_v60, %v5724_v26  ;;  %4898 = vpow2.f32 %v892_v0  ;;  %v876_v34 = vsub.f32 %v5479_v22, %v856_v30  ;;  %v862_v38 = vpop.xlane.xlu1 %861 }
 0x122   : > { %v877_v25 = vsub.f32 %v5481_v23, %v856_v30  ;;  %v878_v32 = vsub.f32 %v5473_v10, %v859_v15  ;;  %4900 = vpow2.f32 %v894_v51  ;;  %v879_v39 = vsub.f32 %v5475_v11, %v859_v15 }
 0x123   : > { %v510_v20 = vadd.f32 %v5740_v5, %v5733_v55  ;;  %514 = vadd.xlane.f32.xlu0 %v513_v33  ;;  %v880_v13 = vsub.f32 %v5485_v28, %v862_v38  ;;  %v4891_v40 = vpop.eup %4890  ;;  %v896_v9 = vmul.f32 1.442695, %v876_v34  ;;  %v881_v22 = vsub.f32 %v5487_v29, %v862_v38 }
 0x124   : > { %v898_v41 = vmul.f32 1.442695, %v877_v25  ;;  %v900_v54 = vmul.f32 1.442695, %v878_v32  ;;  %v4893_v43 = vpop.eup %4892  ;;  %v902_v23 = vmul.f32 1.442695, %v879_v39  ;;  %508 = vadd.xlane.f32.xlu1 %v507_v7  ;;  %v5755_v10 = vmul.f32 %v4891_v40, %v5735_v61 }
 0x125   : > { %511 = vadd.xlane.f32.xlu2 %v510_v20  ;;  %v4895_v11 = vpop.eup %4894  ;;  %4902 = vpow2.f32 %v896_v9  ;;  %v904_v46 = vmul.f32 1.442695, %v880_v13  ;;  %v5758_v44 = vmul.f32 %v4893_v43, %v5737_v4  ;;  %v906_v45 = vmul.f32 1.442695, %v881_v22 }
 0x126   : > { %v4897_v28 = vpop.eup %4896  ;;  %4904 = vpow2.f32 %v898_v41  ;;  %v920_v16 = vmul.f32 %v4895_v11, %v5632_v21  ;;  %v538_v51 = vpack.c.bf16 %v5694_v62, %v5650_v63 }
 0x127   : > { %v4899_v35 = vpop.eup %4898  ;;  %4906 = vpow2.f32 %v900_v54  ;;  %v921_v29 = vmul.f32 %v4897_v28, %v5644_v42  ;;  %v516_v53 = vadd.f32 %v5758_v44, %v5755_v10  ;;  %v4108_v28 = vld [vmem:[%s7357_s2 + $0x2] ss:$8 sm:$0x3] }
 0x128   : > { %v4901_v0 = vpop.eup %4900  ;;  %4908 = vpow2.f32 %v902_v23  ;;  %v865_v52 = vpop.xlane.xlu2 %864  ;;  %v922_v15 = vmul.f32 %v4899_v35, %v5663_v2 }
 0x129   : > { %v868_v30 = vpop.xlane.xlu0 %867  ;;  %4910 = vpow2.f32 %v904_v46  ;;  %v882_v7 = vsub.f32 %v5498_v56, %v865_v52  ;;  %v883_v33 = vsub.f32 %v5501_v57, %v865_v52  ;;  %v936_v34 = vadd.f32 %v921_v29, %v920_v16  ;;  %v871_v25 = vpop.xlane.xlu1 %870 }
 0x12a   : > { %4912 = vpow2.f32 %v906_v45  ;;  %684 = vmatmul.bf16.gmra.mxu0 %v537_v47  ;;  %v886_v49 = vsub.f32 %v5507_v48, %v871_v25  ;;  %v887_v18 = vsub.f32 %v5509_v59, %v871_v25  ;;  %v884_v63 = vsub.f32 %v5503_v58, %v868_v30 }
 0x12b   : > { %v4903_v62 = vpop.eup %4902  ;;  %v908_v32 = vmul.f32 1.442695, %v882_v7  ;;  %v910_v38 = vmul.f32 1.442695, %v883_v33  ;;  %v885_v39 = vsub.f32 %v5505_v37, %v868_v30  ;;  %v976_v20 = vpack.c.bf16 %v922_v15, %v920_v16  ;;  %713 = vmatmul.bf16.gmra.mxu1 %v538_v51 }
 0x12c   : > { %v4905_v13 = vpop.eup %4904  ;;  %517 = vadd.xlane.f32.xlu1 %v516_v53  ;;  %v916_v56 = vmul.f32 1.442695, %v886_v49  ;;  %v918_v57 = vmul.f32 1.442695, %v887_v18  ;;  %v912_v40 = vmul.f32 1.442695, %v884_v63  ;;  %v923_v9 = vmul.f32 %v4901_v0, %v5661_v12 }
 0x12d   : > { %v4907_v41 = vpop.eup %4906  ;;  %4914 = vpow2.f32 %v908_v32  ;;  %937 = vadd.xlane.f32.xlu2 %v936_v34  ;;  %v914_v48 = vmul.f32 1.442695, %v885_v39  ;;  %1121 = vmatmul.bf16.vlgmr.msra.gmra.mxu2 %v976_v20  ;;  %v924_v58 = vmul.f32 %v4903_v62, %v5628_v8  ;;  %v5778_v59 = vmul.f32 %v4905_v13, %v5630_v14 }
 0x12e   : > { %v4909_v37 = vpop.eup %4908  ;;  %4916 = vpow2.f32 %v910_v38  ;;  %v977_v54 = vpack.c.bf16 %v923_v9, %v921_v29  ;;  %v939_v22 = vadd.f32 %v923_v9, %v922_v15  ;;  %v926_v43 = vmul.f32 %v4907_v41, %v5670_v27 }
 0x12f   : > { %v4911_v23 = vpop.eup %4910  ;;  %4918 = vpow2.f32 %v916_v56  ;;  %v927_v11 = vmul.f32 %v4909_v37, %v5672_v3  ;;  %v942_v45 = vadd.f32 %v5778_v59, %v924_v58  ;;  %v5792_v0 = vperm.slane %v4108_v28, 0 }
 0x130   : > { %v4913_v46 = vpop.eup %4912  ;;  %4920 = vpow2.f32 %v918_v57  ;;  %1150 = vmatmul.bf16.vlgmr.msra.gmra.mxu3 %v977_v54  ;;  %940 = vadd.xlane.f32.xlu0 %v939_v22  ;;  %v5787_v16 = vmul.f32 %v4911_v23, %v5699_v6  ;;  %v5794_v52 = vperm.slane %v4108_v28, 1  ;;  %v1195_v53 = vpop.permute.xlu2 %1194  ;;  %v539_v63 = vpack.c.bf16 %v5733_v55, %v5721_v36 }
 0x131   : > { %4922 = vpow2.f32 %v912_v40  ;;  %v945_v35 = vadd.f32 %v927_v11, %v926_v43  ;;  %v5790_v29 = vmul.f32 %v4913_v46, %v5701_v1  ;;  %v1228_v49 = vadd.f32 %v5792_v0, %v1195_v53 }
 0x132   : > { %4924 = vpow2.f32 %v914_v48  ;;  %v1229_v18 = vadd.f32 %v5794_v52, %v1195_v53  ;;  %v540_v36 = vpack.c.bf16 %v5740_v5, %v5727_v17  ;;  %v978_v55 = vpack.c.bf16 %v926_v43, %v924_v58 }
 0x133   : > { %v4915_v47 = vpop.eup %4914  ;;  %v948_v30 = vadd.f32 %v5790_v29, %v5787_v16  ;;  %vm1244_vm0 = vcmp.gt.f32.partialorder %v1228_v49, 0.0  ;;  %v1260_v40 = vmul.f32 0.2, %v1228_v49  ;;  %v979_v17 = vpack.c.bf16 %v927_v11, %v5778_v59 }
 0x134   : > { %v4917_v51 = vpop.eup %4916  ;;  %943 = vadd.xlane.f32.xlu1 %v942_v45  ;;  %v5799_v15 = vmul.f32 %v4915_v47, %v5691_v19  ;;  %v1261_v37 = vmul.f32 0.2, %v1229_v18  ;;  %vm1245_vm1 = vcmp.gt.f32.partialorder %v1229_v18, 0.0 }
 0x135   : > { %v4919_v7 = vpop.eup %4918  ;;  %946 = vadd.xlane.f32.xlu2 %v945_v35  ;;  %v5802_v33 = vmul.f32 %v4917_v51, %v5696_v50  ;;  %v5832_v22 = vsel %vm1244_vm0, %v1228_v49, %v1260_v40 }
 0x136   : > { %v4921_v34 = vpop.eup %4920  ;;  %v5814_v39 = vmul.f32 %v4919_v7, %v5735_v61  ;;  %v5834_v43 = vsel %vm1245_vm1, %v1229_v18, %v1261_v37 }
 0x137   : > { %v4923_v25 = vpop.eup %4922  ;;  %v951_v32 = vadd.f32 %v5802_v33, %v5799_v15  ;;  %v5817_v20 = vmul.f32 %v4921_v34, %v5737_v4  ;;  %v1293_v51 = vmax.f32 %v5832_v22, %v5834_v43 }
 0x138   : > { %v4925_v62 = vpop.eup %4924  ;;  %949 = vadd.xlane.f32.xlu0 %v948_v30  ;;  %v5811_v38 = vmul.f32 %v4923_v25, %v5706_v31  ;;  %v1207_v5 = vpop.permute.xlu2 %1206 }
 0x139   : > { %v5820_v13 = vmul.f32 %v4925_v62, %v5709_v24  ;;  %v957_v9 = vadd.f32 %v5817_v20, %v5814_v39  ;;  %v1234_v35 = vadd.f32 %v5792_v0, %v1207_v5  ;;  %v1235_v47 = vadd.f32 %v5794_v52, %v1207_v5 }
 0x13a   : > { %689 = vmatmul.bf16.gmra.mxu0 %v539_v63  ;;  %v541_v62 = vpack.c.bf16 %v5755_v10, %v5724_v26 }
 0x13b   : > { %v954_v56 = vadd.f32 %v5820_v13, %v5811_v38  ;;  %718 = vmatmul.bf16.gmra.mxu1 %v540_v36  ;;  %v1266_v49 = vmul.f32 0.2, %v1234_v35  ;;  %v1267_v18 = vmul.f32 0.2, %v1235_v47  ;;  %vm1250_vm6 = vcmp.gt.f32.partialorder %v1234_v35, 0.0 }
 0x13c   : > { %v1199_v57 = vpop.permute.xlu0 %1198  ;;  %952 = vadd.xlane.f32.xlu1 %v951_v32  ;;  %vm1251_vm7 = vcmp.gt.f32.partialorder %v1235_v47, 0.0  ;;  %v542_v36 = vpack.c.bf16 %v5758_v44, %v5730_v60  ;;  %v981_v44 = vpack.c.bf16 %v5802_v33, %v5790_v29 }
 0x13d   : > { %v1230_v41 = vadd.f32 %v5792_v0, %v1199_v57  ;;  %v1231_v48 = vadd.f32 %v5794_v52, %v1199_v57  ;;  %1126 = vmatmul.bf16.gmra.mxu2 %v978_v55  ;;  %955 = vadd.xlane.f32.xlu2 %v954_v56  ;;  %v980_v57 = vpack.c.bf16 %v5799_v15, %v5787_v16 }
 0x13e   : > { %v5864_v26 = vsel %vm1250_vm6, %v1234_v35, %v1266_v49  ;;  %v5866_v10 = vsel %vm1251_vm7, %v1235_v47, %v1267_v18  ;;  %v982_v49 = vpack.c.bf16 %v5814_v39, %v5811_v38 }
 0x13f   : > { %v1262_v58 = vmul.f32 0.2, %v1230_v41  ;;  %v1263_v54 = vmul.f32 0.2, %v1231_v48  ;;  %vm1246_vm2 = vcmp.gt.f32.partialorder %v1230_v41, 0.0  ;;  %vm1247_vm3 = vcmp.gt.f32.partialorder %v1231_v48, 0.0 }
 0x140   : > { %1155 = vmatmul.bf16.gmra.mxu3 %v979_v17  ;;  %958 = vadd.xlane.f32.xlu0 %v957_v9  ;;  %v1215_v63 = vpop.permute.xlu2 %1214  ;;  %v1302_v16 = vmax.f32 %v5864_v26, %v5866_v10 }
 0x141   : > { %v5836_v23 = vsel %vm1246_vm2, %v1230_v41, %v1262_v58  ;;  %v5838_v46 = vsel %vm1247_vm3, %v1231_v48, %v1263_v54  ;;  %v1191_v28 = vpop.permute.xlu1 %1190  ;;  %v1238_v40 = vadd.f32 %v5792_v0, %v1215_v63  ;;  %v1239_v9 = vadd.f32 %v5794_v52, %v1215_v63 }
 0x142   : > { %v1296_v59 = vmax.f32 %v5836_v23, %v5838_v46  ;;  %v1226_v11 = vadd.f32 %v5792_v0, %v1191_v28  ;;  %v1227_v45 = vadd.f32 %v5794_v52, %v1191_v28 }
 0x143   : > { %v1270_v17 = vmul.f32 0.2, %v1238_v40  ;;  %v1271_v5 = vmul.f32 0.2, %v1239_v9  ;;  %vm1254_vm10 = vcmp.gt.f32.partialorder %v1238_v40, 0.0  ;;  %vm1255_vm11 = vcmp.gt.f32.partialorder %v1239_v9, 0.0 }
 0x144   : > { %1297 = vmax.xlane.f32.xlu1 %v1296_v59  ;;  %vm1242_vm4 = vcmp.gt.f32.partialorder %v1226_v11, 0.0  ;;  %vm1243_vm5 = vcmp.gt.f32.partialorder %v1227_v45, 0.0  ;;  %v1258_v53 = vmul.f32 0.2, %v1226_v11  ;;  %v1259_v30 = vmul.f32 0.2, %v1227_v45 }
 0x145   : > { %v5880_v54 = vsel %vm1254_vm10, %v1238_v40, %v1270_v17  ;;  %v5882_v28 = vsel %vm1255_vm11, %v1239_v9, %v1271_v5  ;;  %v4739_v40 = vld [vmem:[%s7356_s1 + $0x170] sm:$0xff]  ;;  %v4730_v5 = vld [vmem:[%s7356_s1 + $0x128] sm:$0xff] }
 0x146   : > { %v5848_v7 = vsel %vm1242_vm4, %v1226_v11, %v1258_v53  ;;  %v5850_v34 = vsel %vm1243_vm5, %v1227_v45, %v1259_v30 }
 0x147   : > { %v1290_v25 = vmax.f32 %v5848_v7, %v5850_v34 }
 0x148   : > { %1294 = vmax.xlane.f32.xlu0 %v1293_v51  ;;  %v1308_v51 = vmax.f32 %v5880_v54, %v5882_v28 }
 0x149   : > { %v1203_v32 = vpop.permute.xlu1 %1202  ;;  %1291 = vmax.xlane.f32.xlu2 %v1290_v25 }
 0x14a   : > { %694 = vmatmul.bf16.gmra.mxu0 %v541_v62  ;;  %v1232_v55 = vadd.f32 %v5792_v0, %v1203_v32  ;;  %v1233_v56 = vadd.f32 %v5794_v52, %v1203_v32  ;;  %v983_v62 = vpack.c.bf16 %v5817_v20, %v5820_v13  ;;  %v4732_v20 = vld [vmem:[%s7356_s1 + $0x138] sm:$0xff] }
 0x14b   : > { %723 = vmatmul.bf16.gmra.mxu1 %v542_v36  ;;  %v4740_v13 = vld [vmem:[%s7356_s1 + $0x178] sm:$0xff]  ;;  %1555 = vmatpush.bf16.msrb.mxu0 %v4732_v20 }
 0x14c   : > { %vm1248_vm8 = vcmp.gt.f32.partialorder %v1232_v55, 0.0  ;;  %vm1249_vm9 = vcmp.gt.f32.partialorder %v1233_v56, 0.0  ;;  %v1264_v41 = vmul.f32 0.2, %v1232_v55  ;;  %v1265_v60 = vmul.f32 0.2, %v1233_v56  ;;  %1584 = vmatpush.bf16.msrb.mxu1 %v4740_v13 }
 0x14d   : > { %1131 = vmatmul.bf16.gmra.mxu2 %v980_v57  ;;  %v4731_v57 = vld [vmem:[%s7356_s1 + $0x130] sm:$0xff] }
 0x14e   : > { %v5872_v15 = vsel %vm1248_vm8, %v1232_v55, %v1264_v41  ;;  %v5874_v48 = vsel %vm1249_vm9, %v1233_v56, %v1265_v60 }
 0x14f   : > { %v1299_v37 = vmax.f32 %v5872_v15, %v5874_v48  ;;  %1556 = vmatpush.bf16.msrb.mxu0 %v4731_v57 }
 0x150   : > { %1160 = vmatmul.bf16.gmra.mxu3 %v981_v44  ;;  %1303 = vmax.xlane.f32.xlu0 %v1302_v16 }
 0x151   : > { %v1211_v58 = vpop.permute.xlu1 %1210  ;;  %1300 = vmax.xlane.f32.xlu2 %v1299_v37  ;;  %1585 = vmatpush.bf16.msrb.mxu1 %v4739_v40  ;;  %v4726_v40 = vld [vmem:[%s7356_s1 + $0x108] sm:$0xff] }
 0x152   : > { %v1236_v29 = vadd.f32 %v5792_v0, %v1211_v58  ;;  %v1237_v33 = vadd.f32 %v5794_v52, %v1211_v58  ;;  %v4738_v58 = vld [vmem:[%s7356_s1 + $0x168] sm:$0xff] }
 0x153   : > { %1557 = vmatpush.bf16.msrb.mxu0 %v4730_v5 }
 0x154   : > { %vm1252_vm12 = vcmp.gt.f32.partialorder %v1236_v29, 0.0  ;;  %vm1253_vm13 = vcmp.gt.f32.partialorder %v1237_v33, 0.0  ;;  %v1268_v59 = vmul.f32 0.2, %v1236_v29  ;;  %v1269_v11 = vmul.f32 0.2, %v1237_v33 }
 0x155   : > { %1586 = vmatpush.bf16.msrb.mxu1 %v4738_v58 }
 0x156   : > { %v5884_v45 = vsel %vm1252_vm12, %v1236_v29, %v1268_v59  ;;  %v5886_v35 = vsel %vm1253_vm13, %v1237_v33, %v1269_v11  ;;  %v4729_v59 = vld [vmem:[%s7356_s1 + $0x120] sm:$0xff] }
 0x157   : > { %v1305_v47 = vmax.f32 %v5884_v45, %v5886_v35  ;;  %v4737_v11 = vld [vmem:[%s7356_s1 + $0x160] sm:$0xff]  ;;  %1558 = vmatpush.bf16.msrb.mxu0 %v4729_v59 }
 0x159   : > { %v1219_v53 = vpop.permute.xlu1 %1218  ;;  %1306 = vmax.xlane.f32.xlu1 %v1305_v47  ;;  %1309 = vmax.xlane.f32.xlu2 %v1308_v51 }
 0x15a   : > { %v1240_v30 = vadd.f32 %v5792_v0, %v1219_v53  ;;  %v1241_v25 = vadd.f32 %v5794_v52, %v1219_v53  ;;  %1587 = vmatpush.bf16.msrb.mxu1 %v4737_v11 }
 0x15c   : > { %vm1256_vm14 = vcmp.gt.f32.partialorder %v1240_v30, 0.0  ;;  %vm1257_vm15 = vcmp.gt.f32.partialorder %v1241_v25, 0.0  ;;  %v1272_v18 = vmul.f32 0.2, %v1240_v30  ;;  %v1273_v63 = vmul.f32 0.2, %v1241_v25 }
 0x15d   : > { %1136 = vmatmul.bf16.gmra.mxu2 %v982_v49  ;;  %v4736_v49 = vld [vmem:[%s7356_s1 + $0x158] sm:$0xff] }
 0x15e   : > { %v5898_v32 = vsel %vm1256_vm14, %v1240_v30, %v1272_v18  ;;  %v5900_v36 = vsel %vm1257_vm15, %v1241_v25, %v1273_v63  ;;  %v4728_v25 = vld [vmem:[%s7356_s1 + $0x118] sm:$0xff]  ;;  %1588 = vmatpush.bf16.msrb.mxu1 %v4736_v49  ;;  %v4727_v63 = vld [vmem:[%s7356_s1 + $0x110] sm:$0xff] }
 0x15f   : > { %v1311_v0 = vmax.f32 %v5898_v32, %v5900_v36  ;;  %1559 = vmatpush.bf16.msrb.mxu0 %v4728_v25 }
 0x160   : > { %1165 = vmatmul.bf16.gmra.mxu3 %v983_v62  ;;  %v4735_v62 = vld [vmem:[%s7356_s1 + $0x150] sm:$0xff] }
 0x161   : > { %1312 = vmax.xlane.f32.xlu0 %v1311_v0 }
 0x162   : > { %1589 = vmatpush.bf16.msrb.mxu1 %v4735_v62 }
 0x163   : > { %1560 = vmatpush.bf16.msrb.mxu0 %v4727_v63 }
 0x167   : > { %1561 = vmatpush.bf16.msrb.mxu0 %v4726_v40 }
 0x183   : > { %v5904_v55 = vpop.xlane.xlu2 %502 }
 0x184   : > { %v521_v62 = vmax.f32 %v5904_v55, 1e-20 }
 0x185   : > { %v497_v52 = vpop.xlane.xlu0 %496 }
 0x186   : > { %v519_v56 = vmax.f32 %v497_v52, 1e-20 }
 0x188   : > { %4926 = vrcp.f32 %v519_v56 }
 0x18d   : > { %v5908_v39 = vpop.xlane.xlu0 %505 }
 0x18e   : > { %v4927_v17 = vpop.eup %4926 }
 0x18f   : > { %v5906_v38 = vpop.xlane.xlu1 %499 }
 0x196   : > { %v5926_v44 = vpop.xlane.xlu0 %514 }
 0x197   : > { %v5924_v41 = vpop.xlane.xlu1 %508  ;;  %v680_v60 = vpop.f32.mrf.mxu0 }
 0x198   : > { %v5922_v9 = vpop.xlane.xlu2 %511  ;;  %v709_v16 = vpop.f32.mrf.mxu1 }
 0x199   : > { %7380 = vst [vmem:[#allocation7_spill] sm:$0xff] %v5922_v9  ;;  %v710_v37 = vadd.f32 %v709_v16, %v680_v60  ;;  %v4734_v60 = vld [vmem:[%s7356_s1 + $0x148] sm:$0xff] }
 0x19a   : > { %1590 = vmatpush.bf16.msrb.mxu1 %v4734_v60  ;;  %v523_v60 = vmax.f32 %v5924_v41, 1e-20 }
 0x19b   : > { %v729_v29 = vmul.f32 %v4927_v17, %v710_v37  ;;  %v4725_v37 = vld [vmem:[%s7356_s1 + $0x100] sm:$0xff] }
 0x19c   : > { %v4733_v17 = vld [vmem:[%s7356_s1 + $0x140] sm:$0xff]  ;;  %1562 = vmatpush.bf16.msrb.mxu0 %v4725_v37 }
 0x19e   : > { %1591 = vmatpush.bf16.msrb.mxu1 %v4733_v17 }
 0x19f   : > { %v5934_v33 = vpop.xlane.xlu1 %517  ;;  %v5942_v51 = vpop.f32.mrf.mxu0 }
 0x1a0   : > { %v938_v47 = vpop.xlane.xlu2 %937  ;;  %v5944_v53 = vpop.f32.mrf.mxu1 }
 0x1a1   : > { %v960_v13 = vmax.f32 %v938_v47, 1e-20 }
 0x1a3   : > { %v5946_v30 = vpop.xlane.xlu0 %940  ;;  %4928 = vrcp.f32 %v960_v13  ;;  %v525_v13 = vmax.f32 %v5926_v44, 1e-20 }
 0x1a4   : > { %4930 = vrcp.f32 %v521_v62 }
 0x1a7   : > { %v944_v18 = vpop.xlane.xlu1 %943  ;;  %v685_v0 = vpop.f32.mrf.mxu0 }
 0x1a8   : > { %v714_v52 = vpop.f32.mrf.mxu1  ;;  %v5960_v56 = vpop.xlane.xlu2 %946  ;;  %v962_v44 = vmax.f32 %v944_v18, 1e-20 }
 0x1a9   : > { %v5962_v20 = vadd.f32 %v714_v52, %v685_v0  ;;  %v4929_v63 = vpop.eup %4928  ;;  %v522_v0 = vmax.f32 %v5908_v39, 1e-20 }
 0x1ab   : > { %v5964_v57 = vpop.xlane.xlu0 %949  ;;  %4932 = vrcp.f32 %v522_v0 }
 0x1ac   : > { %4934 = vrcp.f32 %v525_v13 }
 0x1ad   : > { %4936 = vrcp.f32 %v523_v60  ;;  %v963_v60 = vmax.f32 %v5960_v56, 1e-20 }
 0x1af   : > { %v5972_v16 = vpop.xlane.xlu1 %952  ;;  %v5980_v58 = vpop.f32.mrf.mxu0 }
 0x1b0   : > { %7381 = vst [vmem:[#allocation8_spill] sm:$0xff] %v5972_v16  ;;  %v1122_v5 = vpop.f32.mrf.mxu2  ;;  %v5982_v59 = vpop.f32.mrf.mxu1 }
 0x1b1   : > { %v5986_v49 = vpop.xlane.xlu2 %955 }
 0x1b3   : > { %v1151_v11 = vpop.f32.mrf.mxu3  ;;  %v5984_v47 = vpop.xlane.xlu0 %958 }
 0x1b4   : > { %v1152_v25 = vadd.f32 %v1151_v11, %v1122_v5 }
 0x1b6   : > { %v1171_v52 = vmul.f32 %v4929_v63, %v1152_v25 }
 0x1b7   : > { %v1298_v40 = vpop.xlane.xlu1 %1297  ;;  %v690_v11 = vpop.f32.mrf.mxu0 }
 0x1b8   : > { %v5992_v16 = vadd.f32 %v1171_v52, %v729_v29  ;;  %v5994_v37 = vpop.f32.mrf.mxu2  ;;  %v1318_v17 = vsub.f32 %v5836_v23, %v1298_v40  ;;  %v1319_v5 = vsub.f32 %v5838_v46, %v1298_v40  ;;  %v719_v9 = vpop.f32.mrf.mxu1 }
 0x1b9   : > { %v5998_v55 = vadd.f32 %v719_v9, %v690_v11  ;;  %v4931_v40 = vpop.eup %4930 }
 0x1ba   : > { %v1338_v39 = vmul.f32 1.442695, %v1318_v17  ;;  %v1340_v25 = vmul.f32 1.442695, %v1319_v5  ;;  %v6006_v17 = vpop.eup %4932 }
 0x1bb   : > { %v6000_v63 = vpop.f32.mrf.mxu3  ;;  %v1295_v41 = vpop.xlane.xlu0 %1294 }
 0x1bc   : > { %v1316_v29 = vsub.f32 %v5832_v22, %v1295_v41  ;;  %v1317_v23 = vsub.f32 %v5834_v43, %v1295_v41  ;;  %v1292_v52 = vpop.xlane.xlu2 %1291  ;;  %4938 = vpow2.f32 %v1338_v39  ;;  %v4935_v43 = vpop.eup %4934 }
 0x1bd   : > { %v1314_v46 = vsub.f32 %v5848_v7, %v1292_v52  ;;  %v1315_v62 = vsub.f32 %v5850_v34, %v1292_v52  ;;  %4940 = vpow2.f32 %v1340_v25  ;;  %v6013_v34 = vpop.eup %4936 }
 0x1be   : > { %v1334_v9 = vmul.f32 1.442695, %v1316_v29  ;;  %v1336_v0 = vmul.f32 1.442695, %v1317_v23  ;;  %4942 = vrcp.f32 %v962_v44 }
 0x1bf   : > { %v1330_v18 = vmul.f32 1.442695, %v1314_v46  ;;  %v1332_v13 = vmul.f32 1.442695, %v1315_v62  ;;  %v6009_v5 = vpop.f32.mrf.mxu0 }
 0x1c0   : > { %4944 = vpow2.f32 %v1334_v9  ;;  %v1127_v22 = vpop.f32.mrf.mxu2  ;;  %7382 = vst [vmem:[#allocation9_spill] sm:$0xff] %v6009_v5  ;;  %v6011_v7 = vpop.f32.mrf.mxu1 }
 0x1c1   : > { %4946 = vpow2.f32 %v1336_v0  ;;  %7383 = vst [vmem:[#allocation10_spill] sm:$0xff] %v6011_v7 }
 0x1c2   : > { %4948 = vpow2.f32 %v1330_v18  ;;  %v4939_v11 = vpop.eup %4938 }
 0x1c3   : > { %v1156_v39 = vpop.f32.mrf.mxu3  ;;  %4950 = vpow2.f32 %v1332_v13  ;;  %v1304_v25 = vpop.xlane.xlu0 %1303  ;;  %v6020_v9 = vmul.f32 %v4939_v11, %v5628_v8  ;;  %v731_v13 = vmul.f32 %v4931_v40, %v5962_v20  ;;  %v964_v20 = vmax.f32 %v5964_v57, 1e-20 }
 0x1c4   : > { %v4941_v44 = vpop.eup %4940  ;;  %4952 = vrcp.f32 %v963_v60  ;;  %v1157_v41 = vadd.f32 %v1156_v39, %v1127_v22  ;;  %v1322_v56 = vsub.f32 %v5864_v26, %v1304_v25  ;;  %v1323_v29 = vsub.f32 %v5866_v10, %v1304_v25  ;;  %v1301_v23 = vpop.xlane.xlu2 %1300 }
 0x1c5   : > { %v4943_v52 = vpop.eup %4942  ;;  %v1320_v46 = vsub.f32 %v5872_v15, %v1301_v23  ;;  %v1321_v62 = vsub.f32 %v5874_v48, %v1301_v23  ;;  %v6023_v0 = vmul.f32 %v4941_v44, %v5630_v14  ;;  %v717_v40 = vadd.f32 %v5982_v59, %v5980_v58 }
 0x1c6   : > { %v4945_v18 = vpop.eup %4944  ;;  %v1173_v60 = vmul.f32 %v4943_v52, %v1157_v41  ;;  %v1346_v22 = vmul.f32 1.442695, %v1322_v56  ;;  %v1348_v26 = vmul.f32 1.442695, %v1323_v29 }
 0x1c7   : > { %v4947_v39 = vpop.eup %4946  ;;  %v1342_v10 = vmul.f32 1.442695, %v1320_v46  ;;  %v1344_v25 = vmul.f32 1.442695, %v1321_v62  ;;  %v1364_v7 = vmul.f32 %v4945_v18, %v5663_v2  ;;  %v1384_v15 = vadd.f32 %v6023_v0, %v6020_v9  ;;  %v695_v41 = vpop.f32.mrf.mxu0 }
 0x1c8   : > { %v4949_v48 = vpop.eup %4948  ;;  %v6029_v11 = vadd.f32 %v1173_v60, %v731_v13  ;;  %4954 = vpow2.f32 %v1346_v22  ;;  %v1129_v44 = vpop.f32.mrf.mxu2  ;;  %v1365_v23 = vmul.f32 %v4947_v39, %v5661_v12 }
 0x1c9   : > { %v4951_v5 = vpop.eup %4950  ;;  %4956 = vpow2.f32 %v1348_v26  ;;  %v724_v56 = vpop.f32.mrf.mxu1  ;;  %1385 = vadd.xlane.f32.xlu0 %v1384_v15  ;;  %v1362_v29 = vmul.f32 %v4949_v48, %v5632_v21 }
 0x1ca   : > { %v4953_v52 = vpop.eup %4952  ;;  %4958 = vpow2.f32 %v1342_v10  ;;  %v1381_v46 = vadd.f32 %v1365_v23, %v1364_v7  ;;  %v725_v62 = vadd.f32 %v724_v56, %v695_v41  ;;  %v1363_v18 = vmul.f32 %v4951_v5, %v5644_v42 }
 0x1cb   : > { %v1158_v13 = vpop.f32.mrf.mxu3  ;;  %4960 = vpow2.f32 %v1344_v25  ;;  %v1418_v60 = vpack.c.bf16 %v1364_v7, %v1362_v29  ;;  %v732_v7 = vmul.f32 %v6006_v17, %v717_v40  ;;  %v5273_v40 = vmov 3  }
 0x1cc   : > { %v1159_v22 = vadd.f32 %v1158_v13, %v1129_v44  ;;  %1382 = vadd.xlane.f32.xlu2 %v1381_v46  ;;  %v6037_v57 = vmul.f32 %v4935_v43, %v725_v62  ;;  %v1307_v58 = vpop.xlane.xlu1 %1306  ;;  %v1378_v59 = vadd.f32 %v1363_v18, %v1362_v29  ;;  %v1310_v26 = vpop.xlane.xlu2 %1309  ;;  %v1419_v39 = vpack.c.bf16 %v1365_v23, %v1363_v18 }
 0x1cd   : > { %v1324_v15 = vsub.f32 %v5884_v45, %v1307_v58  ;;  %v1325_v48 = vsub.f32 %v5886_v35, %v1307_v58  ;;  %v1326_v10 = vsub.f32 %v5880_v54, %v1310_v26  ;;  %v1327_v41 = vsub.f32 %v5882_v28, %v1310_v26  ;;  %1563 = vmatmul.bf16.vlgmr.msrb.gmra.mxu0 %v1418_v60 }
 0x1ce   : > { %v4955_v5 = vpop.eup %4954  ;;  %4962 = vrcp.f32 %v964_v20  ;;  %v1174_v25 = vmul.f32 %v4953_v52, %v1159_v22  ;;  %1379 = vadd.xlane.f32.xlu1 %v1378_v59  ;;  %1592 = vmatmul.bf16.vlgmr.msrb.gmra.mxu1 %v1419_v39  ;;  %v733_v39 = vmul.f32 %v6013_v34, %v5998_v55  ;;  %v966_v34 = vmax.f32 %v5986_v49, 1e-20 }
 0x1cf   : > { %v4957_v43 = vpop.eup %4956  ;;  %v1350_v44 = vmul.f32 1.442695, %v1324_v15  ;;  %v1352_v56 = vmul.f32 1.442695, %v1325_v48  ;;  %v1354_v23 = vmul.f32 1.442695, %v1326_v10  ;;  %v6045_v45 = vmul.f32 %v4955_v5, %v5699_v6  ;;  %4846 = vset.pattern.permute.xlu0 %v5273_v40  ;;  %4847 = vset.pattern.permute.xlu1 %v5273_v40 }
 0x1d0   : > { %v4959_v35 = vpop.eup %4958  ;;  %v6047_v29 = vadd.f32 %v1174_v25, %v732_v7  ;;  %v1132_v54 = vpop.f32.mrf.mxu2  ;;  %v1356_v28 = vmul.f32 1.442695, %v1327_v41  ;;  %v6050_v46 = vmul.f32 %v4957_v43, %v5701_v1  ;;  %4848 = vset.pattern.permute.xlu2 %v5273_v40 }
 0x1d1   : > { %v4961_v20 = vpop.eup %4960  ;;  %4964 = vpow2.f32 %v1350_v44  ;;  %v1368_v17 = vmul.f32 %v4959_v35, %v5670_v27 }
 0x1d2   : > { %4966 = vpow2.f32 %v1352_v56  ;;  %v1390_v52 = vadd.f32 %v6050_v46, %v6045_v45  ;;  %v1369_v62 = vmul.f32 %v4961_v20, %v5672_v3 }
 0x1d3   : > { %v1161_v18 = vpop.f32.mrf.mxu3  ;;  %4968 = vpow2.f32 %v1354_v23 }
 0x1d4   : > { %v4963_v13 = vpop.eup %4962  ;;  %v1162_v60 = vadd.f32 %v1161_v18, %v1132_v54  ;;  %4970 = vpow2.f32 %v1356_v28  ;;  %1391 = vadd.xlane.f32.xlu2 %v1390_v52  ;;  %v1387_v22 = vadd.f32 %v1369_v62, %v1368_v17  ;;  %v1313_v58 = vpop.xlane.xlu0 %1312  ;;  %v1420_v54 = vpack.c.bf16 %v1368_v17, %v6020_v9 }
 0x1d5   : > { %v1328_v59 = vsub.f32 %v5898_v32, %v1313_v58  ;;  %v1329_v26 = vsub.f32 %v5900_v36, %v1313_v58  ;;  %v1421_v28 = vpack.c.bf16 %v1369_v62, %v6023_v0 }
 0x1d6   : > { %v1175_v15 = vmul.f32 %v4963_v13, %v1162_v60  ;;  %1388 = vadd.xlane.f32.xlu1 %v1387_v22 }
 0x1d7   : > { %v4965_v48 = vpop.eup %4964  ;;  %v1358_v10 = vmul.f32 1.442695, %v1328_v59  ;;  %v1360_v41 = vmul.f32 1.442695, %v1329_v26  ;;  %v6081_v26 = vld [vmem:[%s5326_s24] sm:$0xff] }
 0x1d8   : > { %v4967_v5 = vpop.eup %4966  ;;  %v6060_v7 = vadd.f32 %v1175_v15, %v733_v39  ;;  %v6062_v25 = vpop.f32.mrf.mxu2  ;;  %v1372_v43 = vmul.f32 %v4965_v48, %v5691_v19  ;;  %v6085_v39 = vld [vmem:[%s5326_s24 + $0x8] sm:$0xff]  ;;  %v6097_v48 = vld [vmem:[%s5326_s24 + $0x18] sm:$0xff] }
 0x1d9   : > { %7384 = vst [vmem:[#allocation11_spill] sm:$0xff] %v6062_v25  ;;  %v4969_v44 = vpop.eup %4968  ;;  %4972 = vpow2.f32 %v1358_v10  ;;  %v1373_v32 = vmul.f32 %v4967_v5, %v5696_v50  ;;  %v6101_v10 = vld [vmem:[%s5326_s24 + $0x20] sm:$0xff]  ;;  %v6109_v5 = vld [vmem:[%s5326_s24 + $0x30] sm:$0xff] }
 0x1da   : > { %v4971_v36 = vpop.eup %4970  ;;  %4974 = vpow2.f32 %v1360_v41  ;;  %v1374_v55 = vmul.f32 %v4969_v44, %v5706_v31  ;;  %v1422_v58 = vpack.c.bf16 %v1372_v43, %v6045_v45  ;;  %v6105_v41 = vld [vmem:[%s5326_s24 + $0x28] sm:$0xff]  ;;  %v6112_v44 = vpop.f32.mrf.mxu0 }
 0x1db   : > { %v6068_v56 = vpop.f32.mrf.mxu3  ;;  %v1375_v23 = vmul.f32 %v4971_v36, %v5709_v24  ;;  %v1393_v35 = vadd.f32 %v1373_v32, %v1372_v43  ;;  %4976 = vrcp.f32 %v966_v34  ;;  %v1423_v59 = vpack.c.bf16 %v1373_v32, %v6050_v46  ;;  %v6093_v46 = vld [vmem:[%s5326_s24 + $0x10] sm:$0xff]  ;;  %v6114_v32 = vpop.f32.mrf.mxu1 }
 0x1dc   : > { %7385 = vst [vmem:[#allocation12_spill] sm:$0xff] %v6068_v56  ;;  %v961_v34 = vmax.f32 %v5946_v30, 1e-20 }
 0x1dd   : > { %v1396_v20 = vadd.f32 %v1375_v23, %v1374_v55  ;;  %1394 = vadd.xlane.f32.xlu0 %v1393_v35  ;;  %1568 = vmatmul.bf16.gmra.mxu0 %v1420_v54 }
 0x1de   : > { %1597 = vmatmul.bf16.gmra.mxu1 %v1421_v28 }
 0x1df   : > { %v4973_v40 = vpop.eup %4972  ;;  %1397 = vadd.xlane.f32.xlu1 %v1396_v20 }
 0x1e0   : > { %v4975_v52 = vpop.eup %4974  ;;  %v1376_v49 = vmul.f32 %v4973_v40, %v5735_v61  ;;  %v1137_v18 = vpop.f32.mrf.mxu2 }
 0x1e1   : > { %v1377_v13 = vmul.f32 %v4975_v52, %v5737_v4  ;;  %v4977_v0 = vpop.eup %4976  ;;  %v1154_v52 = vadd.f32 %v6000_v63, %v5994_v37 }
 0x1e2   : > { %v1424_v45 = vpack.c.bf16 %v1376_v49, %v1374_v55 }
 0x1e3   : > { %v1166_v60 = vpop.f32.mrf.mxu3  ;;  %v1399_v9 = vadd.f32 %v1377_v13, %v1376_v49  ;;  %v1425_v15 = vpack.c.bf16 %v1377_v13, %v1375_v23  ;;  %v520_v23 = vmax.f32 %v5906_v38, 1e-20 }
 0x1e4   : > { %v1167_v17 = vadd.f32 %v1166_v60, %v1137_v18  ;;  %v712_v18 = vadd.f32 %v5944_v53, %v5942_v51 }
 0x1e5   : > { %1400 = vadd.xlane.f32.xlu2 %v1399_v9 }
 0x1e6   : > { %v1177_v62 = vmul.f32 %v4977_v0, %v1167_v17 }
 0x1e8   : > { %v6076_v22 = vadd.f32 %v1177_v62, %v6037_v57  ;;  %v6089_v57 = vld [vmem:[%s5326_s24 + $0x38] sm:$0xff]  ;;  %v1139_v25 = vpop.f32.mrf.mxu2 }
 0x1ed   : > { %1573 = vmatmul.bf16.gmra.mxu0 %v1422_v58 }
 0x1ee   : > { %1602 = vmatmul.bf16.gmra.mxu1 %v1423_v59 }
 0x1f1   : > { %1632 = vperm.xlu0 %4846, %v6081_v26  }
 0x1f8   : > { %1636 = vperm.xlu1 %4847, %v6085_v39  }
 0x1f9   : > { %1660 = vperm.xlu0 %4846, %v6089_v57  }
 0x1fd   : > { %1578 = vmatmul.bf16.gmra.mxu0 %v1424_v45  ;;  %1640 = vperm.xlu2 %4848, %v6093_v46  }
 0x1fe   : > { %1607 = vmatmul.bf16.gmra.mxu1 %v1425_v15 }
 0x200   : > { %1644 = vperm.xlu1 %4847, %v6097_v48  }
 0x205   : > { %1648 = vperm.xlu2 %4848, %v6101_v10  }
 0x208   : > { %1652 = vperm.xlu1 %4847, %v6105_v41  }
 0x20d   : > { %1656 = vperm.xlu2 %4848, %v6109_v5  }
 0x23c   : > { %v1386_v13 = vpop.xlane.xlu0 %1385 }
 0x23d   : > { %v1404_v62 = vmax.f32 %v1386_v13, 1e-20 }
 0x23f   : > { %v1383_v55 = vpop.xlane.xlu2 %1382 }
 0x240   : > { %v1403_v54 = vmax.f32 %v1383_v55, 1e-20 }
 0x241   : > { %v1380_v43 = vpop.xlane.xlu1 %1379 }
 0x242   : > { %v1402_v36 = vmax.f32 %v1380_v43, 1e-20 }
 0x244   : > { %4978 = vrcp.f32 %v1402_v36 }
 0x245   : > { %4980 = vrcp.f32 %v961_v34 }
 0x246   : > { %4982 = vrcp.f32 %v520_v23 }
 0x247   : > { %4984 = vrcp.f32 %v1403_v54  ;;  %v1392_v30 = vpop.xlane.xlu2 %1391 }
 0x248   : > { %4986 = vrcp.f32 %v1404_v62 }
 0x249   : > { %v1389_v43 = vpop.xlane.xlu1 %1388 }
 0x24a   : > { %v1564_v35 = vpop.f32.mrf.mxu0  ;;  %v4979_v40 = vpop.eup %4978  ;;  %v1405_v55 = vmax.f32 %v1389_v43, 1e-20 }
 0x24b   : > { %v1593_v28 = vpop.f32.mrf.mxu1  ;;  %v4981_v38 = vpop.eup %4980 }
 0x24c   : > { %v1594_v20 = vadd.f32 %v1593_v28, %v1564_v35  ;;  %v1172_v9 = vmul.f32 %v4981_v38, %v1154_v52  ;;  %v4983_v0 = vpop.eup %4982  ;;  %4988 = vrcp.f32 %v1405_v55  ;;  %v1406_v38 = vmax.f32 %v1392_v30, 1e-20 }
 0x24d   : > { %v730_v59 = vmul.f32 %v4983_v0, %v712_v18  ;;  %v4985_v15 = vpop.eup %4984 }
 0x24e   : > { %v1613_v49 = vmul.f32 %v4979_v40, %v1594_v20  ;;  %v4987_v54 = vpop.eup %4986  ;;  %4990 = vrcp.f32 %v1406_v38 }
 0x24f   : > { %v1180_v37 = vadd.f32 %v1172_v9, %v730_v59 }
 0x250   : > { %v6123_v60 = vadd.f32 %v1613_v49, %v5992_v16  ;;  %v4205_v16 = vld [vmem:[%s7357_s2 + $0x3] ss:$8 sm:$0x3]  ;;  %v6132_v34 = vpop.xlane.xlu0 %1394 }
 0x251   : > { %v6134_v28 = vperm.slane %v4205_v16, 0  ;;  %v6136_v20 = vperm.slane %v4205_v16, 1 }
 0x252   : > { %7386 = vst [vmem:[#allocation13_spill] sm:$0xff] %v6123_v60  ;;  %v1566_v17 = vpop.f32.mrf.mxu0  ;;  %v6143_v9 = vpop.xlane.xlu1 %1397 }
 0x253   : > { %v1595_v58 = vpop.f32.mrf.mxu1 }
 0x254   : > { %v1596_v45 = vadd.f32 %v1595_v58, %v1566_v17 }
 0x256   : > { %v1614_v63 = vmul.f32 %v4985_v15, %v1596_v45 }
 0x258   : > { %v6125_v36 = vadd.f32 %v1614_v63, %v1180_v37  ;;  %v6127_v51 = vpop.xlane.xlu2 %1400  ;;  %v4989_v37 = vpop.eup %4988 }
 0x25a   : > { %7387 = vst [vmem:[#allocation14_spill] sm:$0xff] %v6125_v36  ;;  %v1569_v53 = vpop.f32.mrf.mxu0 }
 0x25b   : > { %v1598_v23 = vpop.f32.mrf.mxu1 }
 0x25c   : > { %v1599_v35 = vadd.f32 %v1598_v23, %v1569_v53 }
 0x25e   : > { %v1615_v40 = vmul.f32 %v4987_v54, %v1599_v35 }
 0x260   : > { %v6139_v52 = vadd.f32 %v1615_v40, %v6029_v11  ;;  %v1641_v49 = vpop.permute.xlu2 %1640 }
 0x261   : > { %v1672_v18 = vadd.f32 %v6134_v28, %v1641_v49  ;;  %v1673_v13 = vadd.f32 %v6136_v20, %v1641_v49  ;;  %v4748_v49 = vld [vmem:[%s7356_s1 + $0x1b8] sm:$0xff] }
 0x262   : > { %7388 = vst [vmem:[#allocation15_spill] sm:$0xff] %v6139_v52  ;;  %v1571_v17 = vpop.f32.mrf.mxu0  ;;  %1997 = vmatpush.bf16.msrb.mxu2 %v4748_v49 }
 0x263   : > { %v1704_v0 = vmul.f32 0.2, %v1672_v18  ;;  %v1705_v62 = vmul.f32 0.2, %v1673_v13  ;;  %v1600_v58 = vpop.f32.mrf.mxu1  ;;  %v1633_v59 = vpop.permute.xlu0 %1632  ;;  %vm1688_vm0 = vcmp.gt.f32.partialorder %v1672_v18, 0.0  ;;  %vm1689_vm1 = vcmp.gt.f32.partialorder %v1673_v13, 0.0 }
 0x264   : > { %v1601_v45 = vadd.f32 %v1600_v58, %v1571_v17  ;;  %v1668_v15 = vadd.f32 %v6134_v28, %v1633_v59  ;;  %v1669_v11 = vadd.f32 %v6136_v20, %v1633_v59  ;;  %v4747_v17 = vld [vmem:[%s7356_s1 + $0x1b0] sm:$0xff] }
 0x265   : > { %v6147_v63 = vsel %vm1688_vm0, %v1672_v18, %v1704_v0  ;;  %v6149_v43 = vsel %vm1689_vm1, %v1673_v13, %v1705_v62  ;;  %v4756_v18 = vld [vmem:[%s7356_s1 + $0x1f8] sm:$0xff]  ;;  %v4755_v0 = vld [vmem:[%s7356_s1 + $0x1f0] sm:$0xff]  ;;  %v1407_v62 = vmax.f32 %v6132_v34, 1e-20 }
 0x266   : > { %v1616_v30 = vmul.f32 %v4989_v37, %v1601_v45  ;;  %v1700_v53 = vmul.f32 0.2, %v1668_v15  ;;  %v1701_v16 = vmul.f32 0.2, %v1669_v11  ;;  %v1738_v55 = vmax.f32 %v6147_v63, %v6149_v43  ;;  %2026 = vmatpush.bf16.msrb.mxu3 %v4756_v18  ;;  %1998 = vmatpush.bf16.msrb.mxu2 %v4747_v17 }
 0x267   : > { %vm1684_vm2 = vcmp.gt.f32.partialorder %v1668_v15, 0.0  ;;  %vm1685_vm3 = vcmp.gt.f32.partialorder %v1669_v11, 0.0  ;;  %4992 = vrcp.f32 %v1407_v62 }
 0x268   : > { %v6154_v23 = vadd.f32 %v1616_v30, %v6047_v29  ;;  %1739 = vmax.xlane.f32.xlu0 %v1738_v55  ;;  %v1649_v35 = vpop.permute.xlu2 %1648  ;;  %v6156_v54 = vsel %vm1684_vm2, %v1668_v15, %v1700_v53  ;;  %v6158_v40 = vsel %vm1685_vm3, %v1669_v11, %v1701_v16  ;;  %v4991_v30 = vpop.eup %4990 }
 0x269   : > { %v1732_v13 = vmax.f32 %v6156_v54, %v6158_v40  ;;  %v1676_v45 = vadd.f32 %v6134_v28, %v1649_v35  ;;  %v1677_v11 = vadd.f32 %v6136_v20, %v1649_v35 }
 0x26a   : > { %7389 = vst [vmem:[#allocation16_spill] sm:$0xff] %v6154_v23  ;;  %v1637_v38 = vpop.permute.xlu1 %1636  ;;  %v1574_v29 = vpop.f32.mrf.mxu0  ;;  %2027 = vmatpush.bf16.msrb.mxu3 %v4755_v0  ;;  %v1408_v0 = vmax.f32 %v6143_v9, 1e-20  ;;  %v967_v9 = vmax.f32 %v5984_v47, 1e-20 }
 0x26b   : > { %v1670_v58 = vadd.f32 %v6134_v28, %v1637_v38  ;;  %v1671_v59 = vadd.f32 %v6136_v20, %v1637_v38  ;;  %v1603_v15 = vpop.f32.mrf.mxu1  ;;  %1733 = vmax.xlane.f32.xlu1 %v1732_v13  ;;  %v1708_v34 = vmul.f32 0.2, %v1676_v45  ;;  %v1709_v38 = vmul.f32 0.2, %v1677_v11  ;;  %v1661_v62 = vpop.permute.xlu0 %1660 }
 0x26c   : > { %v1604_v37 = vadd.f32 %v1603_v15, %v1574_v29  ;;  %vm1692_vm6 = vcmp.gt.f32.partialorder %v1676_v45, 0.0  ;;  %vm1693_vm7 = vcmp.gt.f32.partialorder %v1677_v11, 0.0  ;;  %v1682_v56 = vadd.f32 %v6134_v28, %v1661_v62 }
 0x26d   : > { %v1702_v53 = vmul.f32 0.2, %v1670_v58  ;;  %v1703_v16 = vmul.f32 0.2, %v1671_v59  ;;  %vm1686_vm4 = vcmp.gt.f32.partialorder %v1670_v58, 0.0  ;;  %vm1687_vm5 = vcmp.gt.f32.partialorder %v1671_v59, 0.0 }
 0x26e   : > { %v1617_v55 = vmul.f32 %v4991_v30, %v1604_v37  ;;  %v6191_v30 = vsel %vm1692_vm6, %v1676_v45, %v1708_v34  ;;  %v526_v34 = vmax.f32 %v5934_v33, 1e-20  ;;  %4994 = vrcp.f32 %v1408_v0 }
 0x26f   : > { %v6179_v49 = vsel %vm1686_vm4, %v1670_v58, %v1702_v53  ;;  %v6181_v18 = vsel %vm1687_vm5, %v1671_v59, %v1703_v16  ;;  %4996 = vrcp.f32 %v967_v9  ;;  %v1714_v33 = vmul.f32 0.2, %v1682_v56 }
 0x270   : > { %v6184_v13 = vadd.f32 %v1617_v55, %v6060_v7  ;;  %v1735_v35 = vmax.f32 %v6179_v49, %v6181_v18  ;;  %v1657_v29 = vpop.permute.xlu2 %1656  ;;  %v6195_v55 = vsel %vm1693_vm7, %v1677_v11, %v1709_v38  ;;  %vm1698_vm12 = vcmp.gt.f32.partialorder %v1682_v56, 0.0 }
 0x271   : > { %v1680_v7 = vadd.f32 %v6134_v28, %v1657_v29  ;;  %v1681_v53 = vadd.f32 %v6136_v20, %v1657_v29  ;;  %4998 = vrcp.f32 %v526_v34  ;;  %v6220_v60 = vsel %vm1698_vm12, %v1682_v56, %v1714_v33 }
 0x272   : > { %7390 = vst [vmem:[#allocation17_spill] sm:$0xff] %v6184_v13  ;;  %v1645_v15 = vpop.permute.xlu1 %1644  ;;  %1736 = vmax.xlane.f32.xlu2 %v1735_v35  ;;  %v1576_v17 = vpop.f32.mrf.mxu0 }
 0x273   : > { %v1674_v58 = vadd.f32 %v6134_v28, %v1645_v15  ;;  %v1675_v59 = vadd.f32 %v6136_v20, %v1645_v15  ;;  %v1605_v37 = vpop.f32.mrf.mxu1  ;;  %v4993_v13 = vpop.eup %4992  ;;  %v1683_v15 = vadd.f32 %v6136_v20, %v1661_v62  ;;  %v1712_v38 = vmul.f32 0.2, %v1680_v7 }
 0x274   : > { %v1606_v16 = vadd.f32 %v1605_v37, %v1576_v17  ;;  %v1713_v17 = vmul.f32 0.2, %v1681_v53  ;;  %v1744_v37 = vmax.f32 %v6191_v30, %v6195_v55  ;;  %vm1696_vm10 = vcmp.gt.f32.partialorder %v1680_v7, 0.0  ;;  %v4995_v52 = vpop.eup %4994 }
 0x275   : > { %v1706_v35 = vmul.f32 0.2, %v1674_v58  ;;  %v1707_v23 = vmul.f32 0.2, %v1675_v59  ;;  %vm1690_vm8 = vcmp.gt.f32.partialorder %v1674_v58, 0.0  ;;  %vm1691_vm9 = vcmp.gt.f32.partialorder %v1675_v59, 0.0 }
 0x276   : > { %v6200_v45 = vmul.f32 %v4993_v13, %v1606_v16  ;;  %vm1697_vm11 = vcmp.gt.f32.partialorder %v1681_v53, 0.0  ;;  %v1409_v13 = vmax.f32 %v6127_v51, 1e-20  ;;  %v1715_v0 = vmul.f32 0.2, %v1683_v15 }
 0x277   : > { %v6203_v29 = vsel %vm1690_vm8, %v1674_v58, %v1706_v35  ;;  %v6205_v11 = vsel %vm1691_vm9, %v1675_v59, %v1707_v23  ;;  %v1168_v58 = vpop.f32.mrf.mxu3  ;;  %vm1699_vm13 = vcmp.gt.f32.partialorder %v1683_v15, 0.0  ;;  %v6215_v9 = vsel %vm1696_vm10, %v1680_v7, %v1712_v38  ;;  %v4997_v7 = vpop.eup %4996 }
 0x278   : > { %7391 = vst [vmem:[#allocation18_spill] sm:$0xff] %v6200_v45  ;;  %v1741_v47 = vmax.f32 %v6203_v29, %v6205_v11  ;;  %v6218_v51 = vsel %vm1697_vm11, %v1681_v53, %v1713_v17  ;;  %v1169_v36 = vadd.f32 %v1168_v58, %v1139_v25  ;;  %5000 = vrcp.f32 %v1409_v13  ;;  %v4746_v58 = vld [vmem:[%s7356_s1 + $0x1a8] sm:$0xff] }
 0x279   : > { %v727_v53 = vadd.f32 %v6114_v32, %v6112_v44  ;;  %v1750_v56 = vmax.f32 %v6215_v9, %v6218_v51  ;;  %1999 = vmatpush.bf16.msrb.mxu2 %v4746_v58 }
 0x27a   : > { %v1653_v62 = vpop.permute.xlu1 %1652  ;;  %1745 = vmax.xlane.f32.xlu2 %v1744_v37  ;;  %1742 = vmax.xlane.f32.xlu1 %v1741_v47  ;;  %v1579_v23 = vpop.f32.mrf.mxu0 }
 0x27b   : > { %v1678_v59 = vadd.f32 %v6134_v28, %v1653_v62  ;;  %v1679_v16 = vadd.f32 %v6136_v20, %v1653_v62  ;;  %v1608_v35 = vpop.f32.mrf.mxu1  ;;  %v6222_v20 = vsel %vm1699_vm13, %v1683_v15, %v1715_v0  ;;  %v4999_v15 = vpop.eup %4998 }
 0x27c   : > { %v1609_v45 = vadd.f32 %v1608_v35, %v1579_v23  ;;  %v736_v44 = vmul.f32 %v4999_v15, %v727_v53  ;;  %v4744_v35 = vld [vmem:[%s7356_s1 + $0x198] sm:$0xff]  ;;  %v4750_v53 = vld [vmem:[%s7356_s1 + $0x1c8] sm:$0xff] }
 0x27d   : > { %v1710_v37 = vmul.f32 0.2, %v1678_v59  ;;  %v1711_v47 = vmul.f32 0.2, %v1679_v16  ;;  %vm1694_vm14 = vcmp.gt.f32.partialorder %v1678_v59, 0.0  ;;  %vm1695_vm15 = vcmp.gt.f32.partialorder %v1679_v16, 0.0 }
 0x27e   : > { %v1619_v28 = vmul.f32 %v4995_v52, %v1609_v45  ;;  %v1753_v52 = vmax.f32 %v6220_v60, %v6222_v20  ;;  %v1178_v45 = vmul.f32 %v4997_v7, %v1169_v36  ;;  %v4754_v36 = vld [vmem:[%s7356_s1 + $0x1e8] sm:$0xff] }
 0x27f   : > { %v6224_v34 = vsel %vm1694_vm14, %v1678_v59, %v1710_v37  ;;  %v6226_v62 = vsel %vm1695_vm15, %v1679_v16, %v1711_v47  ;;  %2028 = vmatpush.bf16.msrb.mxu3 %v4754_v36  ;;  %v4745_v59 = vld [vmem:[%s7356_s1 + $0x1a0] sm:$0xff]  ;;  %v4752_v37 = vld [vmem:[%s7356_s1 + $0x1d8] sm:$0xff]  ;;  %v4743_v47 = vld [vmem:[%s7356_s1 + $0x190] sm:$0xff] }
 0x280   : > { %v6231_v38 = vadd.f32 %v1619_v28, %v6076_v22  ;;  %v1747_v25 = vmax.f32 %v6224_v34, %v6226_v62  ;;  %v5001_v22 = vpop.eup %5000  ;;  %v1186_v33 = vadd.f32 %v1178_v45, %v736_v44  ;;  %v4753_v16 = vld [vmem:[%s7356_s1 + $0x1e0] sm:$0xff]  ;;  %2000 = vmatpush.bf16.msrb.mxu2 %v4745_v59  ;;  %v4751_v28 = vld [vmem:[%s7356_s1 + $0x1d0] sm:$0xff]  ;;  %v4742_v7 = vld [vmem:[%s7356_s1 + $0x188] sm:$0xff] }
 0x282   : > { %1748 = vmax.xlane.f32.xlu0 %v1747_v25  ;;  %1751 = vmax.xlane.f32.xlu1 %v1750_v56  ;;  %v1581_v17 = vpop.f32.mrf.mxu0  ;;  %v4741_v25 = vld [vmem:[%s7356_s1 + $0x180] sm:$0xff] }
 0x283   : > { %1754 = vmax.xlane.f32.xlu2 %v1753_v52  ;;  %v1610_v13 = vpop.f32.mrf.mxu1  ;;  %2029 = vmatpush.bf16.msrb.mxu3 %v4753_v16  ;;  %v4749_v56 = vld [vmem:[%s7356_s1 + $0x1c0] sm:$0xff] }
 0x284   : > { %v1611_v32 = vadd.f32 %v1610_v13, %v1581_v17  ;;  %2001 = vmatpush.bf16.msrb.mxu2 %v4744_v35 }
 0x286   : > { %v1620_v0 = vmul.f32 %v5001_v22, %v1611_v32 }
 0x287   : > { %2030 = vmatpush.bf16.msrb.mxu3 %v4752_v37 }
 0x288   : > { %v6239_v23 = vadd.f32 %v1620_v0, %v1186_v33  ;;  %2002 = vmatpush.bf16.msrb.mxu2 %v4743_v47 }
 0x28b   : > { %2031 = vmatpush.bf16.msrb.mxu3 %v4751_v28 }
 0x28c   : > { %2003 = vmatpush.bf16.msrb.mxu2 %v4742_v7 }
 0x28f   : > { %2032 = vmatpush.bf16.msrb.mxu3 %v4750_v53 }
 0x290   : > { %2004 = vmatpush.bf16.msrb.mxu2 %v4741_v25 }
 0x293   : > { %2033 = vmatpush.bf16.msrb.mxu3 %v4749_v56 }
 0x2db   : > { %v1740_v52 = vpop.xlane.xlu0 %1739 }
 0x2dc   : > { %v1760_v15 = vsub.f32 %v6147_v63, %v1740_v52  ;;  %v1761_v45 = vsub.f32 %v6149_v43, %v1740_v52 }
 0x2de   : > { %v1780_v17 = vmul.f32 1.442695, %v1760_v15  ;;  %v1782_v13 = vmul.f32 1.442695, %v1761_v45  ;;  %v1734_v44 = vpop.xlane.xlu1 %1733 }
 0x2df   : > { %v1756_v32 = vsub.f32 %v6156_v54, %v1734_v44  ;;  %v1757_v22 = vsub.f32 %v6158_v40, %v1734_v44 }
 0x2e0   : > { %5002 = vpow2.f32 %v1780_v17 }
 0x2e1   : > { %5004 = vpow2.f32 %v1782_v13  ;;  %v1772_v33 = vmul.f32 1.442695, %v1756_v32  ;;  %v1774_v0 = vmul.f32 1.442695, %v1757_v22 }
 0x2e3   : > { %5006 = vpow2.f32 %v1772_v33 }
 0x2e4   : > { %5008 = vpow2.f32 %v1774_v0 }
 0x2e5   : > { %v1737_v58 = vpop.xlane.xlu2 %1736 }
 0x2e6   : > { %v5003_v36 = vpop.eup %5002  ;;  %v1758_v59 = vsub.f32 %v6179_v49, %v1737_v58  ;;  %v1759_v63 = vsub.f32 %v6181_v18, %v1737_v58 }
 0x2e7   : > { %v5005_v43 = vpop.eup %5004  ;;  %v6284_v16 = vmul.f32 %v5003_v36, %v5628_v8 }
 0x2e8   : > { %v1776_v35 = vmul.f32 1.442695, %v1758_v59  ;;  %v1778_v54 = vmul.f32 1.442695, %v1759_v63  ;;  %v6287_v40 = vmul.f32 %v5005_v43, %v5630_v14 }
 0x2e9   : > { %v5007_v37 = vpop.eup %5006 }
 0x2ea   : > { %v5009_v47 = vpop.eup %5008  ;;  %5010 = vpow2.f32 %v1776_v35  ;;  %v1826_v28 = vadd.f32 %v6287_v40, %v6284_v16  ;;  %v1804_v7 = vmul.f32 %v5007_v37, %v5632_v21 }
 0x2eb   : > { %5012 = vpow2.f32 %v1778_v54  ;;  %v1805_v49 = vmul.f32 %v5009_v47, %v5644_v42 }
 0x2ec   : > { %1827 = vadd.xlane.f32.xlu2 %v1826_v28  ;;  %v5274_v28 = vmov 4  }
 0x2ed   : > { %v1746_v18 = vpop.xlane.xlu2 %1745  ;;  %v1743_v53 = vpop.xlane.xlu1 %1742  ;;  %v1820_v25 = vadd.f32 %v1805_v49, %v1804_v7  ;;  %4850 = vset.pattern.permute.xlu0 %v5274_v28  ;;  %4849 = vset.pattern.permute.xlu2 %v5274_v28 }
 0x2ee   : > { %v1764_v56 = vsub.f32 %v6191_v30, %v1746_v18  ;;  %v1765_v52 = vsub.f32 %v6195_v55, %v1746_v18  ;;  %v1762_v15 = vsub.f32 %v6203_v29, %v1743_v53  ;;  %v1763_v45 = vsub.f32 %v6205_v11, %v1743_v53  ;;  %4851 = vset.pattern.permute.xlu1 %v5274_v28 }
 0x2ef   : > { %1821 = vadd.xlane.f32.xlu0 %v1820_v25 }
 0x2f0   : > { %v5011_v17 = vpop.eup %5010  ;;  %v1788_v13 = vmul.f32 1.442695, %v1764_v56  ;;  %v1790_v44 = vmul.f32 1.442695, %v1765_v52  ;;  %v1784_v32 = vmul.f32 1.442695, %v1762_v15 }
 0x2f1   : > { %v5013_v22 = vpop.eup %5012  ;;  %v1786_v33 = vmul.f32 1.442695, %v1763_v45  ;;  %v1806_v0 = vmul.f32 %v5011_v17, %v5663_v2 }
 0x2f2   : > { %5014 = vpow2.f32 %v1788_v13  ;;  %v1807_v58 = vmul.f32 %v5013_v22, %v5661_v12 }
 0x2f3   : > { %5016 = vpow2.f32 %v1790_v44  ;;  %v1860_v30 = vpack.c.bf16 %v1806_v0, %v1804_v7 }
 0x2f4   : > { %5018 = vpow2.f32 %v1784_v32  ;;  %v1823_v55 = vadd.f32 %v1807_v58, %v1806_v0  ;;  %v1861_v36 = vpack.c.bf16 %v1807_v58, %v1805_v49 }
 0x2f5   : > { %5020 = vpow2.f32 %v1786_v33  ;;  %2005 = vmatmul.bf16.vlgmr.msrb.gmra.mxu2 %v1860_v30  ;;  %v1752_v29 = vpop.xlane.xlu1 %1751  ;;  %v1749_v11 = vpop.xlane.xlu0 %1748 }
 0x2f6   : > { %1824 = vadd.xlane.f32.xlu1 %v1823_v55  ;;  %2034 = vmatmul.bf16.vlgmr.msrb.gmra.mxu3 %v1861_v36  ;;  %v1768_v59 = vsub.f32 %v6215_v9, %v1752_v29  ;;  %v1769_v63 = vsub.f32 %v6218_v51, %v1752_v29  ;;  %v1755_v43 = vpop.xlane.xlu2 %1754  ;;  %v1766_v35 = vsub.f32 %v6224_v34, %v1749_v11 }
 0x2f7   : > { %v1770_v54 = vsub.f32 %v6220_v60, %v1755_v43  ;;  %v1771_v37 = vsub.f32 %v6222_v20, %v1755_v43  ;;  %v1767_v47 = vsub.f32 %v6226_v62, %v1749_v11 }
 0x2f8   : > { %v5015_v7 = vpop.eup %5014  ;;  %v1796_v49 = vmul.f32 1.442695, %v1768_v59  ;;  %v1798_v18 = vmul.f32 1.442695, %v1769_v63  ;;  %v1792_v34 = vmul.f32 1.442695, %v1766_v35 }
 0x2f9   : > { %v5017_v53 = vpop.eup %5016  ;;  %v1800_v9 = vmul.f32 1.442695, %v1770_v54  ;;  %v1802_v25 = vmul.f32 1.442695, %v1771_v37  ;;  %v1812_v51 = vmul.f32 %v5015_v7, %v5699_v6  ;;  %v1794_v62 = vmul.f32 1.442695, %v1767_v47 }
 0x2fa   : > { %v5019_v56 = vpop.eup %5018  ;;  %5022 = vpow2.f32 %v1796_v49  ;;  %v1813_v60 = vmul.f32 %v5017_v53, %v5701_v1 }
 0x2fb   : > { %v5021_v20 = vpop.eup %5020  ;;  %5024 = vpow2.f32 %v1798_v18  ;;  %v1810_v52 = vmul.f32 %v5019_v56, %v5670_v27 }
 0x2fc   : > { %5026 = vpow2.f32 %v1800_v9  ;;  %v1832_v15 = vadd.f32 %v1813_v60, %v1812_v51  ;;  %v1811_v45 = vmul.f32 %v5021_v20, %v5672_v3 }
 0x2fd   : > { %5028 = vpow2.f32 %v1802_v25  ;;  %v1862_v30 = vpack.c.bf16 %v1810_v52, %v6284_v16 }
 0x2fe   : > { %5030 = vpow2.f32 %v1792_v34  ;;  %1833 = vadd.xlane.f32.xlu1 %v1832_v15  ;;  %v1829_v17 = vadd.f32 %v1811_v45, %v1810_v52  ;;  %v1863_v11 = vpack.c.bf16 %v1811_v45, %v6287_v40 }
 0x2ff   : > { %5032 = vpow2.f32 %v1794_v62 }
 0x300   : > { %v5023_v13 = vpop.eup %5022  ;;  %1830 = vadd.xlane.f32.xlu0 %v1829_v17 }
 0x301   : > { %v5025_v44 = vpop.eup %5024  ;;  %v1816_v32 = vmul.f32 %v5023_v13, %v5706_v31 }
 0x302   : > { %v5027_v22 = vpop.eup %5026  ;;  %v1817_v33 = vmul.f32 %v5025_v44, %v5709_v24  ;;  %v7393_v44 = vld [vmem:[#allocation14_spill] sm:$0xff] }
 0x303   : > { %v5029_v0 = vpop.eup %5028  ;;  %v1818_v58 = vmul.f32 %v5027_v22, %v5735_v61 }
 0x304   : > { %v5031_v55 = vpop.eup %5030  ;;  %v1838_v36 = vadd.f32 %v1817_v33, %v1816_v32  ;;  %v1819_v29 = vmul.f32 %v5029_v0, %v5737_v4 }
 0x305   : > { %v5033_v59 = vpop.eup %5032  ;;  %2010 = vmatmul.bf16.gmra.mxu2 %v1862_v30  ;;  %v1814_v63 = vmul.f32 %v5031_v55, %v5691_v19  ;;  %v1866_v40 = vpack.c.bf16 %v1818_v58, %v1816_v32 }
 0x306   : > { %v1841_v43 = vadd.f32 %v1819_v29, %v1818_v58  ;;  %2039 = vmatmul.bf16.gmra.mxu3 %v1863_v11  ;;  %v1815_v35 = vmul.f32 %v5033_v59, %v5696_v50  ;;  %v1867_v47 = vpack.c.bf16 %v1819_v29, %v1817_v33 }
 0x307   : > { %v1864_v37 = vpack.c.bf16 %v1814_v63, %v1812_v51 }
 0x308   : > { %1839 = vadd.xlane.f32.xlu0 %v1838_v36  ;;  %1842 = vadd.xlane.f32.xlu1 %v1841_v43  ;;  %v1835_v54 = vadd.f32 %v1815_v35, %v1814_v63  ;;  %v1865_v16 = vpack.c.bf16 %v1815_v35, %v1813_v60 }
 0x30a   : > { %1836 = vadd.xlane.f32.xlu2 %v1835_v54 }
 0x315   : > { %2015 = vmatmul.bf16.gmra.mxu2 %v1864_v37 }
 0x316   : > { %2044 = vmatmul.bf16.gmra.mxu3 %v1865_v16  ;;  %v7394_v16 = vld [vmem:[#allocation7_spill] sm:$0xff] }
 0x31c   : > { %2078 = vperm.xlu0 %4850, %v6085_v39  }
 0x321   : > { %2082 = vperm.xlu1 %4851, %v6093_v46  }
 0x322   : > { %2074 = vperm.xlu2 %4849, %v6081_v26  }
 0x325   : > { %2020 = vmatmul.bf16.gmra.mxu2 %v1866_v40  ;;  %v524_v40 = vmax.f32 %v7394_v16, 1e-20 }
 0x326   : > { %2049 = vmatmul.bf16.gmra.mxu3 %v1867_v47  ;;  %v7395_v47 = vld [vmem:[#allocation15_spill] sm:$0xff] }
 0x329   : > { %2090 = vperm.xlu1 %4851, %v6101_v10  }
 0x32a   : > { %2086 = vperm.xlu2 %4849, %v6097_v48  }
 0x331   : > { %2098 = vperm.xlu1 %4851, %v6109_v5   ;;  %v7392_v5 = vld [vmem:[#allocation13_spill] sm:$0xff] }
 0x332   : > { %2094 = vperm.xlu2 %4849, %v6105_v41  }
 0x33a   : > { %2102 = vperm.xlu2 %4849, %v6089_v57   ;;  %v4302_v57 = vld [vmem:[%s7357_s2 + $0x4] ss:$8 sm:$0x3] }
 0x33b   : > { %v6335_v62 = vperm.slane %v4302_v57, 0  ;;  %v6337_v52 = vperm.slane %v4302_v57, 1 }
 0x35f   : > { %v1828_v7 = vpop.xlane.xlu2 %1827 }
 0x360   : > { %v1846_v56 = vmax.f32 %v1828_v7, 1e-20 }
 0x362   : > { %v1822_v28 = vpop.xlane.xlu0 %1821 }
 0x363   : > { %v1844_v39 = vmax.f32 %v1822_v28, 1e-20 }
 0x365   : > { %5034 = vrcp.f32 %v1844_v39 }
 0x369   : > { %v1825_v46 = vpop.xlane.xlu1 %1824 }
 0x36a   : > { %v1845_v49 = vmax.f32 %v1825_v46, 1e-20 }
 0x36b   : > { %v5035_v9 = vpop.eup %5034 }
 0x36c   : > { %5036 = vrcp.f32 %v1845_v49 }
 0x36d   : > { %5038 = vrcp.f32 %v1846_v56 }
 0x371   : > { %v6333_v34 = vpop.xlane.xlu1 %1833 }
 0x372   : > { %v5037_v15 = vpop.eup %5036 }
 0x373   : > { %v1831_v25 = vpop.xlane.xlu0 %1830  ;;  %v5039_v63 = vpop.eup %5038 }
 0x374   : > { %v1847_v55 = vmax.f32 %v1831_v25, 1e-20 }
 0x376   : > { %5040 = vrcp.f32 %v1847_v55  ;;  %v7397_v55 = vld [vmem:[#allocation11_spill] sm:$0xff] }
 0x377   : > { %5042 = vrcp.f32 %v524_v40 }
 0x378   : > { %v2006_v26 = vpop.f32.mrf.mxu2 }
 0x379   : > { %v2035_v18 = vpop.f32.mrf.mxu3 }
 0x37a   : > { %v2036_v53 = vadd.f32 %v2035_v18, %v2006_v26  ;;  %v7396_v26 = vld [vmem:[#allocation8_spill] sm:$0xff]  ;;  %v1848_v18 = vmax.f32 %v6333_v34, 1e-20 }
 0x37b   : > { %v6339_v13 = vpop.xlane.xlu0 %1839  ;;  %v6350_v43 = vpop.xlane.xlu1 %1842  ;;  %v965_v49 = vmax.f32 %v7396_v26, 1e-20 }
 0x37c   : > { %v2055_v10 = vmul.f32 %v5035_v9, %v2036_v53  ;;  %v5041_v34 = vpop.eup %5040 }
 0x37d   : > { %v6325_v48 = vpop.xlane.xlu2 %1836  ;;  %5044 = vrcp.f32 %v965_v49 }
 0x37e   : > { %v6328_v51 = vadd.f32 %v2055_v10, %v7392_v5  ;;  %5046 = vrcp.f32 %v1848_v18  ;;  %v5275_v18 = vmov 5  }
 0x37f   : > { %4852 = vset.pattern.permute.xlu2 %v5275_v18  ;;  %4854 = vset.pattern.permute.xlu1 %v5275_v18 }
 0x380   : > { %v2008_v41 = vpop.f32.mrf.mxu2  ;;  %4853 = vset.pattern.permute.xlu0 %v5275_v18 }
 0x381   : > { %v2037_v60 = vpop.f32.mrf.mxu3 }
 0x382   : > { %v2038_v20 = vadd.f32 %v2037_v60, %v2008_v41 }
 0x384   : > { %v2056_v45 = vmul.f32 %v5037_v15, %v2038_v20 }
 0x385   : > { %v2075_v17 = vpop.permute.xlu2 %2074 }
 0x386   : > { %v6342_v32 = vadd.f32 %v2056_v45, %v7393_v44  ;;  %v2110_v22 = vadd.f32 %v6335_v62, %v2075_v17  ;;  %v2111_v33 = vadd.f32 %v6337_v52, %v2075_v17 }
 0x388   : > { %v2142_v0 = vmul.f32 0.2, %v2110_v22  ;;  %v2143_v58 = vmul.f32 0.2, %v2111_v33  ;;  %v2011_v30 = vpop.f32.mrf.mxu2  ;;  %vm2126_vm0 = vcmp.gt.f32.partialorder %v2110_v22, 0.0  ;;  %vm2127_vm1 = vcmp.gt.f32.partialorder %v2111_v33, 0.0 }
 0x389   : > { %v2040_v36 = vpop.f32.mrf.mxu3 }
 0x38a   : > { %v2041_v29 = vadd.f32 %v2040_v36, %v2011_v30  ;;  %v6346_v11 = vsel %vm2126_vm0, %v2110_v22, %v2142_v0  ;;  %v6348_v59 = vsel %vm2127_vm1, %v2111_v33, %v2143_v58  ;;  %v7398_v36 = vld [vmem:[#allocation12_spill] sm:$0xff] }
 0x38b   : > { %v2174_v35 = vmax.f32 %v6346_v11, %v6348_v59 }
 0x38c   : > { %v2057_v54 = vmul.f32 %v5039_v63, %v2041_v29  ;;  %v1164_v29 = vadd.f32 %v7398_v36, %v7397_v55 }
 0x38d   : > { %2175 = vmax.xlane.f32.xlu0 %v2174_v35  ;;  %v2087_v37 = vpop.permute.xlu2 %2086 }
 0x38e   : > { %v6356_v28 = vadd.f32 %v2057_v54, %v7395_v47  ;;  %v2116_v39 = vadd.f32 %v6335_v62, %v2087_v37  ;;  %v2117_v7 = vadd.f32 %v6337_v52, %v2087_v37  ;;  %v2079_v46 = vpop.permute.xlu0 %2078  ;;  %v7399_v37 = vld [vmem:[#allocation16_spill] sm:$0xff] }
 0x38f   : > { %v2112_v53 = vadd.f32 %v6335_v62, %v2079_v46  ;;  %v2113_v9 = vadd.f32 %v6337_v52, %v2079_v46 }
 0x390   : > { %v2148_v25 = vmul.f32 0.2, %v2116_v39  ;;  %v2149_v10 = vmul.f32 0.2, %v2117_v7  ;;  %v2013_v5 = vpop.f32.mrf.mxu2  ;;  %vm2132_vm2 = vcmp.gt.f32.partialorder %v2116_v39, 0.0  ;;  %vm2133_vm3 = vcmp.gt.f32.partialorder %v2117_v7, 0.0 }
 0x391   : > { %v2144_v57 = vmul.f32 0.2, %v2112_v53  ;;  %v2145_v41 = vmul.f32 0.2, %v2113_v9  ;;  %v2042_v56 = vpop.f32.mrf.mxu3  ;;  %vm2128_vm4 = vcmp.gt.f32.partialorder %v2112_v53, 0.0  ;;  %vm2129_vm5 = vcmp.gt.f32.partialorder %v2113_v9, 0.0 }
 0x392   : > { %v2043_v60 = vadd.f32 %v2042_v56, %v2013_v5  ;;  %v6364_v20 = vsel %vm2132_vm2, %v2116_v39, %v2148_v25  ;;  %v6366_v15 = vsel %vm2133_vm3, %v2117_v7, %v2149_v10  ;;  %v5043_v39 = vpop.eup %5042 }
 0x393   : > { %v2083_v45 = vpop.permute.xlu1 %2082  ;;  %v2183_v17 = vmax.f32 %v6364_v20, %v6366_v15  ;;  %v6370_v44 = vsel %vm2128_vm4, %v2112_v53, %v2144_v57  ;;  %v6372_v22 = vsel %vm2129_vm5, %v2113_v9, %v2145_v41  ;;  %v5045_v53 = vpop.eup %5044  ;;  %v1849_v9 = vmax.f32 %v6325_v48, 1e-20 }
 0x394   : > { %v2114_v33 = vadd.f32 %v6335_v62, %v2083_v45  ;;  %v2115_v0 = vadd.f32 %v6337_v52, %v2083_v45  ;;  %v2058_v58 = vmul.f32 %v5041_v34, %v2043_v60  ;;  %v2177_v30 = vmax.f32 %v6370_v44, %v6372_v22  ;;  %v5047_v56 = vpop.eup %5046  ;;  %v7401_v60 = vld [vmem:[#allocation9_spill] sm:$0xff]  ;;  %v7402_v34 = vld [vmem:[#allocation10_spill] sm:$0xff] }
 0x395   : > { %2184 = vmax.xlane.f32.xlu0 %v2183_v17  ;;  %v2095_v63 = vpop.permute.xlu2 %2094  ;;  %v722_v45 = vadd.f32 %v7402_v34, %v7401_v60  ;;  %v1176_v55 = vmul.f32 %v5045_v53, %v1164_v29  ;;  %5048 = vrcp.f32 %v1849_v9  ;;  %v1850_v29 = vmax.f32 %v6339_v13, 1e-20  ;;  %v4772_v13 = vld [vmem:[%s7356_s1 + $0x278] sm:$0xff] }
 0x396   : > { %v2146_v35 = vmul.f32 0.2, %v2114_v33  ;;  %v2147_v54 = vmul.f32 0.2, %v2115_v0  ;;  %v6381_v16 = vadd.f32 %v2058_v58, %v7399_v37  ;;  %v2120_v40 = vadd.f32 %v6335_v62, %v2095_v63  ;;  %2178 = vmax.xlane.f32.xlu1 %v2177_v30  ;;  %2468 = vmatpush.bf16.msra.mxu1 %v4772_v13 }
 0x397   : > { %v2121_v47 = vadd.f32 %v6337_v52, %v2095_v63  ;;  %vm2130_vm6 = vcmp.gt.f32.partialorder %v2114_v33, 0.0  ;;  %vm2131_vm7 = vcmp.gt.f32.partialorder %v2115_v0, 0.0  ;;  %5050 = vrcp.f32 %v1850_v29 }
 0x398   : > { %7400 = vst [vmem:[#allocation13_spill] sm:$0xff] %v6381_v16  ;;  %v2152_v7 = vmul.f32 0.2, %v2120_v40  ;;  %v2016_v46 = vpop.f32.mrf.mxu2  ;;  %v6385_v26 = vsel %vm2130_vm6, %v2114_v33, %v2146_v35  ;;  %v6387_v49 = vsel %vm2131_vm7, %v2115_v0, %v2147_v54  ;;  %vm2136_vm8 = vcmp.gt.f32.partialorder %v2120_v40, 0.0  ;;  %v7403_v54 = vld [vmem:[#allocation17_spill] sm:$0xff] }
 0x399   : > { %v2153_v25 = vmul.f32 0.2, %v2121_v47  ;;  %v2045_v10 = vpop.f32.mrf.mxu3  ;;  %v2180_v5 = vmax.f32 %v6385_v26, %v6387_v49  ;;  %vm2137_vm9 = vcmp.gt.f32.partialorder %v2121_v47, 0.0 }
 0x39a   : > { %v2046_v57 = vadd.f32 %v2045_v10, %v2016_v46  ;;  %v6392_v41 = vsel %vm2136_vm8, %v2120_v40, %v2152_v7  ;;  %v734_v7 = vmul.f32 %v5043_v39, %v722_v45  ;;  %v4764_v39 = vld [vmem:[%s7356_s1 + $0x238] sm:$0xff]  ;;  %v7405_v45 = vld [vmem:[#allocation18_spill] sm:$0xff] }
 0x39b   : > { %v2091_v17 = vpop.permute.xlu1 %2090  ;;  %2181 = vmax.xlane.f32.xlu2 %v2180_v5  ;;  %v6396_v33 = vsel %vm2137_vm9, %v2121_v47, %v2153_v25  ;;  %v5049_v60 = vpop.eup %5048  ;;  %2439 = vmatpush.bf16.msra.mxu0 %v4764_v39 }
 0x39c   : > { %v2118_v48 = vadd.f32 %v6335_v62, %v2091_v17  ;;  %v2119_v0 = vadd.f32 %v6337_v52, %v2091_v17  ;;  %v2059_v58 = vmul.f32 %v5047_v56, %v2046_v57  ;;  %v2189_v30 = vmax.f32 %v6392_v41, %v6396_v33 }
 0x39d   : > { %v2103_v36 = vpop.permute.xlu2 %2102  ;;  %v1184_v57 = vadd.f32 %v1176_v55, %v734_v7  ;;  %v1851_v7 = vmax.f32 %v6350_v43, 1e-20 }
 0x39e   : > { %v2150_v63 = vmul.f32 0.2, %v2118_v48  ;;  %v2151_v35 = vmul.f32 0.2, %v2119_v0  ;;  %v6403_v37 = vadd.f32 %v2059_v58, %v7403_v54  ;;  %v2124_v40 = vadd.f32 %v6335_v62, %v2103_v36  ;;  %2190 = vmax.xlane.f32.xlu1 %v2189_v30 }
 0x39f   : > { %v2125_v47 = vadd.f32 %v6337_v52, %v2103_v36  ;;  %vm2134_vm10 = vcmp.gt.f32.partialorder %v2118_v48, 0.0  ;;  %vm2135_vm11 = vcmp.gt.f32.partialorder %v2119_v0, 0.0  ;;  %v1626_v17 = vadd.f32 %v7405_v45, %v1184_v57  ;;  %v4763_v36 = vld [vmem:[%s7356_s1 + $0x230] sm:$0xff]  ;;  %v6451_v45 = vld [vmem:[%s5326_s24] sm:$0xff] }
 0x3a0   : > { %7404 = vst [vmem:[#allocation14_spill] sm:$0xff] %v6403_v37  ;;  %v2018_v46 = vpop.f32.mrf.mxu2  ;;  %v6407_v18 = vsel %vm2134_vm10, %v2118_v48, %v2150_v63  ;;  %v6409_v25 = vsel %vm2135_vm11, %v2119_v0, %v2151_v35  ;;  %v2156_v53 = vmul.f32 0.2, %v2124_v40  ;;  %vm2140_vm12 = vcmp.gt.f32.partialorder %v2124_v40, 0.0  ;;  %v4771_v63 = vld [vmem:[%s7356_s1 + $0x270] sm:$0xff]  ;;  %2440 = vmatpush.bf16.msra.mxu0 %v4763_v36 }
 0x3a1   : > { %v2157_v9 = vmul.f32 0.2, %v2125_v47  ;;  %v2047_v10 = vpop.f32.mrf.mxu3  ;;  %v2186_v5 = vmax.f32 %v6407_v18, %v6409_v25  ;;  %vm2141_vm13 = vcmp.gt.f32.partialorder %v2125_v47, 0.0  ;;  %2469 = vmatpush.bf16.msra.mxu1 %v4771_v63  ;;  %5052 = vrcp.f32 %v1851_v7  ;;  %v4759_v36 = vld [vmem:[%s7356_s1 + $0x210] sm:$0xff]  ;;  %v4765_v7 = vld [vmem:[%s7356_s1 + $0x240] sm:$0xff] }
 0x3a2   : > { %v2048_v56 = vadd.f32 %v2047_v10, %v2018_v46  ;;  %v6423_v30 = vsel %vm2140_vm12, %v2124_v40, %v2156_v53  ;;  %v5051_v10 = vpop.eup %5050  ;;  %v4767_v63 = vld [vmem:[%s7356_s1 + $0x250] sm:$0xff] }
 0x3a3   : > { %v2099_v34 = vpop.permute.xlu1 %2098  ;;  %2187 = vmax.xlane.f32.xlu2 %v2186_v5  ;;  %v6425_v55 = vsel %vm2141_vm13, %v2125_v47, %v2157_v9 }
 0x3a4   : > { %v2122_v48 = vadd.f32 %v6335_v62, %v2099_v34  ;;  %v2123_v0 = vadd.f32 %v6337_v52, %v2099_v34  ;;  %v2060_v58 = vmul.f32 %v5049_v60, %v2048_v56  ;;  %v2195_v53 = vmax.f32 %v6423_v30, %v6425_v55 }
 0x3a6   : > { %v2154_v35 = vmul.f32 0.2, %v2122_v48  ;;  %v2155_v62 = vmul.f32 0.2, %v2123_v0  ;;  %v6433_v54 = vadd.f32 %v2060_v58, %v1626_v17  ;;  %vm2138_vm14 = vcmp.gt.f32.partialorder %v2122_v48, 0.0  ;;  %v4762_v17 = vld [vmem:[%s7356_s1 + $0x228] sm:$0xff] }
 0x3a7   : > { %vm2139_vm15 = vcmp.gt.f32.partialorder %v2123_v0, 0.0  ;;  %v5053_v34 = vpop.eup %5052  ;;  %2441 = vmatpush.bf16.msra.mxu0 %v4762_v17  ;;  %v4768_v58 = vld [vmem:[%s7356_s1 + $0x258] sm:$0xff] }
 0x3a8   : > { %v2021_v52 = vpop.f32.mrf.mxu2  ;;  %v6435_v40 = vsel %vm2138_vm14, %v2122_v48, %v2154_v35  ;;  %v6437_v47 = vsel %vm2139_vm15, %v2123_v0, %v2155_v62  ;;  %v4761_v48 = vld [vmem:[%s7356_s1 + $0x220] sm:$0xff]  ;;  %v4760_v0 = vld [vmem:[%s7356_s1 + $0x218] sm:$0xff]  ;;  %v4758_v35 = vld [vmem:[%s7356_s1 + $0x208] sm:$0xff] }
 0x3a9   : > { %v2050_v46 = vpop.f32.mrf.mxu3  ;;  %v2192_v29 = vmax.f32 %v6435_v40, %v6437_v47  ;;  %v4766_v62 = vld [vmem:[%s7356_s1 + $0x248] sm:$0xff] }
 0x3aa   : > { %v2051_v9 = vadd.f32 %v2050_v46, %v2021_v52  ;;  %v4757_v52 = vld [vmem:[%s7356_s1 + $0x200] sm:$0xff] }
 0x3ab   : > { %2193 = vmax.xlane.f32.xlu0 %v2192_v29  ;;  %2196 = vmax.xlane.f32.xlu2 %v2195_v53 }
 0x3ac   : > { %v2061_v5 = vmul.f32 %v5051_v10, %v2051_v9  ;;  %2442 = vmatpush.bf16.msra.mxu0 %v4761_v48 }
 0x3ae   : > { %v6445_v57 = vadd.f32 %v2061_v5, %v6231_v38  ;;  %v4770_v38 = vld [vmem:[%s7356_s1 + $0x268] sm:$0xff] }
 0x3af   : > { %2470 = vmatpush.bf16.msra.mxu1 %v4770_v38 }
 0x3b0   : > { %7406 = vst [vmem:[#allocation7_spill] sm:$0xff] %v6445_v57  ;;  %v2023_v43 = vpop.f32.mrf.mxu2  ;;  %2443 = vmatpush.bf16.msra.mxu0 %v4760_v0 }
 0x3b1   : > { %v2052_v56 = vpop.f32.mrf.mxu3 }
 0x3b2   : > { %v2053_v60 = vadd.f32 %v2052_v56, %v2023_v43 }
 0x3b4   : > { %v2062_v39 = vmul.f32 %v5053_v34, %v2053_v60  ;;  %2444 = vmatpush.bf16.msra.mxu0 %v4759_v36 }
 0x3b6   : > { %v6448_v13 = vadd.f32 %v2062_v39, %v6239_v23  ;;  %v4769_v23 = vld [vmem:[%s7356_s1 + $0x260] sm:$0xff] }
 0x3b7   : > { %2471 = vmatpush.bf16.msra.mxu1 %v4769_v23 }
 0x3b8   : > { %7407 = vst [vmem:[#allocation15_spill] sm:$0xff] %v6448_v13  ;;  %2445 = vmatpush.bf16.msra.mxu0 %v4758_v35 }
 0x3bb   : > { %2472 = vmatpush.bf16.msra.mxu1 %v4768_v58 }
 0x3bc   : > { %2446 = vmatpush.bf16.msra.mxu0 %v4757_v52 }
 0x3bf   : > { %2473 = vmatpush.bf16.msra.mxu1 %v4767_v63 }
 0x3c3   : > { %2516 = vperm.xlu2 %4852, %v6451_v45   ;;  %2474 = vmatpush.bf16.msra.mxu1 %v4766_v62 }
 0x3c7   : > { %2475 = vmatpush.bf16.msra.mxu1 %v4765_v7 }
 0x400   : > { %v2176_v46 = vpop.xlane.xlu0 %2175 }
 0x401   : > { %v2198_v29 = vsub.f32 %v6346_v11, %v2176_v46  ;;  %v2199_v53 = vsub.f32 %v6348_v59, %v2176_v46 }
 0x403   : > { %v2214_v9 = vmul.f32 1.442695, %v2198_v29  ;;  %v2216_v10 = vmul.f32 1.442695, %v2199_v53 }
 0x405   : > { %5054 = vpow2.f32 %v2214_v9 }
 0x406   : > { %5056 = vpow2.f32 %v2216_v10 }
 0x408   : > { %v2185_v5 = vpop.xlane.xlu0 %2184 }
 0x409   : > { %v2204_v43 = vsub.f32 %v6364_v20, %v2185_v5  ;;  %v2205_v56 = vsub.f32 %v6366_v15, %v2185_v5  ;;  %v2179_v60 = vpop.xlane.xlu1 %2178 }
 0x40a   : > { %v2200_v34 = vsub.f32 %v6370_v44, %v2179_v60  ;;  %v2201_v39 = vsub.f32 %v6372_v22, %v2179_v60 }
 0x40b   : > { %v5055_v17 = vpop.eup %5054  ;;  %v2226_v38 = vmul.f32 1.442695, %v2204_v43  ;;  %v2228_v48 = vmul.f32 1.442695, %v2205_v56 }
 0x40c   : > { %v5057_v11 = vpop.eup %5056  ;;  %v2218_v23 = vmul.f32 1.442695, %v2200_v34  ;;  %v2220_v59 = vmul.f32 1.442695, %v2201_v39  ;;  %v2246_v0 = vmul.f32 %v5055_v17, %v5632_v21 }
 0x40d   : > { %5058 = vpow2.f32 %v2226_v38  ;;  %v2247_v58 = vmul.f32 %v5057_v11, %v5644_v42 }
 0x40e   : > { %5060 = vpow2.f32 %v2228_v48  ;;  %v2182_v20 = vpop.xlane.xlu2 %2181 }
 0x40f   : > { %5062 = vpow2.f32 %v2218_v23  ;;  %v2202_v15 = vsub.f32 %v6385_v26, %v2182_v20  ;;  %v2203_v44 = vsub.f32 %v6387_v49, %v2182_v20  ;;  %v2262_v36 = vadd.f32 %v2247_v58, %v2246_v0 }
 0x410   : > { %5064 = vpow2.f32 %v2220_v59 }
 0x411   : > { %v2222_v22 = vmul.f32 1.442695, %v2202_v15  ;;  %v2224_v63 = vmul.f32 1.442695, %v2203_v44  ;;  %2263 = vadd.xlane.f32.xlu1 %v2262_v36  ;;  %v2191_v35 = vpop.xlane.xlu1 %2190 }
 0x412   : > { %v2208_v62 = vsub.f32 %v6392_v41, %v2191_v35  ;;  %v2209_v52 = vsub.f32 %v6396_v33, %v2191_v35 }
 0x413   : > { %v5059_v7 = vpop.eup %5058  ;;  %5066 = vpow2.f32 %v2222_v22 }
 0x414   : > { %v5061_v46 = vpop.eup %5060  ;;  %5068 = vpow2.f32 %v2224_v63  ;;  %v2234_v29 = vmul.f32 1.442695, %v2208_v62  ;;  %v2236_v53 = vmul.f32 1.442695, %v2209_v52  ;;  %v6503_v26 = vmul.f32 %v5059_v7, %v5670_v27 }
 0x415   : > { %v5063_v49 = vpop.eup %5062  ;;  %v6506_v9 = vmul.f32 %v5061_v46, %v5672_v3  ;;  %v4399_v52 = vld [vmem:[%s7357_s2 + $0x5] ss:$8 sm:$0x3] }
 0x416   : > { %v5065_v10 = vpop.eup %5064  ;;  %5070 = vpow2.f32 %v2234_v29  ;;  %v2188_v5 = vpop.xlane.xlu2 %2187  ;;  %v2248_v41 = vmul.f32 %v5063_v49, %v5663_v2 }
 0x417   : > { %5072 = vpow2.f32 %v2236_v53  ;;  %v2206_v33 = vsub.f32 %v6407_v18, %v2188_v5  ;;  %v2207_v43 = vsub.f32 %v6409_v25, %v2188_v5  ;;  %v2249_v56 = vmul.f32 %v5065_v10, %v5661_v12 }
 0x418   : > { %v2302_v60 = vpack.c.bf16 %v2248_v41, %v2246_v0  ;;  %v6514_v34 = vadd.f32 %v6506_v9, %v6503_v26 }
 0x419   : > { %v5067_v39 = vpop.eup %5066  ;;  %v2230_v17 = vmul.f32 1.442695, %v2206_v33  ;;  %v2232_v38 = vmul.f32 1.442695, %v2207_v43  ;;  %v2265_v48 = vadd.f32 %v2249_v56, %v2248_v41  ;;  %v2303_v11 = vpack.c.bf16 %v2249_v56, %v2247_v58 }
 0x41a   : > { %v5069_v23 = vpop.eup %5068  ;;  %2447 = vmatmul.bf16.vlgmr.msra.gmra.mxu0 %v2302_v60  ;;  %v2250_v59 = vmul.f32 %v5067_v39, %v5628_v8 }
 0x41b   : > { %5074 = vpow2.f32 %v2230_v17  ;;  %2266 = vadd.xlane.f32.xlu0 %v2265_v48  ;;  %2476 = vmatmul.bf16.vlgmr.msra.gmra.mxu1 %v2303_v11  ;;  %v2251_v18 = vmul.f32 %v5069_v23, %v5630_v14 }
 0x41c   : > { %v5071_v25 = vpop.eup %5070  ;;  %5076 = vpow2.f32 %v2232_v38  ;;  %v2304_v60 = vpack.c.bf16 %v6503_v26, %v2250_v59 }
 0x41d   : > { %v5073_v0 = vpop.eup %5072  ;;  %v2268_v20 = vadd.f32 %v2251_v18, %v2250_v59  ;;  %v2256_v15 = vmul.f32 %v5071_v25, %v5691_v19  ;;  %v2305_v39 = vpack.c.bf16 %v6506_v9, %v2251_v18 }
 0x41e   : > { %v2197_v44 = vpop.xlane.xlu2 %2196  ;;  %v2194_v36 = vpop.xlane.xlu0 %2193  ;;  %v2257_v22 = vmul.f32 %v5073_v0, %v5696_v50 }
 0x41f   : > { %v2212_v58 = vsub.f32 %v6423_v30, %v2197_v44  ;;  %v2213_v63 = vsub.f32 %v6425_v55, %v2197_v44  ;;  %2269 = vadd.xlane.f32.xlu1 %v2268_v20  ;;  %v2210_v35 = vsub.f32 %v6435_v40, %v2194_v36  ;;  %v2211_v62 = vsub.f32 %v6437_v47, %v2194_v36 }
 0x420   : > { %v6527_v7 = vadd.f32 %v2257_v22, %v2256_v15  ;;  %v6530_v55 = vperm.slane %v4399_v52, 0  ;;  %v6532_v40 = vperm.slane %v4399_v52, 1 }
 0x421   : > { %v5075_v46 = vpop.eup %5074  ;;  %v2242_v29 = vmul.f32 1.442695, %v2212_v58  ;;  %v2244_v53 = vmul.f32 1.442695, %v2213_v63  ;;  %v2238_v49 = vmul.f32 1.442695, %v2210_v35 }
 0x422   : > { %v5077_v10 = vpop.eup %5076  ;;  %v2240_v5 = vmul.f32 1.442695, %v2211_v62  ;;  %v2254_v30 = vmul.f32 %v5075_v46, %v5699_v6  ;;  %v6554_v58 = vld [vmem:[%s5326_s24 + $0x10] sm:$0xff]  ;;  %v6560_v35 = vld [vmem:[%s5326_s24 + $0x8] sm:$0xff]  ;;  %v6564_v46 = vld [vmem:[%s5326_s24 + $0x20] sm:$0xff] }
 0x423   : > { %5078 = vpow2.f32 %v2242_v29  ;;  %v2255_v47 = vmul.f32 %v5077_v10, %v5701_v1  ;;  %v6568_v29 = vld [vmem:[%s5326_s24 + $0x18] sm:$0xff] }
 0x424   : > { %5080 = vpow2.f32 %v2244_v53  ;;  %v2306_v62 = vpack.c.bf16 %v2256_v15, %v2254_v30  ;;  %v6572_v53 = vld [vmem:[%s5326_s24 + $0x30] sm:$0xff]  ;;  %v6576_v15 = vld [vmem:[%s5326_s24 + $0x28] sm:$0xff] }
 0x425   : > { %5082 = vpow2.f32 %v2238_v49  ;;  %v6535_v41 = vadd.f32 %v2255_v47, %v2254_v30  ;;  %v2307_v52 = vpack.c.bf16 %v2257_v22, %v2255_v47  ;;  %v6580_v22 = vld [vmem:[%s5326_s24 + $0x38] sm:$0xff] }
 0x426   : > { %5084 = vpow2.f32 %v2240_v5  ;;  %v2517_v33 = vpop.permute.xlu2 %2516  ;;  %v7361_v5 = vmov 6  }
 0x427   : > { %v2552_v43 = vadd.f32 %v6530_v55, %v2517_v33  ;;  %v2553_v56 = vadd.f32 %v6532_v40, %v2517_v33 }
 0x429   : > { %v5079_v17 = vpop.eup %5078  ;;  %v2584_v38 = vmul.f32 0.2, %v2552_v43  ;;  %v2585_v48 = vmul.f32 0.2, %v2553_v56  ;;  %vm2568_vm0 = vcmp.gt.f32.partialorder %v2552_v43, 0.0  ;;  %vm2569_vm1 = vcmp.gt.f32.partialorder %v2553_v56, 0.0 }
 0x42a   : > { %v5081_v11 = vpop.eup %5080  ;;  %2452 = vmatmul.bf16.gmra.mxu0 %v2304_v60  ;;  %v2260_v23 = vmul.f32 %v5079_v17, %v5735_v61 }
 0x42b   : > { %v5083_v25 = vpop.eup %5082  ;;  %2481 = vmatmul.bf16.gmra.mxu1 %v2305_v39  ;;  %v6542_v0 = vsel %vm2568_vm0, %v2552_v43, %v2584_v38  ;;  %v6544_v20 = vsel %vm2569_vm1, %v2553_v56, %v2585_v48  ;;  %v2261_v26 = vmul.f32 %v5081_v11, %v5737_v4 }
 0x42c   : > { %v5085_v9 = vpop.eup %5084  ;;  %v2616_v59 = vmax.f32 %v6542_v0, %v6544_v20  ;;  %v2258_v18 = vmul.f32 %v5083_v25, %v5706_v31 }
 0x42d   : > { %v2259_v44 = vmul.f32 %v5085_v9, %v5709_v24  ;;  %v6551_v36 = vadd.f32 %v2261_v26, %v2260_v23 }
 0x42e   : > { %2617 = vmax.xlane.f32.xlu2 %v2616_v59  ;;  %v2308_v49 = vpack.c.bf16 %v2260_v23, %v2258_v18 }
 0x42f   : > { %2524 = vperm.xlu0 %4853, %v6554_v58   ;;  %v6557_v63 = vadd.f32 %v2259_v44, %v2258_v18  ;;  %v2309_v10 = vpack.c.bf16 %v2261_v26, %v2259_v44 }
 0x438   : > { %2520 = vperm.xlu1 %4854, %v6560_v35  }
 0x43a   : > { %2457 = vmatmul.bf16.gmra.mxu0 %v2306_v62 }
 0x43b   : > { %2486 = vmatmul.bf16.gmra.mxu1 %v2307_v52 }
 0x440   : > { %2532 = vperm.xlu1 %4854, %v6564_v46  }
 0x446   : > { %2528 = vperm.xlu2 %4852, %v6568_v29  }
 0x448   : > { %2540 = vperm.xlu1 %4854, %v6572_v53  }
 0x44a   : > { %2462 = vmatmul.bf16.gmra.mxu0 %v2308_v49 }
 0x44b   : > { %2491 = vmatmul.bf16.gmra.mxu1 %v2309_v10 }
 0x44e   : > { %2536 = vperm.xlu2 %4852, %v6576_v15  }
 0x450   : > { %4857 = vset.pattern.permute.xlu1 %v7361_v5 }
 0x451   : > { %2962 = vperm.xlu1 %4857, %v6560_v35  }
 0x456   : > { %2544 = vperm.xlu2 %4852, %v6580_v22  }
 0x45e   : > { %4856 = vset.pattern.permute.xlu2 %v7361_v5 }
 0x45f   : > { %2958 = vperm.xlu2 %4856, %v6451_v45  }
 0x484   : > { %v2264_v30 = vpop.xlane.xlu1 %2263 }
 0x485   : > { %v2286_v47 = vmax.f32 %v2264_v30, 1e-20 }
 0x487   : > { %5086 = vrcp.f32 %v2286_v47 }
 0x48d   : > { %v5087_v17 = vpop.eup %5086 }
 0x48e   : > { %v2267_v33 = vpop.xlane.xlu0 %2266 }
 0x48f   : > { %v2287_v56 = vmax.f32 %v2267_v33, 1e-20 }
 0x491   : > { %5088 = vrcp.f32 %v2287_v56 }
 0x492   : > { %v2270_v48 = vpop.xlane.xlu1 %2269 }
 0x493   : > { %v2288_v25 = vmax.f32 %v2270_v48, 1e-20 }
 0x495   : > { %5090 = vrcp.f32 %v2288_v25 }
 0x497   : > { %v2448_v43 = vpop.f32.mrf.mxu0  ;;  %v5089_v18 = vpop.eup %5088 }
 0x498   : > { %v2477_v60 = vpop.f32.mrf.mxu1 }
 0x499   : > { %v2478_v39 = vadd.f32 %v2477_v60, %v2448_v43 }
 0x49b   : > { %v2497_v38 = vmul.f32 %v5087_v17, %v2478_v39  ;;  %v5091_v33 = vpop.eup %5090 }
 0x49d   : > { %v6588_v11 = vadd.f32 %v2497_v38, %v6328_v51 }
 0x49f   : > { %v2450_v23 = vpop.f32.mrf.mxu0 }
 0x4a0   : > { %v2479_v26 = vpop.f32.mrf.mxu1 }
 0x4a1   : > { %v2480_v9 = vadd.f32 %v2479_v26, %v2450_v23  ;;  %v6590_v59 = vpop.xlane.xlu2 %2617  ;;  %v2525_v52 = vpop.permute.xlu0 %2524 }
 0x4a2   : > { %v2556_v30 = vadd.f32 %v6530_v55, %v2525_v52  ;;  %v2557_v56 = vadd.f32 %v6532_v40, %v2525_v52 }
 0x4a3   : > { %v2498_v44 = vmul.f32 %v5089_v18, %v2480_v9 }
 0x4a4   : > { %v2588_v38 = vmul.f32 0.2, %v2556_v30  ;;  %v2589_v25 = vmul.f32 0.2, %v2557_v56  ;;  %vm2572_vm4 = vcmp.gt.f32.partialorder %v2556_v30, 0.0  ;;  %vm2573_vm5 = vcmp.gt.f32.partialorder %v2557_v56, 0.0 }
 0x4a5   : > { %v6593_v62 = vadd.f32 %v2498_v44, %v6342_v32 }
 0x4a7   : > { %7408 = vst [vmem:[#allocation8_spill] sm:$0xff] %v6593_v62  ;;  %v2453_v49 = vpop.f32.mrf.mxu0 }
 0x4a8   : > { %v2482_v10 = vpop.f32.mrf.mxu1 }
 0x4a9   : > { %v2483_v47 = vadd.f32 %v2482_v10, %v2453_v49  ;;  %v2529_v51 = vpop.permute.xlu2 %2528  ;;  %v6610_v10 = vsel %vm2572_vm4, %v2556_v30, %v2588_v38 }
 0x4aa   : > { %v2521_v43 = vpop.permute.xlu1 %2520 }
 0x4ab   : > { %v2499_v60 = vmul.f32 %v5091_v33, %v2483_v47  ;;  %v2554_v39 = vadd.f32 %v6530_v55, %v2521_v43  ;;  %v2555_v17 = vadd.f32 %v6532_v40, %v2521_v43 }
 0x4ad   : > { %v6600_v32 = vadd.f32 %v2499_v60, %v6356_v28  ;;  %v2586_v48 = vmul.f32 0.2, %v2554_v39  ;;  %v2587_v23 = vmul.f32 0.2, %v2555_v17  ;;  %vm2570_vm2 = vcmp.gt.f32.partialorder %v2554_v39, 0.0 }
 0x4ae   : > { %vm2571_vm3 = vcmp.gt.f32.partialorder %v2555_v17, 0.0  ;;  %v6614_v60 = vsel %vm2573_vm5, %v2557_v56, %v2589_v25 }
 0x4af   : > { %7409 = vst [vmem:[#allocation11_spill] sm:$0xff] %v6600_v32  ;;  %v2455_v26 = vpop.f32.mrf.mxu0  ;;  %v6602_v9 = vsel %vm2570_vm2, %v2554_v39, %v2586_v48  ;;  %v6604_v18 = vsel %vm2571_vm3, %v2555_v17, %v2587_v23  ;;  %v7362_v39 = vmov 7   ;;  %v2558_v17 = vadd.f32 %v6530_v55, %v2529_v51 }
 0x4b0   : > { %v2484_v44 = vpop.f32.mrf.mxu1  ;;  %v2619_v52 = vmax.f32 %v6602_v9, %v6604_v18  ;;  %4858 = vset.pattern.permute.xlu1 %v7362_v39  ;;  %v2559_v48 = vadd.f32 %v6532_v40, %v2529_v51  ;;  %4855 = vset.pattern.permute.xlu0 %v7362_v39 }
 0x4b1   : > { %v6608_v49 = vadd.f32 %v2484_v44, %v2455_v26  ;;  %v2537_v28 = vpop.permute.xlu2 %2536  ;;  %v2590_v39 = vmul.f32 0.2, %v2558_v17  ;;  %vm2574_vm10 = vcmp.gt.f32.partialorder %v2558_v17, 0.0 }
 0x4b2   : > { %v2562_v47 = vadd.f32 %v6530_v55, %v2537_v28  ;;  %v2563_v33 = vadd.f32 %v6532_v40, %v2537_v28  ;;  %2620 = vmax.xlane.f32.xlu0 %v2619_v52  ;;  %v2533_v43 = vpop.permute.xlu1 %2532  ;;  %v2591_v57 = vmul.f32 0.2, %v2559_v48  ;;  %vm2575_vm11 = vcmp.gt.f32.partialorder %v2559_v48, 0.0 }
 0x4b3   : > { %7410 = vst [vmem:[#allocation12_spill] sm:$0xff] %v6608_v49  ;;  %v2560_v23 = vadd.f32 %v6530_v55, %v2533_v43  ;;  %v2561_v30 = vadd.f32 %v6532_v40, %v2533_v43  ;;  %v6642_v37 = vsel %vm2574_vm10, %v2558_v17, %v2590_v39 }
 0x4b4   : > { %v2594_v38 = vmul.f32 0.2, %v2562_v47  ;;  %v2595_v26 = vmul.f32 0.2, %v2563_v33  ;;  %vm2578_vm6 = vcmp.gt.f32.partialorder %v2562_v47, 0.0  ;;  %vm2579_vm7 = vcmp.gt.f32.partialorder %v2563_v33, 0.0 }
 0x4b5   : > { %v2592_v44 = vmul.f32 0.2, %v2560_v23  ;;  %v2593_v56 = vmul.f32 0.2, %v2561_v30  ;;  %vm2576_vm8 = vcmp.gt.f32.partialorder %v2560_v23, 0.0  ;;  %vm2577_vm9 = vcmp.gt.f32.partialorder %v2561_v30, 0.0 }
 0x4b6   : > { %v6622_v25 = vsel %vm2578_vm6, %v2562_v47, %v2594_v38  ;;  %v6624_v52 = vsel %vm2579_vm7, %v2563_v33, %v2595_v26  ;;  %v2622_v47 = vmax.f32 %v6610_v10, %v6614_v60  ;;  %v6644_v62 = vsel %vm2575_vm11, %v2559_v48, %v2591_v57 }
 0x4b7   : > { %v2458_v28 = vpop.f32.mrf.mxu0  ;;  %v2631_v51 = vmax.f32 %v6622_v25, %v6624_v52  ;;  %v6628_v5 = vsel %vm2576_vm8, %v2560_v23, %v2592_v44  ;;  %v6630_v43 = vsel %vm2577_vm9, %v2561_v30, %v2593_v56 }
 0x4b8   : > { %v2487_v32 = vpop.f32.mrf.mxu1  ;;  %v2628_v13 = vmax.f32 %v6628_v5, %v6630_v43 }
 0x4b9   : > { %v6636_v38 = vadd.f32 %v2487_v32, %v2458_v28  ;;  %v2545_v33 = vpop.permute.xlu2 %2544  ;;  %2632 = vmax.xlane.f32.xlu1 %v2631_v51 }
 0x4ba   : > { %2629 = vmax.xlane.f32.xlu2 %v2628_v13  ;;  %v2541_v23 = vpop.permute.xlu1 %2540  ;;  %2623 = vmax.xlane.f32.xlu0 %v2622_v47  ;;  %v2566_v44 = vadd.f32 %v6530_v55, %v2545_v33  ;;  %v2567_v56 = vadd.f32 %v6532_v40, %v2545_v33 }
 0x4bb   : > { %7411 = vst [vmem:[#allocation16_spill] sm:$0xff] %v6636_v38  ;;  %v2564_v30 = vadd.f32 %v6530_v55, %v2541_v23  ;;  %v2565_v26 = vadd.f32 %v6532_v40, %v2541_v23  ;;  %v2625_v55 = vmax.f32 %v6642_v37, %v6644_v62 }
 0x4bc   : > { %v2598_v40 = vmul.f32 0.2, %v2566_v44  ;;  %v2599_v39 = vmul.f32 0.2, %v2567_v56  ;;  %vm2582_vm14 = vcmp.gt.f32.partialorder %v2566_v44, 0.0  ;;  %vm2583_vm15 = vcmp.gt.f32.partialorder %v2567_v56, 0.0 }
 0x4bd   : > { %v2596_v32 = vmul.f32 0.2, %v2564_v30  ;;  %v2597_v28 = vmul.f32 0.2, %v2565_v26  ;;  %vm2580_vm12 = vcmp.gt.f32.partialorder %v2564_v30, 0.0  ;;  %vm2581_vm13 = vcmp.gt.f32.partialorder %v2565_v26, 0.0 }
 0x4be   : > { %v6656_v17 = vsel %vm2582_vm14, %v2566_v44, %v2598_v40  ;;  %v6658_v48 = vsel %vm2583_vm15, %v2567_v56, %v2599_v39  ;;  %v4787_v44 = vld [vmem:[%s7356_s1 + $0x2f0] sm:$0xff]  ;;  %v4786_v56 = vld [vmem:[%s7356_s1 + $0x2e8] sm:$0xff] }
 0x4bf   : > { %v2460_v51 = vpop.f32.mrf.mxu0  ;;  %v6646_v13 = vsel %vm2580_vm12, %v2564_v30, %v2596_v32  ;;  %v6648_v47 = vsel %vm2581_vm13, %v2565_v26, %v2597_v28  ;;  %v2637_v33 = vmax.f32 %v6656_v17, %v6658_v48  ;;  %v4780_v30 = vld [vmem:[%s7356_s1 + $0x2b8] sm:$0xff]  ;;  %v4779_v26 = vld [vmem:[%s7356_s1 + $0x2b0] sm:$0xff]  ;;  %v4777_v32 = vld [vmem:[%s7356_s1 + $0x2a0] sm:$0xff] }
 0x4c0   : > { %v2489_v38 = vpop.f32.mrf.mxu1  ;;  %v2634_v23 = vmax.f32 %v6646_v13, %v6648_v47  ;;  %2881 = vmatpush.bf16.msra.mxu2 %v4780_v30  ;;  %v4785_v28 = vld [vmem:[%s7356_s1 + $0x2e0] sm:$0xff]  ;;  %v4774_v40 = vld [vmem:[%s7356_s1 + $0x288] sm:$0xff] }
 0x4c1   : > { %v6654_v57 = vadd.f32 %v2489_v38, %v2460_v51  ;;  %v4788_v38 = vld [vmem:[%s7356_s1 + $0x2f8] sm:$0xff]  ;;  %v4782_v39 = vld [vmem:[%s7356_s1 + $0x2c8] sm:$0xff]  ;;  %v2959_v30 = vpop.permute.xlu2 %2958 }
 0x4c2   : > { %2635 = vmax.xlane.f32.xlu1 %v2634_v23  ;;  %2626 = vmax.xlane.f32.xlu0 %v2625_v55  ;;  %v4776_v51 = vld [vmem:[%s7356_s1 + $0x298] sm:$0xff]  ;;  %v4775_v55 = vld [vmem:[%s7356_s1 + $0x290] sm:$0xff] }
 0x4c3   : > { %2910 = vmatpush.bf16.msra.mxu3 %v4788_v38  ;;  %v4784_v23 = vld [vmem:[%s7356_s1 + $0x2d8] sm:$0xff] }
 0x4c4   : > { %2882 = vmatpush.bf16.msra.mxu2 %v4779_v26 }
 0x4c7   : > { %2911 = vmatpush.bf16.msra.mxu3 %v4787_v44  ;;  %v4773_v44 = vld [vmem:[%s7356_s1 + $0x280] sm:$0xff] }
 0x4ca   : > { %2638 = vmax.xlane.f32.xlu1 %v2637_v33  ;;  %v4496_v33 = vld [vmem:[%s7357_s2 + $0x6] ss:$8 sm:$0x3] }
 0x4cb   : > { %2912 = vmatpush.bf16.msra.mxu3 %v4786_v56  ;;  %v6717_v38 = vperm.slane %v4496_v33, 0  ;;  %v6719_v26 = vperm.slane %v4496_v33, 1  ;;  %v6739_v33 = vpop.permute.xlu1 %2962 }
 0x4cd   : > { %v2994_v56 = vadd.f32 %v6717_v38, %v2959_v30 }
 0x4cf   : > { %2913 = vmatpush.bf16.msra.mxu3 %v4785_v28  ;;  %v3026_v28 = vmul.f32 0.2, %v2994_v56  ;;  %vm3010_vm0 = vcmp.gt.f32.partialorder %v2994_v56, 0.0 }
 0x4d3   : > { %2914 = vmatpush.bf16.msra.mxu3 %v4784_v23 }
 0x4d6   : > { %3404 = vperm.xlu0 %4855, %v6560_v35   ;;  %v4778_v35 = vld [vmem:[%s7356_s1 + $0x2a8] sm:$0xff] }
 0x4d7   : > { %2883 = vmatpush.bf16.msra.mxu2 %v4778_v35  ;;  %v4781_v35 = vld [vmem:[%s7356_s1 + $0x2c0] sm:$0xff] }
 0x4db   : > { %2884 = vmatpush.bf16.msra.mxu2 %v4777_v32  ;;  %v2995_v32 = vadd.f32 %v6719_v26, %v2959_v30 }
 0x4dd   : > { %vm3011_vm1 = vcmp.gt.f32.partialorder %v2995_v32, 0.0 }
 0x4de   : > { %3408 = vperm.xlu0 %4855, %v6554_v58  }
 0x4df   : > { %2885 = vmatpush.bf16.msra.mxu2 %v4776_v51  ;;  %v6729_v51 = vsel %vm3010_vm0, %v2994_v56, %v3026_v28 }
 0x4e3   : > { %3400 = vperm.xlu1 %4858, %v6451_v45   ;;  %v7412_v45 = vmov 6   ;;  %2886 = vmatpush.bf16.msra.mxu2 %v4775_v55  ;;  %v2640_v55 = vsub.f32 %v6542_v0, %v6590_v59 }
 0x4e6   : > { %3412 = vperm.xlu0 %4855, %v6568_v29  }
 0x4e7   : > { %2887 = vmatpush.bf16.msra.mxu2 %v4774_v40 }
 0x4eb   : > { %3420 = vperm.xlu1 %4858, %v6576_v15   ;;  %2888 = vmatpush.bf16.msra.mxu2 %v4773_v44 }
 0x4ee   : > { %3416 = vperm.xlu0 %4855, %v6564_v46  }
 0x4f3   : > { %3424 = vperm.xlu1 %4858, %v6572_v53  }
 0x4f6   : > { %4859 = vset.pattern.permute.xlu0 %v7412_v45  ;;  %v3027_v45 = vmul.f32 0.2, %v2995_v32 }
 0x4f7   : > { %2970 = vperm.xlu0 %4859, %v6568_v29   ;;  %v4783_v29 = vld [vmem:[%s7356_s1 + $0x2d0] sm:$0xff] }
 0x4f8   : > { %2915 = vmatpush.bf16.msra.mxu3 %v4783_v29  ;;  %v6731_v23 = vsel %vm3011_vm1, %v2995_v32, %v3027_v45  ;;  %v2641_v29 = vsub.f32 %v6544_v20, %v6590_v59 }
 0x4f9   : > { %v3058_v40 = vmax.f32 %v6729_v51, %v6731_v23 }
 0x4fa   : > { %v2658_v30 = vmul.f32 1.442695, %v2641_v29 }
 0x4fb   : > { %3428 = vperm.xlu1 %4858, %v6580_v22  }
 0x4fc   : > { %2916 = vmatpush.bf16.msra.mxu3 %v4782_v39  ;;  %v2656_v39 = vmul.f32 1.442695, %v2640_v55 }
 0x4fe   : > { %5092 = vpow2.f32 %v2656_v39 }
 0x4ff   : > { %5094 = vpow2.f32 %v2658_v30 }
 0x500   : > { %2917 = vmatpush.bf16.msra.mxu3 %v4781_v35 }
 0x504   : > { %v5093_v29 = vpop.eup %5092 }
 0x525   : > { %3059 = vmax.xlane.f32.xlu1 %v3058_v40  ;;  %v2621_v44 = vpop.xlane.xlu0 %2620 }
 0x526   : > { %v2642_v35 = vsub.f32 %v6602_v9, %v2621_v44  ;;  %v2643_v56 = vsub.f32 %v6604_v18, %v2621_v44  ;;  %v5095_v44 = vpop.eup %5094 }
 0x528   : > { %v2660_v32 = vmul.f32 1.442695, %v2642_v35  ;;  %v2662_v28 = vmul.f32 1.442695, %v2643_v56 }
 0x52a   : > { %5096 = vpow2.f32 %v2660_v32 }
 0x52b   : > { %5098 = vpow2.f32 %v2662_v28 }
 0x52c   : > { %v2633_v0 = vpop.xlane.xlu1 %2632 }
 0x52d   : > { %v2630_v20 = vpop.xlane.xlu2 %2629  ;;  %v2650_v59 = vsub.f32 %v6622_v25, %v2633_v0  ;;  %v2651_v45 = vsub.f32 %v6624_v52, %v2633_v0  ;;  %v2624_v55 = vpop.xlane.xlu0 %2623  ;;  %v6750_v52 = vmul.f32 %v5093_v29, %v5632_v21 }
 0x52e   : > { %v2648_v40 = vsub.f32 %v6628_v5, %v2630_v20  ;;  %v2649_v9 = vsub.f32 %v6630_v43, %v2630_v20  ;;  %v2644_v18 = vsub.f32 %v6610_v10, %v2624_v55  ;;  %v2645_v39 = vsub.f32 %v6614_v60, %v2624_v55 }
 0x52f   : > { %v2676_v30 = vmul.f32 1.442695, %v2650_v59  ;;  %v2678_v28 = vmul.f32 1.442695, %v2651_v45  ;;  %v6754_v10 = vmul.f32 %v5095_v44, %v5644_v42 }
 0x530   : > { %v5097_v35 = vpop.eup %5096  ;;  %v2672_v56 = vmul.f32 1.442695, %v2648_v40  ;;  %v2674_v32 = vmul.f32 1.442695, %v2649_v9  ;;  %v2664_v25 = vmul.f32 1.442695, %v2644_v18 }
 0x531   : > { %v5099_v16 = vpop.eup %5098  ;;  %5100 = vpow2.f32 %v2676_v30  ;;  %v2690_v5 = vmul.f32 %v5097_v35, %v5663_v2  ;;  %v2666_v43 = vmul.f32 1.442695, %v2645_v39 }
 0x532   : > { %5102 = vpow2.f32 %v2672_v56  ;;  %v2691_v60 = vmul.f32 %v5099_v16, %v5661_v12 }
 0x533   : > { %5104 = vpow2.f32 %v2674_v32  ;;  %v2744_v0 = vpack.c.bf16 %v2690_v5, %v6750_v52 }
 0x534   : > { %5106 = vpow2.f32 %v2678_v28  ;;  %v2745_v20 = vpack.c.bf16 %v2691_v60, %v6754_v10  ;;  %v6759_v59 = vadd.f32 %v2691_v60, %v2690_v5 }
 0x535   : > { %5108 = vpow2.f32 %v2664_v25  ;;  %v2636_v45 = vpop.xlane.xlu1 %2635  ;;  %2889 = vmatmul.bf16.vlgmr.msra.gmra.mxu2 %v2744_v0  ;;  %v2627_v55 = vpop.xlane.xlu0 %2626 }
 0x536   : > { %5110 = vpow2.f32 %v2666_v43  ;;  %v2652_v29 = vsub.f32 %v6646_v13, %v2636_v45  ;;  %v2653_v40 = vsub.f32 %v6648_v47, %v2636_v45  ;;  %2918 = vmatmul.bf16.vlgmr.msra.gmra.mxu3 %v2745_v20  ;;  %v2646_v16 = vsub.f32 %v6642_v37, %v2627_v55 }
 0x537   : > { %v5101_v9 = vpop.eup %5100  ;;  %v2647_v18 = vsub.f32 %v6644_v62, %v2627_v55 }
 0x538   : > { %v5103_v39 = vpop.eup %5102  ;;  %v2680_v44 = vmul.f32 1.442695, %v2652_v29  ;;  %v2682_v30 = vmul.f32 1.442695, %v2653_v40  ;;  %v2668_v35 = vmul.f32 1.442695, %v2646_v16  ;;  %v6769_v25 = vmul.f32 %v5101_v9, %v5691_v19 }
 0x539   : > { %v5105_v56 = vpop.eup %5104  ;;  %v2670_v32 = vmul.f32 1.442695, %v2647_v18  ;;  %v6766_v28 = vmul.f32 %v5103_v39, %v5699_v6 }
 0x53a   : > { %v5107_v13 = vpop.eup %5106  ;;  %5112 = vpow2.f32 %v2680_v44  ;;  %v6772_v47 = vmul.f32 %v5105_v56, %v5701_v1 }
 0x53b   : > { %v5109_v37 = vpop.eup %5108  ;;  %5114 = vpow2.f32 %v2682_v30  ;;  %v6775_v62 = vmul.f32 %v5107_v13, %v5696_v50 }
 0x53c   : > { %v5111_v5 = vpop.eup %5110  ;;  %5116 = vpow2.f32 %v2668_v35  ;;  %v2692_v43 = vmul.f32 %v5109_v37, %v5628_v8  ;;  %v6780_v60 = vadd.f32 %v6772_v47, %v6766_v28  ;;  %v4593_v35 = vld [vmem:[%s7357_s2 + $0x7] ss:$8 sm:$0x3] }
 0x53d   : > { %5118 = vpow2.f32 %v2670_v32  ;;  %v2639_v0 = vpop.xlane.xlu1 %2638  ;;  %v2693_v20 = vmul.f32 %v5111_v5, %v5630_v14  ;;  %v6785_v45 = vadd.f32 %v6775_v62, %v6769_v25  ;;  %v6806_v5 = vperm.slane %v4593_v35, 0 }
 0x53e   : > { %v2654_v55 = vsub.f32 %v6656_v17, %v2639_v0  ;;  %v2655_v29 = vsub.f32 %v6658_v48, %v2639_v0  ;;  %v6808_v0 = vperm.slane %v4593_v35, 1 }
 0x53f   : > { %v6789_v40 = vadd.f32 %v2693_v20, %v2692_v43 }
 0x540   : > { %v5113_v16 = vpop.eup %5112  ;;  %v2684_v9 = vmul.f32 1.442695, %v2654_v55  ;;  %v2686_v18 = vmul.f32 1.442695, %v2655_v29 }
 0x541   : > { %v5115_v39 = vpop.eup %5114  ;;  %v6792_v44 = vmul.f32 %v5113_v16, %v5706_v31 }
 0x542   : > { %v5117_v30 = vpop.eup %5116  ;;  %5120 = vpow2.f32 %v2684_v9  ;;  %v6798_v56 = vmul.f32 %v5115_v39, %v5709_v24 }
 0x543   : > { %v5119_v17 = vpop.eup %5118  ;;  %5122 = vpow2.f32 %v2686_v18  ;;  %v2694_v48 = vmul.f32 %v5117_v30, %v5670_v27 }
 0x544   : > { %v2695_v32 = vmul.f32 %v5119_v17, %v5672_v3  ;;  %v6804_v13 = vadd.f32 %v6798_v56, %v6792_v44 }
 0x545   : > { %v2746_v37 = vpack.c.bf16 %v2694_v48, %v2692_v43 }
 0x546   : > { %v2747_v55 = vpack.c.bf16 %v2695_v32, %v2693_v20  ;;  %v6810_v29 = vadd.f32 %v2695_v32, %v2694_v48 }
 0x547   : > { %2894 = vmatmul.bf16.gmra.mxu2 %v2746_v37 }
 0x548   : > { %v5121_v16 = vpop.eup %5120  ;;  %2923 = vmatmul.bf16.gmra.mxu3 %v2747_v55  ;;  %v3405_v9 = vpop.permute.xlu0 %3404 }
 0x549   : > { %v5123_v18 = vpop.eup %5122  ;;  %v3438_v39 = vadd.f32 %v6806_v5, %v3405_v9  ;;  %v3439_v30 = vadd.f32 %v6808_v0, %v3405_v9  ;;  %v2702_v17 = vmul.f32 %v5121_v16, %v5735_v61  ;;  %v2749_v61 = vpack.c.bf16 %v6775_v62, %v6772_v47 }
 0x54a   : > { %v2703_v43 = vmul.f32 %v5123_v18, %v5737_v4 }
 0x54b   : > { %v3470_v49 = vmul.f32 0.2, %v3438_v39  ;;  %v3471_v24 = vmul.f32 0.2, %v3439_v30  ;;  %vm3454_vm2 = vcmp.gt.f32.partialorder %v3438_v39, 0.0  ;;  %vm3455_vm3 = vcmp.gt.f32.partialorder %v3439_v30, 0.0 }
 0x54c   : > { %v6816_v20 = vadd.f32 %v2703_v43, %v2702_v17 }
 0x54d   : > { %v6818_v35 = vsel %vm3454_vm2, %v3438_v39, %v3470_v49  ;;  %v6820_v48 = vsel %vm3455_vm3, %v3439_v30, %v3471_v24  ;;  %v2748_v49 = vpack.c.bf16 %v6769_v25, %v6766_v28  ;;  %v2996_v28 = vadd.f32 %v6717_v38, %v6739_v33 }
 0x54e   : > { %v3503_v32 = vmax.f32 %v6818_v35, %v6820_v48  ;;  %v2997_v25 = vadd.f32 %v6719_v26, %v6739_v33  ;;  %v7413_v33 = vmov 7  }
 0x54f   : > { %v3028_v62 = vmul.f32 0.2, %v2996_v28  ;;  %vm3012_vm8 = vcmp.gt.f32.partialorder %v2996_v28, 0.0 }
 0x550   : > { %3504 = vmax.xlane.f32.xlu2 %v3503_v32  ;;  %v3409_v37 = vpop.permute.xlu0 %3408  ;;  %vm3013_vm9 = vcmp.gt.f32.partialorder %v2997_v25, 0.0 }
 0x551   : > { %v3440_v55 = vadd.f32 %v6806_v5, %v3409_v37  ;;  %v3441_v16 = vadd.f32 %v6808_v0, %v3409_v37 }
 0x553   : > { %vm3456_vm4 = vcmp.gt.f32.partialorder %v3440_v55, 0.0  ;;  %vm3457_vm5 = vcmp.gt.f32.partialorder %v3441_v16, 0.0  ;;  %v3472_v9 = vmul.f32 0.2, %v3440_v55  ;;  %v3473_v18 = vmul.f32 0.2, %v3441_v16 }
 0x555   : > { %v3401_v4 = vpop.permute.xlu1 %3400  ;;  %v6828_v39 = vsel %vm3456_vm4, %v3440_v55, %v3472_v9  ;;  %v6830_v24 = vsel %vm3457_vm5, %v3441_v16, %v3473_v18  ;;  %v3029_v16 = vmul.f32 0.2, %v2997_v25 }
 0x556   : > { %v3436_v30 = vadd.f32 %v6806_v5, %v3401_v4  ;;  %v3437_v32 = vadd.f32 %v6808_v0, %v3401_v4  ;;  %v3506_v37 = vmax.f32 %v6828_v39, %v6830_v24 }
 0x557   : > { %2899 = vmatmul.bf16.gmra.mxu2 %v2748_v49  ;;  %v6850_v9 = vsel %vm3013_vm9, %v2997_v25, %v3029_v16 }
 0x558   : > { %v3468_v31 = vmul.f32 0.2, %v3436_v30  ;;  %v3469_v50 = vmul.f32 0.2, %v3437_v32  ;;  %2928 = vmatmul.bf16.gmra.mxu3 %v2749_v61  ;;  %3507 = vmax.xlane.f32.xlu1 %v3506_v37  ;;  %vm3452_vm6 = vcmp.gt.f32.partialorder %v3436_v30, 0.0  ;;  %vm3453_vm7 = vcmp.gt.f32.partialorder %v3437_v32, 0.0  ;;  %v3413_v49 = vpop.permute.xlu0 %3412 }
 0x559   : > { %v6848_v61 = vsel %vm3012_vm8, %v2996_v28, %v3028_v62  ;;  %v4820_v62 = vld [vmem:[%s7356_s1 + $0x3f8] sm:$0xff] }
 0x55a   : > { %v6842_v4 = vsel %vm3452_vm6, %v3436_v30, %v3468_v31  ;;  %v6844_v55 = vsel %vm3453_vm7, %v3437_v32, %v3469_v50  ;;  %v3061_v18 = vmax.f32 %v6848_v61, %v6850_v9  ;;  %v2750_v31 = vpack.c.bf16 %v2702_v17, %v6792_v44  ;;  %3794 = vmatpush.bf16.msrb.mxu3 %v4820_v62  ;;  %v4817_v62 = vld [vmem:[%s7356_s1 + $0x3e0] sm:$0xff] }
 0x55b   : > { %v3500_v47 = vmax.f32 %v6842_v4, %v6844_v55  ;;  %v2751_v50 = vpack.c.bf16 %v2703_v43, %v6798_v56 }
 0x55d   : > { %3501 = vmax.xlane.f32.xlu0 %v3500_v47  ;;  %v6862_v44 = vpop.permute.xlu1 %3420  ;;  %v4812_v47 = vld [vmem:[%s7356_s1 + $0x3b8] sm:$0xff] }
 0x55e   : > { %3765 = vmatpush.bf16.msrb.mxu2 %v4812_v47  ;;  %v4809_v47 = vld [vmem:[%s7356_s1 + $0x3a0] sm:$0xff] }
 0x560   : > { %v3417_v30 = vpop.permute.xlu0 %3416 }
 0x561   : > { %v3444_v56 = vadd.f32 %v6806_v5, %v3417_v30  ;;  %v3445_v17 = vadd.f32 %v6808_v0, %v3417_v30  ;;  %v4819_v30 = vld [vmem:[%s7356_s1 + $0x3f0] sm:$0xff] }
 0x562   : > { %3795 = vmatpush.bf16.msrb.mxu3 %v4819_v30  ;;  %v4801_v30 = vld [vmem:[%s7356_s1 + $0x360] sm:$0xff] }
 0x563   : > { %v3476_v43 = vmul.f32 0.2, %v3444_v56  ;;  %vm3460_vm10 = vcmp.gt.f32.partialorder %v3444_v56, 0.0  ;;  %vm3461_vm11 = vcmp.gt.f32.partialorder %v3445_v17, 0.0 }
 0x565   : > { %3062 = vmax.xlane.f32.xlu0 %v3061_v18  ;;  %v3425_v28 = vpop.permute.xlu1 %3424 }
 0x566   : > { %v3448_v18 = vadd.f32 %v6806_v5, %v3425_v28 }
 0x567   : > { %2904 = vmatmul.bf16.gmra.mxu2 %v2750_v31  ;;  %v3449_v31 = vadd.f32 %v6808_v0, %v3425_v28 }
 0x568   : > { %2933 = vmatmul.bf16.gmra.mxu3 %v2751_v50  ;;  %2966 = vperm.xlu2 %4856, %v6554_v58   ;;  %v3442_v58 = vadd.f32 %v6806_v5, %v3413_v49  ;;  %vm3464_vm14 = vcmp.gt.f32.partialorder %v3448_v18, 0.0 }
 0x569   : > { %vm3465_vm15 = vcmp.gt.f32.partialorder %v3449_v31, 0.0 }
 0x56a   : > { %vm3458_vm12 = vcmp.gt.f32.partialorder %v3442_v58, 0.0 }
 0x570   : > { %2974 = vperm.xlu2 %4856, %v6564_v46   ;;  %v3477_v46 = vmul.f32 0.2, %v3445_v17 }
 0x572   : > { %v6870_v32 = vsel %vm3461_vm11, %v3445_v17, %v3477_v46  ;;  %v3481_v17 = vmul.f32 0.2, %v3449_v31  ;;  %v4810_v46 = vld [vmem:[%s7356_s1 + $0x3a8] sm:$0xff] }
 0x578   : > { %2978 = vperm.xlu2 %4856, %v6576_v15   ;;  %v3443_v15 = vadd.f32 %v6808_v0, %v3413_v49  ;;  %v4811_v49 = vld [vmem:[%s7356_s1 + $0x3b0] sm:$0xff] }
 0x579   : > { %2986 = vperm.xlu0 %4859, %v6580_v22   ;;  %v3474_v22 = vmul.f32 0.2, %v3442_v58  ;;  %3766 = vmatpush.bf16.msrb.mxu2 %v4811_v49  ;;  %v4808_v49 = vld [vmem:[%s7356_s1 + $0x398] sm:$0xff] }
 0x57a   : > { %v3475_v37 = vmul.f32 0.2, %v3443_v15  ;;  %vm3459_vm13 = vcmp.gt.f32.partialorder %v3443_v15, 0.0 }
 0x57b   : > { %v6880_v16 = vsel %vm3458_vm12, %v3442_v58, %v3474_v22  ;;  %v4796_v58 = vld [vmem:[%s7356_s1 + $0x338] sm:$0xff]  ;;  %v6906_v22 = vsel %vm3465_vm15, %v3449_v31, %v3481_v17  ;;  %v4794_v31 = vld [vmem:[%s7356_s1 + $0x328] sm:$0xff] }
 0x57c   : > { %v6884_v50 = vsel %vm3459_vm13, %v3443_v15, %v3475_v37  ;;  %7415 = vst [vmem:[#allocation10_spill] sm:$0xff] %v6906_v22  ;;  %v4818_v37 = vld [vmem:[%s7356_s1 + $0x3e8] sm:$0xff]  ;;  %3323 = vmatpush.bf16.msrb.mxu0 %v4796_v58  ;;  %v4815_v58 = vld [vmem:[%s7356_s1 + $0x3d0] sm:$0xff] }
 0x57d   : > { %3767 = vmatpush.bf16.msrb.mxu2 %v4810_v46  ;;  %3796 = vmatpush.bf16.msrb.mxu3 %v4818_v37  ;;  %v4792_v37 = vld [vmem:[%s7356_s1 + $0x318] sm:$0xff] }
 0x580   : > { %2982 = vperm.xlu2 %4856, %v6572_v53   ;;  %v6868_v53 = vsel %vm3460_vm10, %v3444_v56, %v3476_v43  ;;  %v3480_v56 = vmul.f32 0.2, %v3448_v18  ;;  %v4804_v43 = vld [vmem:[%s7356_s1 + $0x378] sm:$0xff] }
 0x581   : > { %4860 = vset.pattern.permute.xlu0 %v7413_v33  ;;  %v3512_v25 = vmax.f32 %v6868_v53, %v6870_v32  ;;  %v3509_v33 = vmax.f32 %v6880_v16, %v6884_v50  ;;  %3352 = vmatpush.bf16.msrb.mxu1 %v4804_v43 }
 0x582   : > { %v6904_v15 = vsel %vm3464_vm14, %v3448_v18, %v3480_v56  ;;  %v2704_v18 = vadd.f32 %v6754_v10, %v6750_v52  ;;  %3768 = vmatpush.bf16.msrb.mxu2 %v4809_v47  ;;  %3797 = vmatpush.bf16.msrb.mxu3 %v4817_v62  ;;  %v4816_v52 = vld [vmem:[%s7356_s1 + $0x3d8] sm:$0xff]  ;;  %v4793_v10 = vld [vmem:[%s7356_s1 + $0x320] sm:$0xff]  ;;  %v4807_v56 = vld [vmem:[%s7356_s1 + $0x390] sm:$0xff] }
 0x583   : > { %7414 = vst [vmem:[#allocation9_spill] sm:$0xff] %v6904_v15  ;;  %v3518_v28 = vmax.f32 %v6904_v15, %v6906_v22  ;;  %v4791_v47 = vld [vmem:[%s7356_s1 + $0x310] sm:$0xff] }
 0x584   : > { %v4799_v62 = vld [vmem:[%s7356_s1 + $0x350] sm:$0xff] }
 0x586   : > { %3769 = vmatpush.bf16.msrb.mxu2 %v4808_v49  ;;  %3798 = vmatpush.bf16.msrb.mxu3 %v4816_v52 }
 0x58a   : > { %3770 = vmatpush.bf16.msrb.mxu2 %v4807_v56  ;;  %3799 = vmatpush.bf16.msrb.mxu3 %v4815_v58  ;;  %v6989_v58 = vpop.permute.xlu1 %3428 }
 0x5a3   : > { %3513 = vmax.xlane.f32.xlu0 %v3512_v25  ;;  %v4795_v25 = vld [vmem:[%s7356_s1 + $0x330] sm:$0xff] }
 0x5a4   : > { %3324 = vmatpush.bf16.msrb.mxu0 %v4795_v25  ;;  %v4806_v25 = vld [vmem:[%s7356_s1 + $0x388] sm:$0xff] }
 0x5a5   : > { %3771 = vmatpush.bf16.msrb.mxu2 %v4806_v25  ;;  %v4797_v25 = vld [vmem:[%s7356_s1 + $0x340] sm:$0xff] }
 0x5a8   : > { %3325 = vmatpush.bf16.msrb.mxu0 %v4794_v31  ;;  %v4813_v31 = vld [vmem:[%s7356_s1 + $0x3c0] sm:$0xff] }
 0x5a9   : > { %3510 = vmax.xlane.f32.xlu2 %v3509_v33  ;;  %v4802_v33 = vld [vmem:[%s7356_s1 + $0x368] sm:$0xff] }
 0x5ab   : > { %2278 = vadd.xlane.f32.xlu0 %v6527_v7  ;;  %v4803_v7 = vld [vmem:[%s7356_s1 + $0x370] sm:$0xff] }
 0x5ac   : > { %3353 = vmatpush.bf16.msrb.mxu1 %v4803_v7  ;;  %3326 = vmatpush.bf16.msrb.mxu0 %v4793_v10  ;;  %v4814_v7 = vld [vmem:[%s7356_s1 + $0x3c8] sm:$0xff] }
 0x5ad   : > { %3800 = vmatpush.bf16.msrb.mxu3 %v4814_v7  ;;  %v4790_v10 = vld [vmem:[%s7356_s1 + $0x308] sm:$0xff] }
 0x5b0   : > { %3354 = vmatpush.bf16.msrb.mxu1 %v4802_v33  ;;  %3327 = vmatpush.bf16.msrb.mxu0 %v4792_v37 }
 0x5b1   : > { %3519 = vmax.xlane.f32.xlu2 %v3518_v28  ;;  %v4800_v28 = vld [vmem:[%s7356_s1 + $0x358] sm:$0xff]  ;;  %3801 = vmatpush.bf16.msrb.mxu3 %v4813_v31 }
 0x5b3   : > { %2705 = vadd.xlane.f32.xlu0 %v2704_v18 }
 0x5b4   : > { %3355 = vmatpush.bf16.msrb.mxu1 %v4801_v30  ;;  %3328 = vmatpush.bf16.msrb.mxu0 %v4791_v47  ;;  %v4798_v30 = vld [vmem:[%s7356_s1 + $0x348] sm:$0xff] }
 0x5b8   : > { %v2890_v17 = vpop.f32.mrf.mxu2  ;;  %3356 = vmatpush.bf16.msrb.mxu1 %v4800_v28  ;;  %3329 = vmatpush.bf16.msrb.mxu0 %v4790_v10  ;;  %v4789_v28 = vld [vmem:[%s7356_s1 + $0x300] sm:$0xff] }
 0x5b9   : > { %v2919_v43 = vpop.f32.mrf.mxu3 }
 0x5ba   : > { %v6951_v46 = vadd.f32 %v2919_v43, %v2890_v17 }
 0x5bb   : > { %2714 = vadd.xlane.f32.xlu0 %v6810_v29  ;;  %v4805_v29 = vld [vmem:[%s7356_s1 + $0x380] sm:$0xff] }
 0x5bc   : > { %3357 = vmatpush.bf16.msrb.mxu1 %v4799_v62  ;;  %3772 = vmatpush.bf16.msrb.mxu2 %v4805_v29 }
 0x5bd   : > { %3330 = vmatpush.bf16.msrb.mxu0 %v4789_v28 }
 0x5c0   : > { %v2892_v18 = vpop.f32.mrf.mxu2  ;;  %3358 = vmatpush.bf16.msrb.mxu1 %v4798_v30 }
 0x5c1   : > { %v2921_v33 = vpop.f32.mrf.mxu3 }
 0x5c2   : > { %v6978_v49 = vadd.f32 %v2921_v33, %v2892_v18 }
 0x5c3   : > { %v3505_v52 = vpop.xlane.xlu2 %3504  ;;  %2723 = vadd.xlane.f32.xlu0 %v6804_v13 }
 0x5c4   : > { %7416 = vst [vmem:[#allocation17_spill] sm:$0xff] %v6978_v49  ;;  %v3526_v56 = vsub.f32 %v6818_v35, %v3505_v52  ;;  %v3527_v17 = vsub.f32 %v6820_v48, %v3505_v52  ;;  %v2971_v35 = vpop.permute.xlu0 %2970  ;;  %3359 = vmatpush.bf16.msrb.mxu1 %v4797_v25  ;;  %v3060_v52 = vpop.xlane.xlu1 %3059 }
 0x5c5   : > { %v3000_v18 = vadd.f32 %v6717_v38, %v2971_v35  ;;  %v3001_v31 = vadd.f32 %v6719_v26, %v2971_v35  ;;  %v3082_v25 = vsub.f32 %v6729_v51, %v3060_v52 }
 0x5c6   : > { %v3544_v43 = vmul.f32 1.442695, %v3526_v56  ;;  %v3546_v37 = vmul.f32 1.442695, %v3527_v17 }
 0x5c7   : > { %v3032_v35 = vmul.f32 0.2, %v3000_v18  ;;  %vm3016_vm2 = vcmp.gt.f32.partialorder %v3000_v18, 0.0  ;;  %vm3017_vm3 = vcmp.gt.f32.partialorder %v3001_v31, 0.0 }
 0x5c8   : > { %5124 = vpow2.f32 %v3544_v43 }
 0x5c9   : > { %5126 = vpow2.f32 %v3546_v37 }
 0x5ca   : > { %v2895_v48 = vpop.f32.mrf.mxu2 }
 0x5cb   : > { %v2924_v13 = vpop.f32.mrf.mxu3  ;;  %v2967_v7 = vpop.permute.xlu2 %2966 }
 0x5cc   : > { %v6997_v47 = vadd.f32 %v2924_v13, %v2895_v48  ;;  %v2998_v62 = vadd.f32 %v6717_v38, %v2967_v7  ;;  %v2999_v29 = vadd.f32 %v6719_v26, %v2967_v7  ;;  %v3033_v48 = vmul.f32 0.2, %v3001_v31 }
 0x5ce   : > { %7417 = vst [vmem:[#allocation18_spill] sm:$0xff] %v6997_v47  ;;  %v5125_v33 = vpop.eup %5124  ;;  %vm3014_vm0 = vcmp.gt.f32.partialorder %v2998_v62, 0.0  ;;  %vm3015_vm1 = vcmp.gt.f32.partialorder %v2999_v29, 0.0  ;;  %v3030_v10 = vmul.f32 0.2, %v2998_v62  ;;  %v3083_v47 = vsub.f32 %v6731_v23, %v3060_v52 }
 0x5cf   : > { %v3031_v30 = vmul.f32 0.2, %v2999_v29  ;;  %v5127_v56 = vpop.eup %5126  ;;  %v7004_v17 = vmul.f32 %v5125_v33, %v5663_v2  ;;  %v3446_v23 = vadd.f32 %v6806_v5, %v6862_v44 }
 0x5d0   : > { %v7007_v43 = vmul.f32 %v5127_v56, %v5661_v12  ;;  %v7009_v37 = vsel %vm3014_vm0, %v2998_v62, %v3030_v10  ;;  %v3502_v13 = vpop.xlane.xlu0 %3501  ;;  %v3100_v52 = vmul.f32 1.442695, %v3083_v47 }
 0x5d1   : > { %v7011_v28 = vsel %vm3015_vm1, %v2999_v29, %v3031_v30  ;;  %v3524_v33 = vsub.f32 %v6842_v4, %v3502_v13  ;;  %v3525_v56 = vsub.f32 %v6844_v55, %v3502_v13  ;;  %v3447_v4 = vadd.f32 %v6808_v0, %v6862_v44 }
 0x5d2   : > { %v3064_v7 = vmax.f32 %v7009_v37, %v7011_v28  ;;  %v2897_v49 = vpop.f32.mrf.mxu2  ;;  %v7021_v62 = vadd.f32 %v7007_v43, %v7004_v17  ;;  %v3098_v55 = vmul.f32 1.442695, %v3082_v25  ;;  %v7029_v13 = vsel %vm3016_vm2, %v3000_v18, %v3032_v35 }
 0x5d3   : > { %v2926_v51 = vpop.f32.mrf.mxu3  ;;  %v2975_v29 = vpop.permute.xlu2 %2974  ;;  %v3540_v30 = vmul.f32 1.442695, %v3524_v33  ;;  %v3542_v22 = vmul.f32 1.442695, %v3525_v56  ;;  %v3478_v15 = vmul.f32 0.2, %v3446_v23 }
 0x5d4   : > { %7418 = vst [vmem:[#allocation19_spill] sm:$0xff] %v7021_v62  ;;  %3065 = vmax.xlane.f32.xlu1 %v3064_v7  ;;  %v7023_v10 = vadd.f32 %v2926_v51, %v2897_v49  ;;  %v7031_v62 = vsel %vm3017_vm3, %v3001_v31, %v3033_v48  ;;  %v3479_v33 = vmul.f32 0.2, %v3447_v4  ;;  %vm3462_vm4 = vcmp.gt.f32.partialorder %v3446_v23, 0.0 }
 0x5d5   : > { %5128 = vpow2.f32 %v3540_v30  ;;  %v3067_v7 = vmax.f32 %v7029_v13, %v7031_v62  ;;  %vm3463_vm5 = vcmp.gt.f32.partialorder %v3447_v4, 0.0 }
 0x5d6   : > { %7419 = vst [vmem:[#allocation20_spill] sm:$0xff] %v7023_v10  ;;  %5130 = vpow2.f32 %v3542_v22  ;;  %v3002_v22 = vadd.f32 %v6717_v38, %v2975_v29 }
 0x5d7   : > { %5132 = vpow2.f32 %v3098_v55 }
 0x5d8   : > { %v3063_v49 = vpop.xlane.xlu0 %3062  ;;  %5134 = vpow2.f32 %v3100_v52  ;;  %v3003_v52 = vadd.f32 %v6719_v26, %v2975_v29  ;;  %vm3018_vm6 = vcmp.gt.f32.partialorder %v3002_v22, 0.0 }
 0x5d9   : > { %v3084_v51 = vsub.f32 %v6848_v61, %v3063_v49  ;;  %v3085_v44 = vsub.f32 %v6850_v9, %v3063_v49  ;;  %v7043_v9 = vsel %vm3462_vm4, %v3446_v23, %v3478_v15  ;;  %v7045_v49 = vsel %vm3463_vm5, %v3447_v4, %v3479_v33 }
 0x5da   : > { %v2900_v56 = vpop.f32.mrf.mxu2  ;;  %v3515_v29 = vmax.f32 %v7043_v9, %v7045_v49  ;;  %vm3019_vm7 = vcmp.gt.f32.partialorder %v3003_v52, 0.0 }
 0x5db   : > { %v2929_v47 = vpop.f32.mrf.mxu3  ;;  %v2979_v18 = vpop.permute.xlu2 %2978  ;;  %v3102_v35 = vmul.f32 1.442695, %v3084_v51  ;;  %v3104_v48 = vmul.f32 1.442695, %v3085_v44  ;;  %v3034_v44 = vmul.f32 0.2, %v3002_v22 }
 0x5dc   : > { %3068 = vmax.xlane.f32.xlu1 %v3067_v7  ;;  %v5129_v31 = vpop.eup %5128  ;;  %v7038_v25 = vadd.f32 %v2929_v47, %v2900_v56 }
 0x5dd   : > { %v5131_v30 = vpop.eup %5130  ;;  %v3572_v55 = vmul.f32 %v5129_v31, %v5632_v21  ;;  %5136 = vpow2.f32 %v3102_v35  ;;  %v3035_v31 = vmul.f32 0.2, %v3003_v52 }
 0x5de   : > { %v3573_v61 = vmul.f32 %v5131_v30, %v5644_v42  ;;  %v5133_v7 = vpop.eup %5132  ;;  %5138 = vpow2.f32 %v3104_v48  ;;  %v7064_v30 = vsel %vm3018_vm6, %v3002_v22, %v3034_v44 }
 0x5df   : > { %v3628_v10 = vpack.c.bf16 %v7004_v17, %v3572_v55  ;;  %v5135_v56 = vpop.eup %5134  ;;  %v7054_v23 = vmul.f32 %v5133_v7, %v5632_v21  ;;  %v7070_v7 = vsel %vm3019_vm7, %v3003_v52, %v3035_v31 }
 0x5e0   : > { %v3629_v51 = vpack.c.bf16 %v7007_v43, %v3573_v61  ;;  %v7049_v47 = vadd.f32 %v3573_v61, %v3572_v55  ;;  %v7057_v17 = vmul.f32 %v5135_v56, %v5644_v42  ;;  %v3004_v61 = vadd.f32 %v6717_v38, %v2979_v18 }
 0x5e1   : > { %3773 = vmatmul.bf16.vlgmr.msrb.gmra.mxu2 %v3628_v10  ;;  %v3005_v42 = vadd.f32 %v6719_v26, %v2979_v18  ;;  %v3070_v18 = vmax.f32 %v7064_v30, %v7070_v7 }
 0x5e2   : > { %v2902_v15 = vpop.f32.mrf.mxu2  ;;  %3802 = vmatmul.bf16.vlgmr.msrb.gmra.mxu3 %v3629_v51  ;;  %v3036_v52 = vmul.f32 0.2, %v3004_v61  ;;  %vm3020_vm10 = vcmp.gt.f32.partialorder %v3004_v61, 0.0 }
 0x5e3   : > { %v2931_v4 = vpop.f32.mrf.mxu3  ;;  %v2983_v43 = vpop.permute.xlu2 %2982  ;;  %v3037_v31 = vmul.f32 0.2, %v3005_v42  ;;  %vm3021_vm11 = vcmp.gt.f32.partialorder %v3005_v42, 0.0 }
 0x5e4   : > { %3516 = vmax.xlane.f32.xlu1 %v3515_v29  ;;  %v5137_v33 = vpop.eup %5136  ;;  %v7059_v35 = vadd.f32 %v2931_v4, %v2902_v15  ;;  %v3006_v10 = vadd.f32 %v6717_v38, %v2983_v43  ;;  %v3007_v48 = vadd.f32 %v6719_v26, %v2983_v43  ;;  %v3450_v43 = vadd.f32 %v6806_v5, %v6989_v58 }
 0x5e5   : > { %v5139_v55 = vpop.eup %5138  ;;  %v3132_v21 = vmul.f32 %v5137_v33, %v5663_v2  ;;  %v3451_v33 = vadd.f32 %v6808_v0, %v6989_v58 }
 0x5e6   : > { %v3133_v56 = vmul.f32 %v5139_v55, %v5661_v12  ;;  %vm3022_vm8 = vcmp.gt.f32.partialorder %v3006_v10, 0.0  ;;  %vm3023_vm9 = vcmp.gt.f32.partialorder %v3007_v48, 0.0  ;;  %v3038_v51 = vmul.f32 0.2, %v3006_v10 }
 0x5e7   : > { %v3186_v29 = vpack.c.bf16 %v3132_v21, %v7054_v23  ;;  %v3039_v15 = vmul.f32 0.2, %v3007_v48  ;;  %vm3466_vm12 = vcmp.gt.f32.partialorder %v3450_v43, 0.0  ;;  %vm3467_vm13 = vcmp.gt.f32.partialorder %v3451_v33, 0.0 }
 0x5e8   : > { %v3187_v22 = vpack.c.bf16 %v3133_v56, %v7057_v17  ;;  %v3149_v44 = vadd.f32 %v3133_v56, %v3132_v21  ;;  %v7075_v4 = vsel %vm3022_vm8, %v3006_v10, %v3038_v51  ;;  %v7087_v10 = vsel %vm3020_vm10, %v3004_v61, %v3036_v52 }
 0x5e9   : > { %3331 = vmatmul.bf16.vlgmr.msrb.gmra.mxu0 %v3186_v29  ;;  %v7077_v2 = vsel %vm3023_vm9, %v3007_v48, %v3039_v15  ;;  %v7089_v48 = vsel %vm3021_vm11, %v3005_v42, %v3037_v31  ;;  %v3482_v21 = vmul.f32 0.2, %v3450_v43  ;;  %v3483_v56 = vmul.f32 0.2, %v3451_v33 }
 0x5ea   : > { %3360 = vmatmul.bf16.vlgmr.msrb.gmra.mxu1 %v3187_v22  ;;  %3150 = vadd.xlane.f32.xlu0 %v3149_v44  ;;  %v3076_v12 = vmax.f32 %v7075_v4, %v7077_v2  ;;  %v3073_v55 = vmax.f32 %v7087_v10, %v7089_v48 }
 0x5eb   : > { %v2987_v51 = vpop.permute.xlu0 %2986  ;;  %v7096_v0 = vsel %vm3466_vm12, %v3450_v43, %v3482_v21  ;;  %v7098_v58 = vsel %vm3467_vm13, %v3451_v33, %v3483_v56 }
 0x5ec   : > { %3071 = vmax.xlane.f32.xlu1 %v3070_v18  ;;  %3077 = vmax.xlane.f32.xlu2 %v3076_v12  ;;  %v3008_v5 = vadd.f32 %v6717_v38, %v2987_v51  ;;  %v3009_v29 = vadd.f32 %v6719_v26, %v2987_v51  ;;  %v3521_v61 = vmax.f32 %v7096_v0, %v7098_v58  ;;  %v3508_v26 = vpop.xlane.xlu1 %3507 }
 0x5ed   : > { %v3529_v18 = vsub.f32 %v6830_v24, %v3508_v26  ;;  %v3146_v51 = vadd.f32 %v7057_v17, %v7054_v23 }
 0x5ee   : > { %v3040_v42 = vmul.f32 0.2, %v3008_v5  ;;  %v3041_v15 = vmul.f32 0.2, %v3009_v29  ;;  %vm3024_vm14 = vcmp.gt.f32.partialorder %v3008_v5, 0.0  ;;  %vm3025_vm15 = vcmp.gt.f32.partialorder %v3009_v29, 0.0 }
 0x5ef   : > { %v3550_v31 = vmul.f32 1.442695, %v3529_v18 }
 0x5f0   : > { %v7103_v22 = vsel %vm3024_vm14, %v3008_v5, %v3040_v42 }
 0x5f4   : > { %3074 = vmax.xlane.f32.xlu1 %v3073_v55  ;;  %2272 = vadd.xlane.f32.xlu2 %v6514_v34  ;;  %v7105_v34 = vsel %vm3025_vm15, %v3009_v29, %v3041_v15 }
 0x5f5   : > { %v3079_v38 = vmax.f32 %v7103_v22, %v7105_v34 }
 0x5fc   : > { %3522 = vmax.xlane.f32.xlu1 %v3521_v61  ;;  %2281 = vadd.xlane.f32.xlu2 %v6557_v63  ;;  %v3528_v63 = vsub.f32 %v6828_v39, %v3508_v26 }
 0x5fe   : > { %v3548_v52 = vmul.f32 1.442695, %v3528_v63 }
 0x600   : > { %5140 = vpow2.f32 %v3548_v52 }
 0x601   : > { %5142 = vpow2.f32 %v3550_v31 }
 0x604   : > { %3080 = vmax.xlane.f32.xlu1 %v3079_v38  ;;  %2708 = vadd.xlane.f32.xlu2 %v6759_v59 }
 0x606   : > { %v5141_v39 = vpop.eup %5140 }
 0x607   : > { %v5143_v24 = vpop.eup %5142 }
 0x608   : > { %v7129_v5 = vmul.f32 %v5143_v24, %v5630_v14 }
 0x60c   : > { %2275 = vadd.xlane.f32.xlu1 %v6535_v41  ;;  %2717 = vadd.xlane.f32.xlu2 %v6780_v60 }
 0x614   : > { %2284 = vadd.xlane.f32.xlu1 %v6551_v36  ;;  %2726 = vadd.xlane.f32.xlu2 %v6816_v20 }
 0x616   : > { %v7115_v44 = vpop.xlane.xlu0 %3513 }
 0x61c   : > { %2711 = vadd.xlane.f32.xlu1 %v6789_v40  ;;  %v3511_v59 = vpop.xlane.xlu2 %3510 }
 0x61d   : > { %v3530_v41 = vsub.f32 %v6880_v16, %v3511_v59  ;;  %v3531_v60 = vsub.f32 %v6884_v50, %v3511_v59  ;;  %v7123_v16 = vmul.f32 %v5141_v39, %v5628_v8 }
 0x61e   : > { %v2279_v43 = vpop.xlane.xlu0 %2278 }
 0x61f   : > { %v3552_v36 = vmul.f32 1.442695, %v3530_v41  ;;  %v3554_v12 = vmul.f32 1.442695, %v3531_v60  ;;  %v2291_v20 = vmax.f32 %v2279_v43, 1e-20 }
 0x621   : > { %5144 = vpow2.f32 %v3552_v36 }
 0x622   : > { %5146 = vpow2.f32 %v3554_v12 }
 0x623   : > { %5148 = vrcp.f32 %v2291_v20 }
 0x624   : > { %2720 = vadd.xlane.f32.xlu1 %v6785_v45  ;;  %v7154_v24 = vpop.xlane.xlu2 %3519 }
 0x626   : > { %v2706_v33 = vpop.xlane.xlu0 %2705 }
 0x627   : > { %v5145_v40 = vpop.eup %5144  ;;  %v2728_v21 = vmax.f32 %v2706_v33, 1e-20 }
 0x628   : > { %v5147_v55 = vpop.eup %5146  ;;  %v3578_v50 = vmul.f32 %v5145_v40, %v5670_v27 }
 0x629   : > { %v5149_v56 = vpop.eup %5148  ;;  %v3579_v45 = vmul.f32 %v5147_v55, %v5672_v3  ;;  %5150 = vrcp.f32 %v2728_v21 }
 0x62a   : > { %v2502_v29 = vmul.f32 %v5149_v56, %v6654_v57  ;;  %v3630_v61 = vpack.c.bf16 %v3578_v50, %v7123_v16 }
 0x62b   : > { %v3631_v42 = vpack.c.bf16 %v3579_v45, %v7129_v5  ;;  %v7135_v15 = vadd.f32 %v3579_v45, %v3578_v50 }
 0x62c   : > { %3147 = vadd.xlane.f32.xlu1 %v3146_v51  ;;  %3778 = vmatmul.bf16.gmra.mxu2 %v3630_v61  ;;  %v7138_v38 = vadd.f32 %v2502_v29, %v6433_v54 }
 0x62d   : > { %3807 = vmatmul.bf16.gmra.mxu3 %v3631_v42 }
 0x62f   : > { %v5151_v23 = vpop.eup %5150 }
 0x630   : > { %v2939_v17 = vmul.f32 %v5151_v23, %v6951_v46  ;;  %v3532_v46 = vsub.f32 %v6868_v53, %v7115_v44 }
 0x632   : > { %v7142_v26 = vadd.f32 %v2939_v17, %v6588_v11  ;;  %v3556_v20 = vmul.f32 1.442695, %v3532_v46 }
 0x647   : > { %v3066_v57 = vpop.xlane.xlu1 %3065 }
 0x648   : > { %v3086_v63 = vsub.f32 %v7009_v37, %v3066_v57  ;;  %v3087_v18 = vsub.f32 %v7011_v28, %v3066_v57  ;;  %v3533_v37 = vsub.f32 %v6870_v32, %v7115_v44 }
 0x64a   : > { %v3106_v52 = vmul.f32 1.442695, %v3086_v63  ;;  %v3108_v31 = vmul.f32 1.442695, %v3087_v18  ;;  %v3558_v39 = vmul.f32 1.442695, %v3533_v37  ;;  %v2715_v63 = vpop.xlane.xlu0 %2714 }
 0x64c   : > { %5152 = vpow2.f32 %v3106_v52 }
 0x64d   : > { %5154 = vpow2.f32 %v3108_v31 }
 0x64f   : > { %v3069_v59 = vpop.xlane.xlu1 %3068 }
 0x650   : > { %v3088_v54 = vsub.f32 %v7029_v13, %v3069_v59  ;;  %v3089_v41 = vsub.f32 %v7031_v62, %v3069_v59 }
 0x652   : > { %v5153_v60 = vpop.eup %5152  ;;  %v3110_v11 = vmul.f32 1.442695, %v3088_v54  ;;  %v3112_v36 = vmul.f32 1.442695, %v3089_v41  ;;  %v2731_v54 = vmax.f32 %v2715_v63, 1e-20 }
 0x653   : > { %v5155_v12 = vpop.eup %5154  ;;  %v3134_v28 = vmul.f32 %v5153_v60, %v5628_v8 }
 0x654   : > { %5156 = vpow2.f32 %v3110_v11  ;;  %v3135_v43 = vmul.f32 %v5155_v12, %v5630_v14 }
 0x655   : > { %5158 = vpow2.f32 %v3112_v36 }
 0x656   : > { %v3152_v13 = vadd.f32 %v3135_v43, %v3134_v28  ;;  %5160 = vpow2.f32 %v3556_v20 }
 0x657   : > { %v3517_v62 = vpop.xlane.xlu1 %3516  ;;  %5162 = vpow2.f32 %v3558_v39 }
 0x658   : > { %3153 = vadd.xlane.f32.xlu2 %v3152_v13  ;;  %v3534_v53 = vsub.f32 %v7043_v9, %v3517_v62  ;;  %v3535_v40 = vsub.f32 %v7045_v49, %v3517_v62  ;;  %v7422_v62 = vld [vmem:[#allocation10_spill] sm:$0xff] }
 0x65a   : > { %v5157_v33 = vpop.eup %5156  ;;  %v3560_v32 = vmul.f32 1.442695, %v3534_v53  ;;  %v3562_v44 = vmul.f32 1.442695, %v3535_v40  ;;  %v3537_v53 = vsub.f32 %v7422_v62, %v7154_v24 }
 0x65b   : > { %v5159_v8 = vpop.eup %5158  ;;  %v3136_v14 = vmul.f32 %v5157_v33, %v5670_v27  ;;  %v7423_v33 = vld [vmem:[#allocation3_spill] sm:$0xff] }
 0x65c   : > { %5164 = vpow2.f32 %v3560_v32  ;;  %v3137_v55 = vmul.f32 %v5159_v8, %v5672_v3  ;;  %v5161_v51 = vpop.eup %5160 }
 0x65d   : > { %5166 = vpow2.f32 %v3562_v44  ;;  %v3188_v21 = vpack.c.bf16 %v3136_v14, %v3134_v28  ;;  %v5163_v61 = vpop.eup %5162  ;;  %v7165_v17 = vmul.f32 %v5161_v51, %v5699_v6  ;;  %v7421_v28 = vld [vmem:[#allocation9_spill] sm:$0xff]  ;;  %v7424_v44 = vld [vmem:[#allocation4_spill] sm:$0xff] }
 0x65e   : > { %v3189_v50 = vpack.c.bf16 %v3137_v55, %v3135_v43  ;;  %v3155_v56 = vadd.f32 %v3137_v55, %v3136_v14  ;;  %v3536_v43 = vsub.f32 %v7421_v28, %v7154_v24 }
 0x65f   : > { %v3072_v45 = vpop.xlane.xlu1 %3071  ;;  %3336 = vmatmul.bf16.gmra.mxu0 %v3188_v21  ;;  %v3078_v9 = vpop.xlane.xlu2 %3077  ;;  %v3566_v21 = vmul.f32 1.442695, %v3537_v53 }
 0x660   : > { %v3090_v49 = vsub.f32 %v7064_v30, %v3072_v45  ;;  %v3091_v29 = vsub.f32 %v7070_v7, %v3072_v45  ;;  %3365 = vmatmul.bf16.gmra.mxu1 %v3189_v50  ;;  %3156 = vadd.xlane.f32.xlu1 %v3155_v56  ;;  %v3094_v27 = vsub.f32 %v7075_v4, %v3078_v9  ;;  %v7420_v4 = vld [vmem:[#allocation2_spill] sm:$0xff]  ;;  %v3564_v14 = vmul.f32 1.442695, %v3536_v43 }
 0x661   : > { %v3095_v42 = vsub.f32 %v7077_v2, %v3078_v9  ;;  %v7171_v7 = vmul.f32 %v5163_v61, %v5701_v1  ;;  %v7425_v61 = vld [vmem:[#allocation12_spill] sm:$0xff] }
 0x662   : > { %v5165_v3 = vpop.eup %5164  ;;  %v3114_v23 = vmul.f32 1.442695, %v3090_v49  ;;  %v3122_v18 = vmul.f32 1.442695, %v3094_v27  ;;  %v3116_v31 = vmul.f32 1.442695, %v3091_v29 }
 0x663   : > { %v5167_v57 = vpop.eup %5166  ;;  %v3124_v52 = vmul.f32 1.442695, %v3095_v42  ;;  %v7168_v30 = vmul.f32 %v5165_v3, %v5691_v19 }
 0x664   : > { %5168 = vpow2.f32 %v3114_v23  ;;  %v7174_v59 = vmul.f32 %v5167_v57, %v7420_v4  ;;  %v7426_v57 = vld [vmem:[#allocation20_spill] sm:$0xff] }
 0x665   : > { %5170 = vpow2.f32 %v3122_v18  ;;  %v3632_v2 = vpack.c.bf16 %v7168_v30, %v7165_v17 }
 0x666   : > { %5172 = vpow2.f32 %v3124_v52  ;;  %v3633_v41 = vpack.c.bf16 %v7174_v59, %v7171_v7 }
 0x667   : > { %5174 = vpow2.f32 %v3116_v31  ;;  %v3075_v46 = vpop.xlane.xlu1 %3074  ;;  %3783 = vmatmul.bf16.gmra.mxu2 %v3632_v2  ;;  %v2273_v60 = vpop.xlane.xlu2 %2272 }
 0x668   : > { %v3092_v11 = vsub.f32 %v7087_v10, %v3075_v46  ;;  %v3093_v36 = vsub.f32 %v7089_v48, %v3075_v46  ;;  %3812 = vmatmul.bf16.gmra.mxu3 %v3633_v41  ;;  %v2289_v12 = vmax.f32 %v2273_v60, 1e-20  ;;  %5176 = vrcp.f32 %v2731_v54 }
 0x66a   : > { %v5169_v37 = vpop.eup %5168  ;;  %v3118_v20 = vmul.f32 1.442695, %v3092_v11  ;;  %v3120_v13 = vmul.f32 1.442695, %v3093_v36  ;;  %5178 = vrcp.f32 %v2289_v12  ;;  %v7428_v12 = vld [vmem:[#allocation19_spill] sm:$0xff] }
 0x66b   : > { %v5171_v39 = vpop.eup %5170  ;;  %v3138_v10 = vmul.f32 %v5169_v37, %v5699_v6 }
 0x66c   : > { %v5173_v40 = vpop.eup %5172  ;;  %5180 = vpow2.f32 %v3118_v20  ;;  %v7188_v48 = vmul.f32 %v5171_v39, %v7423_v33  ;;  %v7429_v39 = vld [vmem:[#allocation5_spill] sm:$0xff] }
 0x66d   : > { %v5175_v32 = vpop.eup %5174  ;;  %5182 = vpow2.f32 %v3120_v13  ;;  %v7191_v8 = vmul.f32 %v5173_v40, %v7424_v44  ;;  %v7430_v40 = vld [vmem:[#allocation6_spill] sm:$0xff] }
 0x66e   : > { %v3139_v55 = vmul.f32 %v5175_v32, %v5701_v1  ;;  %v5177_v56 = vpop.eup %5176  ;;  %5184 = vpow2.f32 %v3564_v14  ;;  %v3600_v14 = vadd.f32 %v7171_v7, %v7165_v17  ;;  %v7432_v7 = vld [vmem:[#allocation8_spill] sm:$0xff] }
 0x66f   : > { %v3523_v50 = vpop.xlane.xlu1 %3522  ;;  %v3164_v24 = vadd.f32 %v7191_v8, %v7188_v48  ;;  %v7196_v51 = vpop.xlane.xlu2 %2281  ;;  %5186 = vpow2.f32 %v3566_v21  ;;  %v2942_v63 = vmul.f32 %v5177_v56, %v7426_v57 }
 0x670   : > { %v3538_v6 = vsub.f32 %v7096_v0, %v3523_v50  ;;  %v3539_v45 = vsub.f32 %v7098_v58, %v3523_v50  ;;  %v3158_v9 = vadd.f32 %v3139_v55, %v3138_v10  ;;  %v5179_v49 = vpop.eup %5178  ;;  %v7427_v58 = vld [vmem:[#allocation13_spill] sm:$0xff]  ;;  %v7219_v56 = vpop.f32.mrf.mxu1 }
 0x671   : > { %3165 = vadd.xlane.f32.xlu1 %v3164_v24  ;;  %v2500_v27 = vmul.f32 %v5179_v49, %v7425_v61 }
 0x672   : > { %v5181_v29 = vpop.eup %5180  ;;  %v3568_v1 = vmul.f32 1.442695, %v3538_v6  ;;  %v3570_v42 = vmul.f32 1.442695, %v3539_v45  ;;  %3159 = vadd.xlane.f32.xlu0 %v3158_v9  ;;  %v7431_v6 = vld [vmem:[#allocation17_spill] sm:$0xff] }
 0x673   : > { %v5183_v3 = vpop.eup %5182  ;;  %v3140_v23 = vmul.f32 %v5181_v29, %v5691_v19  ;;  %v2508_v18 = vadd.f32 %v2500_v27, %v7427_v58 }
 0x674   : > { %5188 = vpow2.f32 %v3568_v1  ;;  %v3141_v0 = vmul.f32 %v5183_v3, %v7420_v4  ;;  %v5185_v46 = vpop.eup %5184 }
 0x675   : > { %5190 = vpow2.f32 %v3570_v42  ;;  %v3190_v52 = vpack.c.bf16 %v3140_v23, %v3138_v10  ;;  %v7205_v54 = vadd.f32 %v2942_v63, %v2508_v18  ;;  %v5187_v36 = vpop.eup %5186  ;;  %v3584_v13 = vmul.f32 %v5185_v46, %v7423_v33  ;;  %v7433_v63 = vld [vmem:[#allocation16_spill] sm:$0xff] }
 0x676   : > { %v3161_v31 = vadd.f32 %v3141_v0, %v3140_v23  ;;  %v3191_v2 = vpack.c.bf16 %v3141_v0, %v3139_v55  ;;  %v3585_v53 = vmul.f32 %v5187_v36, %v7424_v44  ;;  %v7217_v44 = vpop.f32.mrf.mxu0  ;;  %v7435_v36 = vld [vmem:[#allocation15_spill] sm:$0xff] }
 0x677   : > { %3341 = vmatmul.bf16.gmra.mxu0 %v3190_v52  ;;  %v3081_v41 = vpop.xlane.xlu1 %3080  ;;  %v2709_v60 = vpop.xlane.xlu2 %2708 }
 0x678   : > { %3162 = vadd.xlane.f32.xlu2 %v3161_v31  ;;  %3370 = vmatmul.bf16.gmra.mxu1 %v3191_v2  ;;  %v3096_v19 = vsub.f32 %v7103_v22, %v3081_v41  ;;  %v3097_v11 = vsub.f32 %v7105_v34, %v3081_v41  ;;  %v2729_v4 = vmax.f32 %v2709_v60, 1e-20  ;;  %v2494_v52 = vpop.f32.mrf.mxu1  ;;  %v3606_v2 = vadd.f32 %v3585_v53, %v3584_v13 }
 0x679   : > { %3592 = vadd.xlane.f32.xlu1 %v7428_v12 }
 0x67a   : > { %v5189_v37 = vpop.eup %5188  ;;  %v3126_v28 = vmul.f32 1.442695, %v3096_v19  ;;  %v3128_v43 = vmul.f32 1.442695, %v3097_v11  ;;  %5192 = vrcp.f32 %v2729_v4  ;;  %v3603_v4 = vadd.f32 %v7174_v59, %v7168_v30 }
 0x67b   : > { %v5191_v20 = vpop.eup %5190  ;;  %v3586_v62 = vmul.f32 %v5189_v37, %v7429_v39 }
 0x67c   : > { %5194 = vpow2.f32 %v3126_v28  ;;  %v3587_v22 = vmul.f32 %v5191_v20, %v7430_v40 }
 0x67d   : > { %5196 = vpow2.f32 %v3128_v43  ;;  %v3634_v34 = vpack.c.bf16 %v3586_v62, %v3584_v13  ;;  %v7436_v43 = vld [vmem:[#allocation18_spill] sm:$0xff] }
 0x67e   : > { %v3635_v10 = vpack.c.bf16 %v3587_v22, %v3585_v53  ;;  %v3609_v42 = vadd.f32 %v3587_v22, %v3586_v62  ;;  %v7250_v53 = vpop.f32.mrf.mxu2 }
 0x67f   : > { %v2276_v32 = vpop.xlane.xlu1 %2275  ;;  %3788 = vmatmul.bf16.gmra.mxu2 %v3634_v34  ;;  %v2718_v55 = vpop.xlane.xlu2 %2717 }
 0x680   : > { %3589 = vadd.xlane.f32.xlu2 %v7049_v47  ;;  %v2290_v21 = vmax.f32 %v2276_v32, 1e-20  ;;  %3817 = vmatmul.bf16.gmra.mxu3 %v3635_v10  ;;  %v5193_v33 = vpop.eup %5192  ;;  %v2732_v50 = vmax.f32 %v2718_v55, 1e-20  ;;  %v3361_v32 = vpop.f32.mrf.mxu1 }
 0x681   : > { %3601 = vadd.xlane.f32.xlu1 %v3600_v14  ;;  %v2940_v45 = vmul.f32 %v5193_v33, %v7431_v6 }
 0x682   : > { %v5195_v24 = vpop.eup %5194  ;;  %5198 = vrcp.f32 %v2290_v21 }
 0x683   : > { %v5197_v9 = vpop.eup %5196  ;;  %5200 = vrcp.f32 %v2732_v50  ;;  %v3144_v17 = vmul.f32 %v5195_v24, %v7429_v39  ;;  %v7224_v49 = vadd.f32 %v2940_v45, %v7432_v7  ;;  %v7264_v50 = vpop.xlane.xlu0 %2723 }
 0x684   : > { %v3145_v47 = vmul.f32 %v5197_v9, %v7430_v40  ;;  %v7252_v40 = vpop.f32.mrf.mxu3 }
 0x685   : > { %v3192_v29 = vpack.c.bf16 %v3144_v17, %v7188_v48  ;;  %v7434_v48 = vld [vmem:[#allocation14_spill] sm:$0xff] }
 0x686   : > { %v3193_v61 = vpack.c.bf16 %v3145_v47, %v7191_v8  ;;  %v3167_v27 = vadd.f32 %v3145_v47, %v3144_v17  ;;  %v2465_v8 = vpop.f32.mrf.mxu0  ;;  %v7254_v30 = vpop.f32.mrf.mxu2 }
 0x687   : > { %3346 = vmatmul.bf16.gmra.mxu0 %v3192_v29  ;;  %v2285_v1 = vpop.xlane.xlu1 %2284  ;;  %v2495_v41 = vadd.f32 %v2494_v52, %v2465_v8  ;;  %v7262_v33 = vpop.xlane.xlu2 %2726 }
 0x688   : > { %v5199_v3 = vpop.eup %5198  ;;  %3598 = vadd.xlane.f32.xlu2 %v7135_v15  ;;  %3375 = vmatmul.bf16.gmra.mxu1 %v3193_v61  ;;  %v2293_v23 = vmax.f32 %v2285_v1, 1e-20  ;;  %v3594_v15 = vadd.f32 %v7129_v5, %v7123_v16  ;;  %v7437_v16 = vld [vmem:[#allocation11_spill] sm:$0xff] }
 0x689   : > { %v5201_v57 = vpop.eup %5200  ;;  %v2501_v0 = vmul.f32 %v5199_v3, %v7433_v63  ;;  %3168 = vadd.xlane.f32.xlu0 %v3167_v27  ;;  %3610 = vadd.xlane.f32.xlu1 %v3609_v42 }
 0x68a   : > { %5202 = vrcp.f32 %v2293_v23  ;;  %v2943_v58 = vmul.f32 %v5201_v57, %v7038_v25 }
 0x68b   : > { %v2509_v18 = vadd.f32 %v2501_v0, %v7434_v48  ;;  %v3151_v47 = vpop.xlane.xlu0 %3150 }
 0x68c   : > { %v7256_v59 = vpop.f32.mrf.mxu3  ;;  %v3171_v61 = vmax.f32 %v3151_v47, 1e-20 }
 0x68d   : > { %v7233_v31 = vadd.f32 %v2943_v58, %v2509_v18 }
 0x68e   : > { %v7258_v22 = vpop.f32.mrf.mxu2  ;;  %v3332_v10 = vpop.f32.mrf.mxu0 }
 0x68f   : > { %v2712_v46 = vpop.xlane.xlu1 %2711 }
 0x690   : > { %v5203_v60 = vpop.eup %5202  ;;  %3607 = vadd.xlane.f32.xlu2 %v3606_v2  ;;  %v2730_v19 = vmax.f32 %v2712_v46, 1e-20 }
 0x691   : > { %v2504_v11 = vmul.f32 %v5203_v60, %v2495_v41  ;;  %3595 = vadd.xlane.f32.xlu0 %v3594_v15 }
 0x692   : > { %5204 = vrcp.f32 %v2730_v19 }
 0x693   : > { %v7238_v25 = vadd.f32 %v2504_v11, %v7435_v36 }
 0x694   : > { %v7260_v34 = vpop.f32.mrf.mxu3 }
 0x695   : > { %v3804_v47 = vadd.f32 %v7260_v34, %v7258_v22 }
 0x696   : > { %v3776_v55 = vpop.f32.mrf.mxu2  ;;  %v3334_v21 = vpop.f32.mrf.mxu0 }
 0x697   : > { %v2721_v12 = vpop.xlane.xlu1 %2720 }
 0x698   : > { %v5205_v37 = vpop.eup %5204  ;;  %v2733_v28 = vmax.f32 %v2721_v12, 1e-20 }
 0x699   : > { %v2941_v20 = vmul.f32 %v5205_v37, %v7436_v43  ;;  %3604 = vadd.xlane.f32.xlu0 %v3603_v4  ;;  %v2292_v4 = vmax.f32 %v7196_v51, 1e-20 }
 0x69a   : > { %5206 = vrcp.f32 %v2733_v28 }
 0x69b   : > { %v7244_v5 = vadd.f32 %v2941_v20, %v7437_v16  ;;  %5208 = vrcp.f32 %v3171_v61  ;;  %v7289_v16 = vld [vmem:[%s7359_s4] ss:$0 sm:$0xff] }
 0x69f   : > { %v3148_v14 = vpop.xlane.xlu1 %3147 }
 0x6a0   : > { %v5207_v13 = vpop.eup %5206  ;;  %v3170_v23 = vmax.f32 %v3148_v14, 1e-20  ;;  %v3362_v14 = vadd.f32 %v3361_v32, %v3332_v10 }
 0x6a1   : > { %v2944_v39 = vmul.f32 %v5207_v13, %v7059_v35  ;;  %v3805_v35 = vpop.f32.mrf.mxu3  ;;  %v5209_v2 = vpop.eup %5208 }
 0x6a2   : > { %v3806_v46 = vadd.f32 %v3805_v35, %v3776_v55 }
 0x6a3   : > { %v7248_v62 = vadd.f32 %v2944_v39, %v7138_v38  ;;  %v3363_v38 = vpop.f32.mrf.mxu1 }
 0x6a4   : > { %v3364_v48 = vadd.f32 %v3363_v38, %v3334_v21 }
 0x6a6   : > { %v3382_v41 = vmul.f32 %v5209_v2, %v3364_v48 }
 0x6a8   : > { %v3390_v12 = vadd.f32 %v3382_v41, %v7224_v49 }
 0x6af   : > { %v7266_v6 = vpop.f32.mrf.mxu2 }
 0x6b0   : > { %v7268_v45 = vpop.f32.mrf.mxu3 }
 0x6b7   : > { %v7278_v27 = vpop.f32.mrf.mxu2 }
 0x6b8   : > { %v7280_v1 = vpop.f32.mrf.mxu3 }
 0x6cb   : > { %v7272_v17 = vpop.xlane.xlu2 %3153 }
 0x6cc   : > { %v3172_v22 = vmax.f32 %v7272_v17, 1e-20 }
 0x6d3   : > { %v3157_v24 = vpop.xlane.xlu1 %3156 }
 0x6d4   : > { %v3173_v20 = vmax.f32 %v3157_v24, 1e-20  ;;  %v2734_v24 = vmax.f32 %v7264_v50, 1e-20 }
 0x6dc   : > { %v7270_v9 = vpop.f32.mrf.mxu0 }
 0x6dd   : > { %v7274_v7 = vpop.f32.mrf.mxu1 }
 0x6e4   : > { %v7276_v29 = vpop.xlane.xlu1 %3165  ;;  %v3339_v42 = vpop.f32.mrf.mxu0 }
 0x6e5   : > { %v3160_v57 = vpop.xlane.xlu0 %3159  ;;  %v3368_v0 = vpop.f32.mrf.mxu1 }
 0x6e6   : > { %v3174_v18 = vmax.f32 %v3160_v57, 1e-20  ;;  %v3369_v34 = vadd.f32 %v3368_v0, %v3339_v42  ;;  %v2493_v42 = vadd.f32 %v7219_v56, %v7217_v44  ;;  %v3367_v44 = vadd.f32 %v7274_v7, %v7270_v9 }
 0x6ea   : > { %v3784_v8 = vpop.f32.mrf.mxu2 }
 0x6eb   : > { %v7282_v3 = vpop.xlane.xlu2 %3162  ;;  %v3813_v52 = vpop.f32.mrf.mxu3 }
 0x6ec   : > { %v3593_v63 = vpop.xlane.xlu1 %3592  ;;  %v3814_v57 = vadd.f32 %v3813_v52, %v3784_v8  ;;  %v2735_v52 = vmax.f32 %v7262_v33, 1e-20  ;;  %v3811_v33 = vadd.f32 %v7280_v1, %v7278_v27 }
 0x6ed   : > { %v3613_v58 = vmax.f32 %v3593_v63, 1e-20 }
 0x6ef   : > { %5210 = vrcp.f32 %v3613_v58 }
 0x6f0   : > { %5212 = vrcp.f32 %v3170_v23 }
 0x6f1   : > { %5214 = vrcp.f32 %v3174_v18 }
 0x6f2   : > { %v7292_v21 = vpop.f32.mrf.mxu2 }
 0x6f3   : > { %v3590_v15 = vpop.xlane.xlu2 %3589  ;;  %v7304_v10 = vpop.f32.mrf.mxu3 }
 0x6f4   : > { %v3612_v60 = vmax.f32 %v3590_v15, 1e-20  ;;  %v3602_v19 = vpop.xlane.xlu1 %3601  ;;  %v3342_v11 = vpop.f32.mrf.mxu0  ;;  %v3176_v15 = vmax.f32 %v7276_v29, 1e-20 }
 0x6f5   : > { %v5211_v36 = vpop.eup %5210  ;;  %v3616_v37 = vmax.f32 %v3602_v19, 1e-20  ;;  %v3371_v28 = vpop.f32.mrf.mxu1 }
 0x6f6   : > { %v5213_v43 = vpop.eup %5212  ;;  %v3824_v13 = vmul.f32 %v5211_v36, %v3806_v46  ;;  %5216 = vrcp.f32 %v3612_v60  ;;  %v3372_v39 = vadd.f32 %v3371_v28, %v3342_v11 }
 0x6f7   : > { %5218 = vrcp.f32 %v3616_v37  ;;  %v5215_v35 = vpop.eup %5214  ;;  %v3381_v51 = vmul.f32 %v5213_v43, %v3362_v14 }
 0x6f8   : > { %v3832_v55 = vadd.f32 %v3824_v13, %v3390_v12  ;;  %5220 = vrcp.f32 %v2292_v4  ;;  %v3385_v38 = vmul.f32 %v5215_v35, %v3372_v39 }
 0x6f9   : > { %5222 = vrcp.f32 %v3173_v20  ;;  %v3389_v50 = vadd.f32 %v3381_v51, %v7142_v26 }
 0x6fa   : > { %v3844_v49 = vadd.f32 %v7289_v16, %v3832_v55  ;;  %v3393_v60 = vadd.f32 %v3385_v38, %v7233_v31  ;;  %v3175_v38 = vmax.f32 %v7282_v3, 1e-20 }
 0x6fb   : > { %v3599_v32 = vpop.xlane.xlu2 %3598 }
 0x6fc   : > { %v5217_v61 = vpop.eup %5216  ;;  %v3852_v23 = vmax.f32 %v3844_v49, 0.0  ;;  %v3615_v63 = vmax.f32 %v3599_v32, 1e-20  ;;  %v3169_v58 = vpop.xlane.xlu0 %3168  ;;  %v2935_v49 = vadd.f32 %v7252_v40, %v7250_v53  ;;  %v7438_v32 = vld [vmem:[#allocation7_spill] sm:$0xff]  ;;  %v2937_v40 = vadd.f32 %v7256_v59, %v7254_v30 }
 0x6fd   : > { %v5219_v48 = vpop.eup %5218  ;;  %v3823_v18 = vmul.f32 %v5217_v61, %v3804_v47  ;;  %v7308_v2 = vpop.f32.mrf.mxu0  ;;  %v3177_v35 = vmax.f32 %v3169_v58, 1e-20 }
 0x6fe   : > { %v7310_v41 = vpop.f32.mrf.mxu1  ;;  %3860 = vst [vmem:[%s7302_s19 + $0x8] sm:$0xff] %v3852_v23  ;;  %v3827_v46 = vmul.f32 %v5219_v48, %v3814_v57  ;;  %5224 = vrcp.f32 %v3615_v63  ;;  %v5221_v8 = vpop.eup %5220 }
 0x6ff   : > { %5226 = vrcp.f32 %v2734_v24  ;;  %v3831_v26 = vadd.f32 %v3823_v18, %v3389_v50  ;;  %v5223_v19 = vpop.eup %5222  ;;  %v2503_v36 = vmul.f32 %v5221_v8, %v2493_v42  ;;  %v3611_v43 = vpop.xlane.xlu1 %3610  ;;  %v3374_v42 = vadd.f32 %v7310_v41, %v7308_v2 }
 0x700   : > { %v3835_v17 = vadd.f32 %v3827_v46, %v3393_v60  ;;  %5228 = vrcp.f32 %v3172_v22  ;;  %v3384_v0 = vmul.f32 %v5223_v19, %v3369_v34  ;;  %v3619_v47 = vmax.f32 %v3611_v43, 1e-20 }
 0x701   : > { %v3843_v11 = vadd.f32 %v7289_v16, %v3831_v26  ;;  %5230 = vrcp.f32 %v3176_v15  ;;  %v3809_v46 = vadd.f32 %v7268_v45, %v7266_v6 }
 0x702   : > { %v3847_v29 = vadd.f32 %v7289_v16, %v3835_v17  ;;  %v3789_v31 = vpop.f32.mrf.mxu2  ;;  %5232 = vrcp.f32 %v2735_v52  ;;  %v3392_v14 = vadd.f32 %v3384_v0, %v7205_v54  ;;  %v2511_v54 = vadd.f32 %v2503_v36, %v7438_v32 }
 0x703   : > { %v3851_v4 = vmax.f32 %v3843_v11, 0.0  ;;  %v3608_v12 = vpop.xlane.xlu2 %3607  ;;  %v3818_v37 = vpop.f32.mrf.mxu3 }
 0x704   : > { %v5225_v28 = vpop.eup %5224  ;;  %v3855_v56 = vmax.f32 %v3847_v29, 0.0  ;;  %v3618_v20 = vmax.f32 %v3608_v12, 1e-20  ;;  %v3596_v13 = vpop.xlane.xlu0 %3595  ;;  %v3819_v48 = vadd.f32 %v3818_v37, %v3789_v31 }
 0x705   : > { %v5227_v39 = vpop.eup %5226  ;;  %3859 = vst [vmem:[%s7302_s19] sm:$0xff] %v3851_v4  ;;  %v3826_v55 = vmul.f32 %v5225_v28, %v3811_v33  ;;  %v3614_v51 = vmax.f32 %v3596_v13, 1e-20  ;;  %v3347_v27 = vpop.f32.mrf.mxu0 }
 0x706   : > { %v3376_v1 = vpop.f32.mrf.mxu1  ;;  %3863 = vst [vmem:[%s7302_s19 + $0x20] sm:$0xff] %v3855_v56  ;;  %5234 = vrcp.f32 %v3618_v20  ;;  %v5229_v7 = vpop.eup %5228  ;;  %v2945_v23 = vmul.f32 %v5227_v39, %v2935_v49  ;;  %v3816_v56 = vadd.f32 %v7304_v10, %v7292_v21 }
 0x707   : > { %v3377_v9 = vadd.f32 %v3376_v1, %v3347_v27  ;;  %v3834_v24 = vadd.f32 %v3826_v55, %v3392_v14  ;;  %5236 = vrcp.f32 %v3614_v51  ;;  %v5231_v61 = vpop.eup %5230  ;;  %v3383_v63 = vmul.f32 %v5229_v7, %v3367_v44 }
 0x708   : > { %v5233_v57 = vpop.eup %5232  ;;  %5238 = vrcp.f32 %v3177_v35  ;;  %v2953_v50 = vadd.f32 %v2945_v23, %v2511_v54 }
 0x709   : > { %v3846_v58 = vadd.f32 %v7289_v16, %v3834_v24  ;;  %v3387_v53 = vmul.f32 %v5231_v61, %v3377_v9  ;;  %5240 = vrcp.f32 %v3175_v38  ;;  %v2946_v15 = vmul.f32 %v5233_v57, %v2937_v40 }
 0x70a   : > { %5242 = vrcp.f32 %v3619_v47  ;;  %v3791_v22 = vpop.f32.mrf.mxu2  ;;  %v3391_v52 = vadd.f32 %v3383_v63, %v7244_v5 }
 0x70b   : > { %v3854_v3 = vmax.f32 %v3846_v58, 0.0  ;;  %v3820_v34 = vpop.f32.mrf.mxu3  ;;  %v3395_v19 = vadd.f32 %v3387_v53, %v2953_v50  ;;  %v2954_v5 = vadd.f32 %v2946_v15, %v7238_v25 }
 0x70c   : > { %v5235_v18 = vpop.eup %5234  ;;  %v3605_v60 = vpop.xlane.xlu0 %3604  ;;  %v3821_v11 = vadd.f32 %v3820_v34, %v3791_v22 }
 0x70d   : > { %v5237_v8 = vpop.eup %5236  ;;  %3862 = vst [vmem:[%s7302_s19 + $0x18] sm:$0xff] %v3854_v3  ;;  %v3829_v26 = vmul.f32 %v5235_v18, %v3819_v48  ;;  %v3617_v30 = vmax.f32 %v3605_v60, 1e-20  ;;  %v3349_v59 = vpop.f32.mrf.mxu0 }
 0x70e   : > { %v3378_v17 = vpop.f32.mrf.mxu1  ;;  %v3825_v0 = vmul.f32 %v5237_v8, %v3809_v46  ;;  %v5239_v31 = vpop.eup %5238 }
 0x70f   : > { %v3379_v29 = vadd.f32 %v3378_v17, %v3349_v59  ;;  %v3837_v36 = vadd.f32 %v3829_v26, %v3395_v19  ;;  %5244 = vrcp.f32 %v3617_v30  ;;  %v5241_v6 = vpop.eup %5240 }
 0x710   : > { %v3833_v45 = vadd.f32 %v3825_v0, %v3391_v52  ;;  %v5243_v4 = vpop.eup %5242  ;;  %v3386_v37 = vmul.f32 %v5241_v6, %v3374_v42 }
 0x711   : > { %v3388_v33 = vmul.f32 %v5239_v31, %v3379_v29  ;;  %v3849_v12 = vadd.f32 %v7289_v16, %v3837_v36  ;;  %v3830_v2 = vmul.f32 %v5243_v4, %v3821_v11 }
 0x712   : > { %v3845_v28 = vadd.f32 %v7289_v16, %v3833_v45  ;;  %v3394_v25 = vadd.f32 %v3386_v37, %v7248_v62 }
 0x713   : > { %v3396_v41 = vadd.f32 %v3388_v33, %v2954_v5  ;;  %v3857_v44 = vmax.f32 %v3849_v12, 0.0 }
 0x714   : > { %v3853_v43 = vmax.f32 %v3845_v28, 0.0 }
 0x715   : > { %v3838_v20 = vadd.f32 %v3830_v2, %v3396_v41  ;;  %v5245_v13 = vpop.eup %5244  ;;  %3865 = vst [vmem:[%s7302_s19 + $0x30] sm:$0xff] %v3857_v44 }
 0x716   : > { %3861 = vst [vmem:[%s7302_s19 + $0x10] sm:$0xff] %v3853_v43  ;;  %v3828_v39 = vmul.f32 %v5245_v13, %v3816_v56 }
 0x717   : > { %v3850_v14 = vadd.f32 %v7289_v16, %v3838_v20 }
 0x718   : > { %v3836_v55 = vadd.f32 %v3828_v39, %v3394_v25 }
 0x719   : > { %v3858_v35 = vmax.f32 %v3850_v14, 0.0 }
 0x71a   : > { %v3848_v51 = vadd.f32 %v7289_v16, %v3836_v55 }
 0x71b   : > { %3866 = vst [vmem:[%s7302_s19 + $0x38] sm:$0xff] %v3858_v35 }
 0x71c   : > { %v3856_v27 = vmax.f32 %v3848_v51, 0.0 }
 0x71e   : > { %3864 = vst [vmem:[%s7302_s19 + $0x28] sm:$0xff] %v3856_v27 }
 0x71f PF: > { %s15_s18 = sadd.s32 1, %s5268_s18  }
 0x720   : > { %p12_p5 = scmp.ge.s32.totalorder %s15_s18, 6  }
 0x722   :  { %14 = sbr.rel (!%p12_p5) target bundleno = 1 (0x1), region = 87 }

</bundles_post_ra>
